<compile_context>
chip_gen: v5e
topology: v5e:2x2
jax: 0.10.0
libtpu: 0.0.40
codegen_flags: <defaults>
</compile_context>

<pallas_src>
import functools

import jax
import jax.numpy as jnp
from jax.experimental import pallas as pl
from jax.experimental.pallas import tpu as pltpu


# ----------------------------------------------------------------------------
# Pallas kernel 1: fused GEMM + bias + ReLU (conv1 / conv2 im2col GEMMs).
# Whole operands fit easily in VMEM at these sizes.
# ----------------------------------------------------------------------------
def _gemm_bias_relu_kernel(x_ref, w_ref, b_ref, o_ref):
    acc = jnp.dot(x_ref[...], w_ref[...], preferred_element_type=jnp.float32)
    acc = acc + b_ref[...]                       # (1, N) broadcasts over rows
    o_ref[...] = jnp.maximum(acc, 0.0).astype(o_ref.dtype)


def gemm_bias_relu(x, w, b2, out_dtype=jnp.bfloat16):
    """x: (M, K) bf16, w: (K, N) bf16, b2: (1, N) f32 -> relu(x @ w + b) as out_dtype."""
    M, K = x.shape
    N = w.shape[1]
    return pl.pallas_call(
        _gemm_bias_relu_kernel,
        out_shape=jax.ShapeDtypeStruct((M, N), out_dtype),
        in_specs=[
            pl.BlockSpec((M, K), lambda: (0, 0)),
            pl.BlockSpec((K, N), lambda: (0, 0)),
            pl.BlockSpec((1, N), lambda: (0, 0)),
        ],
        out_specs=pl.BlockSpec((M, N), lambda: (0, 0)),
    )(x, w, b2)


def gemm_bias_relu_batched(x, w, b2, out_dtype=jnp.bfloat16):
    """Per-head GEMM: x (H, M, K), w (H, K, N), b2 (H, 1, N) -> (H, M, N)."""
    Hn, M, K = x.shape
    N = w.shape[2]
    return pl.pallas_call(
        _gemm_bias_relu_kernel,
        out_shape=jax.ShapeDtypeStruct((Hn, M, N), out_dtype),
        grid=(Hn,),
        in_specs=[
            pl.BlockSpec((None, M, K), lambda h: (h, 0, 0)),
            pl.BlockSpec((None, K, N), lambda h: (h, 0, 0)),
            pl.BlockSpec((None, 1, N), lambda h: (h, 0, 0)),
        ],
        out_specs=pl.BlockSpec((None, M, N), lambda h: (h, 0, 0)),
        compiler_params=pltpu.CompilerParams(dimension_semantics=("parallel",)),
    )(x, w, b2)


# ----------------------------------------------------------------------------
# Pallas kernel 2: fused conv3-GEMM + bias + ReLU + flatten + l1 + ReLU + l2.
# Per grid step (one head) the refs are:
#   p3  : (S=16, B, K3)  conv3 im2col patches, spatial-major (s = h*4 + w)
#   w3  : (K3, C3)       conv3 weight, (kh,kw,ci) x co layout
#   w1  : (S, C3, H)     l1 weight with the NCHW-flatten permutation folded in
#   w2  : (H, L)         l2 weight (pre-transposed, zero-padded to Lmax)
# The flatten is realised by accumulating the l1 contraction over the 16 spatial
# positions, so no relayout of the conv3 output is ever needed.
# ----------------------------------------------------------------------------
def _head_tail_kernel(p3_ref, w3_ref, b3_ref, w1_ref, b1_ref, w2_ref, b2_ref, o_ref):
    n_spatial = p3_ref.shape[0]
    bsz = p3_ref.shape[1]
    hid = w1_ref.shape[2]

    w3 = w3_ref[...]
    b3 = b3_ref[...]
    y1 = jnp.zeros((bsz, hid), jnp.float32)
    for s in range(n_spatial):                              # static unroll (16 iters)
        a = jnp.dot(p3_ref[s], w3, preferred_element_type=jnp.float32)   # (B, C3)
        a = jnp.maximum(a + b3, 0.0)                                      # conv3 + relu
        y1 = y1 + jnp.dot(a.astype(w1_ref.dtype), w1_ref[s],
                          preferred_element_type=jnp.float32)             # l1 partial
    y1 = jnp.maximum(y1 + b1_ref[...], 0.0)                               # l1 bias + relu
    y2 = jnp.dot(y1.astype(w2_ref.dtype), w2_ref[...],
                 preferred_element_type=jnp.float32) + b2_ref[...]        # l2
    o_ref[...] = y2.astype(o_ref.dtype)


def head_tail_batched(p3, w3, b3, w1p, b1, w2p, b2, out_dtype=jnp.float32):
    """Batched over heads. p3: (H, S, B, K3) -> (H, B, Lmax)."""
    Hn, S, B, K3 = p3.shape
    C3 = w3.shape[2]
    hid = w1p.shape[3]
    L = w2p.shape[2]
    return pl.pallas_call(
        _head_tail_kernel,
        out_shape=jax.ShapeDtypeStruct((Hn, B, L), out_dtype),
        grid=(Hn,),
        in_specs=[
            pl.BlockSpec((None, S, B, K3), lambda h: (h, 0, 0, 0)),
            pl.BlockSpec((None, K3, C3), lambda h: (h, 0, 0)),
            pl.BlockSpec((None, 1, C3), lambda h: (h, 0, 0)),
            pl.BlockSpec((None, S, C3, hid), lambda h: (h, 0, 0, 0)),
            pl.BlockSpec((None, 1, hid), lambda h: (h, 0, 0)),
            pl.BlockSpec((None, hid, L), lambda h: (h, 0, 0)),
            pl.BlockSpec((None, 1, L), lambda h: (h, 0, 0)),
        ],
        out_specs=pl.BlockSpec((None, B, L), lambda h: (h, 0, 0)),
        compiler_params=pltpu.CompilerParams(dimension_semantics=("parallel",)),
    )(p3, w3, b3, w1p, b1, w2p, b2)


# ----------------------------------------------------------------------------
# XLA glue: NHWC im2col for Conv2d(k=4, s=2, p=1) - pad + strided slices + concat.
# Patch column order is (kh, kw, ci); conv weights are pre-packed to match.
# ----------------------------------------------------------------------------
def im2col_nhwc(x, ksize=4, stride=2, pad=1):
    B, H, W, C = x.shape
    Ho = (H + 2 * pad - ksize) // stride + 1
    Wo = (W + 2 * pad - ksize) // stride + 1
    xp = jnp.pad(x, ((0, 0), (pad, pad), (pad, pad), (0, 0)))
    cols = [xp[:, kh:kh + stride * (Ho - 1) + 1:stride,
               kw:kw + stride * (Wo - 1) + 1:stride, :]
            for kh in range(ksize) for kw in range(ksize)]
    patches = jnp.concatenate(cols, axis=-1)            # (B, Ho, Wo, k*k*C)
    return patches, Ho, Wo


# ----------------------------------------------------------------------------
# One-time weight packing (hoisted out of the jitted forward).
# ----------------------------------------------------------------------------
def _pack_conv(w_oihw, b, dtype):
    c_out = w_oihw.shape[0]
    w_mat = jnp.transpose(w_oihw, (2, 3, 1, 0)).reshape(-1, c_out).astype(dtype)  # (kh,kw,ci) x co
    return w_mat, b.reshape(1, c_out).astype(jnp.float32)


def pack_head_params(p, dtype=jnp.bfloat16):
    c3 = p["conv3_w"].shape[0]
    hid = p["l1_w"].shape[0]                      # == 4*4*c3
    packed = {
        "conv1": _pack_conv(p["conv1_w"], p["conv1_b"], dtype),
        "conv2": _pack_conv(p["conv2_w"], p["conv2_b"], dtype),
        "conv3": _pack_conv(p["conv3_w"], p["conv3_b"], dtype),
    }
    # l1: fold the NCHW-flatten order (c, h, w) into the weight so the kernel's
    # NHWC spatial-major accumulation (s=(h,w), c) is exact.
    w_l1 = (p["l1_w"].T                           # (hid_in, hid_out), rows (c, h, w)
            .reshape(c3, 4, 4, hid)
            .transpose(1, 2, 0, 3)                # (h, w, c, hid_out)
            .reshape(16, c3, hid)
            .astype(dtype))
    packed["l1"] = (w_l1, p["l1_b"].reshape(1, hid).astype(jnp.float32))
    packed["l2"] = (p["l2_w"].T.astype(dtype),
                    p["l2_b"].reshape(1, -1).astype(jnp.float32))
    return packed


def stack_heads(packed0, packed1, label_dims):
    """Stack the two heads' packed weights for the batched / fused kernels."""
    l_max = max(label_dims)

    def pad_l2(wl2, bl2):
        L = wl2.shape[1]
        if L < l_max:
            wl2 = jnp.pad(wl2, ((0, 0), (0, l_max - L)))
            bl2 = jnp.pad(bl2, ((0, 0), (0, l_max - L)))
        return wl2, bl2

    w2a, b2a = pad_l2(*packed0["l2"])
    w2b, b2b = pad_l2(*packed1["l2"])
    return {
        # conv1: both heads share the im2col patches -> concatenate output channels.
        "conv1_w": jnp.concatenate([packed0["conv1"][0], packed1["conv1"][0]], axis=1),
        "conv1_b": jnp.concatenate([packed0["conv1"][1], packed1["conv1"][1]], axis=1),
        # conv2 / conv3 / l1 / l2: stacked along a leading head axis (grid=(2,)).
        "conv2_w": jnp.stack([packed0["conv2"][0], packed1["conv2"][0]], 0),
        "conv2_b": jnp.stack([packed0["conv2"][1], packed1["conv2"][1]], 0),
        "conv3_w": jnp.stack([packed0["conv3"][0], packed1["conv3"][0]], 0),
        "conv3_b": jnp.stack([packed0["conv3"][1], packed1["conv3"][1]], 0),
        "l1_w": jnp.stack([packed0["l1"][0], packed1["l1"][0]], 0),
        "l1_b": jnp.stack([packed0["l1"][1], packed1["l1"][1]], 0),
        "l2_w": jnp.stack([w2a, w2b], 0),
        "l2_b": jnp.stack([b2a, b2b], 0),
    }


# ----------------------------------------------------------------------------
# Forward pass (jitted). x: (B, C_in, 32, 32) NCHW -> (out0, out1) tuple.
# ----------------------------------------------------------------------------
@functools.partial(jax.jit, static_argnames=("label_dims",))
def gp_model_forward(x_nchw, stacked, label_dims):
    B = x_nchw.shape[0]
    x = jnp.transpose(x_nchw, (0, 2, 3, 1)).astype(jnp.bfloat16)          # NHWC, once
    patches1, H1, W1 = im2col_nhwc(x)                                     # shared by both heads
    c1 = stacked["conv1_w"].shape[1] // 2

    # conv1 for BOTH heads in a single GEMM (weights concatenated along N).
    a1 = gemm_bias_relu(patches1.reshape(B * H1 * W1, patches1.shape[-1]),
                        stacked["conv1_w"], stacked["conv1_b"])           # (B*256, 2*C1)

    def head_patches2(a1_head):
        a = a1_head.reshape(B, H1, W1, c1)
        p2, H2, W2 = im2col_nhwc(a)
        return p2.reshape(B * H2 * W2, p2.shape[-1]), H2, W2

    p2_h0, H2, W2 = head_patches2(a1[:, :c1])
    p2_h1, _, _ = head_patches2(a1[:, c1:])
    p2 = jnp.stack([p2_h0, p2_h1], 0)                                     # (2, B*64, K2)

    # conv2 for both heads in one grid=(2,) pallas_call.
    a2 = gemm_bias_relu_batched(p2, stacked["conv2_w"], stacked["conv2_b"])  # (2, B*64, C2)
    c2 = stacked["conv2_w"].shape[2]

    def head_patches3(a2_head):
        a = a2_head.reshape(B, H2, W2, c2)
        p3, H3, W3 = im2col_nhwc(a)                                       # (B, 4, 4, K3)
        return p3.reshape(B, H3 * W3, p3.shape[-1]).transpose(1, 0, 2)    # (S, B, K3)

    p3 = jnp.stack([head_patches3(a2[0]), head_patches3(a2[1])], 0)       # (2, S, B, K3)

    # conv3 + flatten + l1 + relu + l2 for both heads in one grid=(2,) pallas_call.
    out = head_tail_batched(p3, stacked["conv3_w"], stacked["conv3_b"],
                            stacked["l1_w"], stacked["l1_b"],
                            stacked["l2_w"], stacked["l2_b"])             # (2, B, Lmax)
    return out[0, :, :label_dims[0]], out[1, :, :label_dims[1]]


# ----------------------------------------------------------------------------
# Parameter construction (PyTorch-equivalent shapes) and pure-JAX f32 reference.
# ----------------------------------------------------------------------------
def make_head_params(key, label_dim, p_ch, in_ch, bias):
    ks = jax.random.split(key, 10)
    s = 0.05
    hid = 4 * 4 * p_ch * 4

    def maybe_bias(k, shape):
        if bias:
            return s * jax.random.normal(k, shape, jnp.float32)
        return jnp.zeros(shape, jnp.float32)

    return {
        "conv1_w": s * jax.random.normal(ks[0], (p_ch * 2, in_ch, 4, 4), jnp.float32),
        "conv1_b": maybe_bias(ks[1], (p_ch * 2,)),
        "conv2_w": s * jax.random.normal(ks[2], (p_ch * 4, p_ch * 2, 4, 4), jnp.float32),
        "conv2_b": maybe_bias(ks[3], (p_ch * 4,)),
        "conv3_w": s * jax.random.normal(ks[4], (p_ch * 4, p_ch * 4, 4, 4), jnp.float32),
        "conv3_b": maybe_bias(ks[5], (p_ch * 4,)),
        "l1_w": s * jax.random.normal(ks[6], (hid, hid), jnp.float32),
        "l1_b": maybe_bias(ks[7], (hid,)),
        "l2_w": s * jax.random.normal(ks[8], (label_dim, hid), jnp.float32),
        "l2_b": maybe_bias(ks[9], (label_dim,)),
    }


def reference_head_forward(x, p):
    def conv(x, w, b):
        y = jax.lax.conv_general_dilated(
            x, w, window_strides=(2, 2), padding=[(1, 1), (1, 1)],
            dimension_numbers=("NCHW", "OIHW", "NCHW"))
        return jax.nn.relu(y + b[None, :, None, None])

    out = conv(x, p["conv1_w"], p["conv1_b"])
    out = conv(out, p["conv2_w"], p["conv2_b"])
    out = conv(out, p["conv3_w"], p["conv3_b"])
    out = out.reshape(out.shape[0], -1)
    out = jax.nn.relu(out @ p["l1_w"].T + p["l1_b"])
    return out @ p["l2_w"].T + p["l2_b"]


if __name__ == "__main__":
    # Three stride-2 convs must land on 4x4 spatial -> input spatial is 32.
    # Small p_ch=8 => hidden dim 512. Two heads with label dims (10, 5), gp_bias=False
    # (the Gp_model default).
    B, in_ch, H, W = 2, 3, 32, 32
    p_ch = 8
    label_dims = (10, 5)
    gp_bias = False

    key = jax.random.PRNGKey(0)
    kx, k0, k1 = jax.random.split(key, 3)
    x = jax.random.normal(kx, (B, in_ch, H, W), jnp.float32)
    params0 = make_head_params(k0, label_dims[0], p_ch, in_ch, gp_bias)
    params1 = make_head_params(k1, label_dims[1], p_ch, in_ch, gp_bias)

    # One-time weight packing / head stacking (outside the jitted forward).
    packed0 = pack_head_params(params0)
    packed1 = pack_head_params(params1)
    stacked = stack_heads(packed0, packed1, label_dims)

    out0, out1 = jax.block_until_ready(gp_model_forward(x, stacked, label_dims))

    ref0 = reference_head_forward(x, params0)
    ref1 = reference_head_forward(x, params1)

    assert out0.shape == (B, label_dims[0]), out0.shape
    assert out1.shape == (B, label_dims[1]), out1.shape
    # bf16 GEMM operands with f32 accumulation -> compare to the f32 reference at
    # bf16-appropriate tolerance.
    err0 = float(jnp.max(jnp.abs(out0 - ref0)))
    err1 = float(jnp.max(jnp.abs(out1 - ref1)))
    assert jnp.allclose(out0, ref0, rtol=2e-2, atol=2e-2), err0
    assert jnp.allclose(out1, ref1, rtol=2e-2, atol=2e-2), err1
    print("KERNEL_OK")
</pallas_src>

<mosaic_0001>
module attributes {stable_mosaic.version = 11 : i64} {
  func.func @_gemm_bias_relu_kernel(%arg0: memref<512x48xbf16, #tpu.memory_space<vmem>>, %arg1: memref<48x32xbf16, #tpu.memory_space<vmem>>, %arg2: memref<1x32xf32, #tpu.memory_space<vmem>>, %arg3: memref<512x32xbf16, #tpu.memory_space<vmem>>) attributes {dimension_semantics = [], scalar_prefetch = 0 : i64, scratch_operands = 0 : i64, tpu.core_type = #tpu.core_type<tc>} {
    %c0 = arith.constant 0 : index
    %c0_0 = arith.constant 0 : index
    %0 = vector.load %arg0[%c0, %c0_0] : memref<512x48xbf16, #tpu.memory_space<vmem>>, vector<512x48xbf16>
    %c0_1 = arith.constant 0 : index
    %c0_2 = arith.constant 0 : index
    %1 = vector.load %arg1[%c0_1, %c0_2] : memref<48x32xbf16, #tpu.memory_space<vmem>>, vector<48x32xbf16>
    %cst = arith.constant dense<0.000000e+00> : vector<512x32xf32>
    %2 = tpu.matmul %0, %1, %cst {dimension_numbers = #tpu.dot_dimension_numbers<[1], [0], [0], [1], [0, 0, 1, 1], [], []>} : vector<512x48xbf16>, vector<48x32xbf16>, vector<512x32xf32> -> vector<512x32xf32>
    %c0_3 = arith.constant 0 : index
    %c0_4 = arith.constant 0 : index
    %3 = vector.load %arg2[%c0_3, %c0_4] : memref<1x32xf32, #tpu.memory_space<vmem>>, vector<1x32xf32>
    %4 = vector.broadcast %3 : vector<1x32xf32> to vector<512x32xf32>
    %5 = arith.addf %2, %4 : vector<512x32xf32>
    %cst_5 = arith.constant 0.000000e+00 : f32
    %6 = vector.broadcast %cst_5 : f32 to vector<512x32xf32>
    %7 = arith.maximumf %5, %6 : vector<512x32xf32>
    %8 = arith.truncf %7 : vector<512x32xf32> to vector<512x32xbf16>
    %c0_6 = arith.constant 0 : index
    %c0_7 = arith.constant 0 : index
    %9 = vector.load %arg3[%c0_6, %c0_7] : memref<512x32xbf16, #tpu.memory_space<vmem>>, vector<512x32xbf16>
    tpu.vector_store %arg3[%c0_6, %c0_7], %8 {strides = array<i32>} : memref<512x32xbf16, #tpu.memory_space<vmem>>, vector<512x32xbf16>,
    return
  }
}

module attributes {stable_mosaic.version = 11 : i64} {
  func.func @_gemm_bias_relu_kernel(%arg0: i32, %arg1: memref<1x128x256xbf16, #tpu.memory_space<vmem>>, %arg2: memref<1x256x32xbf16, #tpu.memory_space<vmem>>, %arg3: memref<1x1x32xf32, #tpu.memory_space<vmem>>, %arg4: memref<1x128x32xbf16, #tpu.memory_space<vmem>>) attributes {dimension_semantics = [#tpu.dimension_semantics<parallel>], iteration_bounds = array<i64: 2>, scalar_prefetch = 0 : i64, scratch_operands = 0 : i64, tpu.core_type = #tpu.core_type<tc>, window_params = [{transform_indices = @transform_0, window_bounds = array<i64: 1, 128, 256>}, {transform_indices = @transform_1, window_bounds = array<i64: 1, 256, 32>}, {transform_indices = @transform_2, window_bounds = array<i64: 1, 1, 32>}, {transform_indices = @transform_3, window_bounds = array<i64: 1, 128, 32>}]} {
    %c0 = arith.constant 0 : index
    %c0_0 = arith.constant 0 : index
    %c0_1 = arith.constant 0 : index
    %0 = vector.load %arg1[%c0, %c0_0, %c0_1] : memref<1x128x256xbf16, #tpu.memory_space<vmem>>, vector<1x128x256xbf16>
    %1 = vector.shape_cast %0 : vector<1x128x256xbf16> to vector<128x256xbf16>
    %c0_2 = arith.constant 0 : index
    %c0_3 = arith.constant 0 : index
    %c0_4 = arith.constant 0 : index
    %2 = vector.load %arg2[%c0_2, %c0_3, %c0_4] : memref<1x256x32xbf16, #tpu.memory_space<vmem>>, vector<1x256x32xbf16>
    %3 = vector.shape_cast %2 : vector<1x256x32xbf16> to vector<256x32xbf16>
    %cst = arith.constant dense<0.000000e+00> : vector<128x32xf32>
    %4 = tpu.matmul %1, %3, %cst {dimension_numbers = #tpu.dot_dimension_numbers<[1], [0], [0], [1], [0, 0, 1, 1], [], []>} : vector<128x256xbf16>, vector<256x32xbf16>, vector<128x32xf32> -> vector<128x32xf32>
    %c0_5 = arith.constant 0 : index
    %c0_6 = arith.constant 0 : index
    %c0_7 = arith.constant 0 : index
    %5 = vector.load %arg3[%c0_5, %c0_6, %c0_7] : memref<1x1x32xf32, #tpu.memory_space<vmem>>, vector<1x1x32xf32>
    %6 = vector.shape_cast %5 : vector<1x1x32xf32> to vector<1x32xf32>
    %7 = vector.broadcast %6 : vector<1x32xf32> to vector<128x32xf32>
    %8 = arith.addf %4, %7 : vector<128x32xf32>
    %cst_8 = arith.constant 0.000000e+00 : f32
    %9 = vector.broadcast %cst_8 : f32 to vector<128x32xf32>
    %10 = arith.maximumf %8, %9 : vector<128x32xf32>
    %11 = arith.truncf %10 : vector<128x32xf32> to vector<128x32xbf16>
    %c0_9 = arith.constant 0 : index
    %c0_10 = arith.constant 0 : index
    %c0_11 = arith.constant 0 : index
    %12 = vector.load %arg4[%c0_9, %c0_10, %c0_11] : memref<1x128x32xbf16, #tpu.memory_space<vmem>>, vector<1x128x32xbf16>
    %13 = vector.shape_cast %12 : vector<1x128x32xbf16> to vector<128x32xbf16>
    %14 = vector.shape_cast %11 : vector<128x32xbf16> to vector<1x128x32xbf16>
    tpu.vector_store %arg4[%c0_9, %c0_10, %c0_11], %14 {strides = array<i32>} : memref<1x128x32xbf16, #tpu.memory_space<vmem>>, vector<1x128x32xbf16>,
    return
  }
  func.func @transform_0(%arg0: i32) -> (i32, i32, i32) {
    %c0_i32 = arith.constant 0 : i32
    %c0_i32_0 = arith.constant 0 : i32
    %c0_i32_1 = arith.constant 0 : i32
    return %arg0, %c0_i32, %c0_i32_0 : i32, i32, i32
  }
  func.func @transform_1(%arg0: i32) -> (i32, i32, i32) {
    %c0_i32 = arith.constant 0 : i32
    %c0_i32_0 = arith.constant 0 : i32
    %c0_i32_1 = arith.constant 0 : i32
    return %arg0, %c0_i32, %c0_i32_0 : i32, i32, i32
  }
  func.func @transform_2(%arg0: i32) -> (i32, i32, i32) {
    %c0_i32 = arith.constant 0 : i32
    %c0_i32_0 = arith.constant 0 : i32
    %c0_i32_1 = arith.constant 0 : i32
    return %arg0, %c0_i32, %c0_i32_0 : i32, i32, i32
  }
  func.func @transform_3(%arg0: i32) -> (i32, i32, i32) {
    %c0_i32 = arith.constant 0 : i32
    %c0_i32_0 = arith.constant 0 : i32
    %c0_i32_1 = arith.constant 0 : i32
    return %arg0, %c0_i32, %c0_i32_0 : i32, i32, i32
  }
}

module attributes {stable_mosaic.version = 11 : i64} {
  func.func @_head_tail_kernel(%arg0: i32, %arg1: memref<1x16x2x512xbf16, #tpu.memory_space<vmem>>, %arg2: memref<1x512x32xbf16, #tpu.memory_space<vmem>>, %arg3: memref<1x1x32xf32, #tpu.memory_space<vmem>>, %arg4: memref<1x16x32x512xbf16, #tpu.memory_space<vmem>>, %arg5: memref<1x1x512xf32, #tpu.memory_space<vmem>>, %arg6: memref<1x512x10xbf16, #tpu.memory_space<vmem>>, %arg7: memref<1x1x10xf32, #tpu.memory_space<vmem>>, %arg8: memref<1x2x10xf32, #tpu.memory_space<vmem>>) attributes {dimension_semantics = [#tpu.dimension_semantics<parallel>], iteration_bounds = array<i64: 2>, scalar_prefetch = 0 : i64, scratch_operands = 0 : i64, tpu.core_type = #tpu.core_type<tc>, window_params = [{transform_indices = @transform_0, window_bounds = array<i64: 1, 16, 2, 512>}, {transform_indices = @transform_1, window_bounds = array<i64: 1, 512, 32>}, {transform_indices = @transform_2, window_bounds = array<i64: 1, 1, 32>}, {transform_indices = @transform_3, window_bounds = array<i64: 1, 16, 32, 512>}, {transform_indices = @transform_4, window_bounds = array<i64: 1, 1, 512>}, {transform_indices = @transform_5, window_bounds = array<i64: 1, 512, 10>}, {transform_indices = @transform_6, window_bounds = array<i64: 1, 1, 10>}, {transform_indices = @transform_7, window_bounds = array<i64: 1, 2, 10>}]} {
    %c0 = arith.constant 0 : index
    %c0_0 = arith.constant 0 : index
    %c0_1 = arith.constant 0 : index
    %0 = vector.load %arg2[%c0, %c0_0, %c0_1] : memref<1x512x32xbf16, #tpu.memory_space<vmem>>, vector<1x512x32xbf16>
    %1 = vector.shape_cast %0 : vector<1x512x32xbf16> to vector<512x32xbf16>
    %c0_2 = arith.constant 0 : index
    %c0_3 = arith.constant 0 : index
    %c0_4 = arith.constant 0 : index
    %2 = vector.load %arg3[%c0_2, %c0_3, %c0_4] : memref<1x1x32xf32, #tpu.memory_space<vmem>>, vector<1x1x32xf32>
    %3 = vector.shape_cast %2 : vector<1x1x32xf32> to vector<1x32xf32>
    %cst = arith.constant 0.000000e+00 : f32
    %4 = vector.broadcast %cst : f32 to vector<2x512xf32>
    %c0_5 = arith.constant 0 : index
    %c0_6 = arith.constant 0 : index
    %c0_7 = arith.constant 0 : index
    %c0_8 = arith.constant 0 : index
    %5 = vector.load %arg1[%c0_5, %c0_6, %c0_7, %c0_8] : memref<1x16x2x512xbf16, #tpu.memory_space<vmem>>, vector<1x1x2x512xbf16>
    %6 = vector.shape_cast %5 : vector<1x1x2x512xbf16> to vector<2x512xbf16>
    %cst_9 = arith.constant dense<0.000000e+00> : vector<2x32xf32>
    %7 = tpu.matmul %6, %1, %cst_9 {dimension_numbers = #tpu.dot_dimension_numbers<[1], [0], [0], [1], [0, 0, 1, 1], [], []>} : vector<2x512xbf16>, vector<512x32xbf16>, vector<2x32xf32> -> vector<2x32xf32>
    %8 = vector.broadcast %3 : vector<1x32xf32> to vector<2x32xf32>
    %9 = arith.addf %7, %8 : vector<2x32xf32>
    %cst_10 = arith.constant 0.000000e+00 : f32
    %10 = vector.broadcast %cst_10 : f32 to vector<2x32xf32>
    %11 = arith.maximumf %9, %10 : vector<2x32xf32>
    %12 = arith.truncf %11 : vector<2x32xf32> to vector<2x32xbf16>
    %c0_11 = arith.constant 0 : index
    %c0_12 = arith.constant 0 : index
    %c0_13 = arith.constant 0 : index
    %c0_14 = arith.constant 0 : index
    %13 = vector.load %arg4[%c0_11, %c0_12, %c0_13, %c0_14] : memref<1x16x32x512xbf16, #tpu.memory_space<vmem>>, vector<1x1x32x512xbf16>
    %14 = vector.shape_cast %13 : vector<1x1x32x512xbf16> to vector<32x512xbf16>
    %cst_15 = arith.constant dense<0.000000e+00> : vector<2x512xf32>
    %15 = tpu.matmul %12, %14, %cst_15 {dimension_numbers = #tpu.dot_dimension_numbers<[1], [0], [0], [1], [0, 0, 1, 1], [], []>} : vector<2x32xbf16>, vector<32x512xbf16>, vector<2x512xf32> -> vector<2x512xf32>
    %16 = arith.addf %4, %15 : vector<2x512xf32>
    %c0_16 = arith.constant 0 : index
    %c1 = arith.constant 1 : index
    %c0_17 = arith.constant 0 : index
    %c0_18 = arith.constant 0 : index
    %17 = vector.load %arg1[%c0_16, %c1, %c0_17, %c0_18] : memref<1x16x2x512xbf16, #tpu.memory_space<vmem>>, vector<1x1x2x512xbf16>
    %18 = vector.shape_cast %17 : vector<1x1x2x512xbf16> to vector<2x512xbf16>
    %cst_19 = arith.constant dense<0.000000e+00> : vector<2x32xf32>
    %19 = tpu.matmul %18, %1, %cst_19 {dimension_numbers = #tpu.dot_dimension_numbers<[1], [0], [0], [1], [0, 0, 1, 1], [], []>} : vector<2x512xbf16>, vector<512x32xbf16>, vector<2x32xf32> -> vector<2x32xf32>
    %20 = vector.broadcast %3 : vector<1x32xf32> to vector<2x32xf32>
    %21 = arith.addf %19, %20 : vector<2x32xf32>
    %cst_20 = arith.constant 0.000000e+00 : f32
    %22 = vector.broadcast %cst_20 : f32 to vector<2x32xf32>
    %23 = arith.maximumf %21, %22 : vector<2x32xf32>
    %24 = arith.truncf %23 : vector<2x32xf32> to vector<2x32xbf16>
    %c0_21 = arith.constant 0 : index
    %c1_22 = arith.constant 1 : index
    %c0_23 = arith.constant 0 : index
    %c0_24 = arith.constant 0 : index
    %25 = vector.load %arg4[%c0_21, %c1_22, %c0_23, %c0_24] : memref<1x16x32x512xbf16, #tpu.memory_space<vmem>>, vector<1x1x32x512xbf16>
    %26 = vector.shape_cast %25 : vector<1x1x32x512xbf16> to vector<32x512xbf16>
    %cst_25 = arith.constant dense<0.000000e+00> : vector<2x512xf32>
    %27 = tpu.matmul %24, %26, %cst_25 {dimension_numbers = #tpu.dot_dimension_numbers<[1], [0], [0], [1], [0, 0, 1, 1], [], []>} : vector<2x32xbf16>, vector<32x512xbf16>, vector<2x512xf32> -> vector<2x512xf32>
    %28 = arith.addf %16, %27 : vector<2x512xf32>
    %c0_26 = arith.constant 0 : index
    %c2 = arith.constant 2 : index
    %c0_27 = arith.constant 0 : index
    %c0_28 = arith.constant 0 : index
    %29 = vector.load %arg1[%c0_26, %c2, %c0_27, %c0_28] : memref<1x16x2x512xbf16, #tpu.memory_space<vmem>>, vector<1x1x2x512xbf16>
    %30 = vector.shape_cast %29 : vector<1x1x2x512xbf16> to vector<2x512xbf16>
    %cst_29 = arith.constant dense<0.000000e+00> : vector<2x32xf32>
    %31 = tpu.matmul %30, %1, %cst_29 {dimension_numbers = #tpu.dot_dimension_numbers<[1], [0], [0], [1], [0, 0, 1, 1], [], []>} : vector<2x512xbf16>, vector<512x32xbf16>, vector<2x32xf32> -> vector<2x32xf32>
    %32 = vector.broadcast %3 : vector<1x32xf32> to vector<2x32xf32>
    %33 = arith.addf %31, %32 : vector<2x32xf32>
    %cst_30 = arith.constant 0.000000e+00 : f32
    %34 = vector.broadcast %cst_30 : f32 to vector<2x32xf32>
    %35 = arith.maximumf %33, %34 : vector<2x32xf32>
    %36 = arith.truncf %35 : vector<2x32xf32> to vector<2x32xbf16>
    %c0_31 = arith.constant 0 : index
    %c2_32 = arith.constant 2 : index
    %c0_33 = arith.constant 0 : index
    %c0_34 = arith.constant 0 : index
    %37 = vector.load %arg4[%c0_31, %c2_32, %c0_33, %c0_34] : memref<1x16x32x512xbf16, #tpu.memory_space<vmem>>, vector<1x1x32x512xbf16>
    %38 = vector.shape_cast %37 : vector<1x1x32x512xbf16> to vector<32x512xbf16>
    %cst_35 = arith.constant dense<0.000000e+00> : vector<2x512xf32>
    %39 = tpu.matmul %36, %38, %cst_35 {dimension_numbers = #tpu.dot_dimension_numbers<[1], [0], [0], [1], [0, 0, 1, 1], [], []>} : vector<2x32xbf16>, vector<32x512xbf16>, vector<2x512xf32> -> vector<2x512xf32>
    %40 = arith.addf %28, %39 : vector<2x512xf32>
    %c0_36 = arith.constant 0 : index
    %c3 = arith.constant 3 : index
    %c0_37 = arith.constant 0 : index
    %c0_38 = arith.constant 0 : index
    %41 = vector.load %arg1[%c0_36, %c3, %c0_37, %c0_38] : memref<1x16x2x512xbf16, #tpu.memory_space<vmem>>, vector<1x1x2x512xbf16>
    %42 = vector.shape_cast %41 : vector<1x1x2x512xbf16> to vector<2x512xbf16>
    %cst_39 = arith.constant dense<0.000000e+00> : vector<2x32xf32>
    %43 = tpu.matmul %42, %1, %cst_39 {dimension_numbers = #tpu.dot_dimension_numbers<[1], [0], [0], [1], [0, 0, 1, 1], [], []>} : vector<2x512xbf16>, vector<512x32xbf16>, vector<2x32xf32> -> vector<2x32xf32>
    %44 = vector.broadcast %3 : vector<1x32xf32> to vector<2x32xf32>
    %45 = arith.addf %43, %44 : vector<2x32xf32>
    %cst_40 = arith.constant 0.000000e+00 : f32
    %46 = vector.broadcast %cst_40 : f32 to vector<2x32xf32>
    %47 = arith.maximumf %45, %46 : vector<2x32xf32>
    %48 = arith.truncf %47 : vector<2x32xf32> to vector<2x32xbf16>
    %c0_41 = arith.constant 0 : index
    %c3_42 = arith.constant 3 : index
    %c0_43 = arith.constant 0 : index
    %c0_44 = arith.constant 0 : index
    %49 = vector.load %arg4[%c0_41, %c3_42, %c0_43, %c0_44] : memref<1x16x32x512xbf16, #tpu.memory_space<vmem>>, vector<1x1x32x512xbf16>
    %50 = vector.shape_cast %49 : vector<1x1x32x512xbf16> to vector<32x512xbf16>
    %cst_45 = arith.constant dense<0.000000e+00> : vector<2x512xf32>
    %51 = tpu.matmul %48, %50, %cst_45 {dimension_numbers = #tpu.dot_dimension_numbers<[1], [0], [0], [1], [0, 0, 1, 1], [], []>} : vector<2x32xbf16>, vector<32x512xbf16>, vector<2x512xf32> -> vector<2x512xf32>
    %52 = arith.addf %40, %51 : vector<2x512xf32>
    %c0_46 = arith.constant 0 : index
    %c4 = arith.constant 4 : index
    %c0_47 = arith.constant 0 : index
    %c0_48 = arith.constant 0 : index
    %53 = vector.load %arg1[%c0_46, %c4, %c0_47, %c0_48] : memref<1x16x2x512xbf16, #tpu.memory_space<vmem>>, vector<1x1x2x512xbf16>
    %54 = vector.shape_cast %53 : vector<1x1x2x512xbf16> to vector<2x512xbf16>
    %cst_49 = arith.constant dense<0.000000e+00> : vector<2x32xf32>
    %55 = tpu.matmul %54, %1, %cst_49 {dimension_numbers = #tpu.dot_dimension_numbers<[1], [0], [0], [1], [0, 0, 1, 1], [], []>} : vector<2x512xbf16>, vector<512x32xbf16>, vector<2x32xf32> -> vector<2x32xf32>
    %56 = vector.broadcast %3 : vector<1x32xf32> to vector<2x32xf32>
    %57 = arith.addf %55, %56 : vector<2x32xf32>
    %cst_50 = arith.constant 0.000000e+00 : f32
    %58 = vector.broadcast %cst_50 : f32 to vector<2x32xf32>
    %59 = arith.maximumf %57, %58 : vector<2x32xf32>
    %60 = arith.truncf %59 : vector<2x32xf32> to vector<2x32xbf16>
    %c0_51 = arith.constant 0 : index
    %c4_52 = arith.constant 4 : index
    %c0_53 = arith.constant 0 : index
    %c0_54 = arith.constant 0 : index
    %61 = vector.load %arg4[%c0_51, %c4_52, %c0_53, %c0_54] : memref<1x16x32x512xbf16, #tpu.memory_space<vmem>>, vector<1x1x32x512xbf16>
    %62 = vector.shape_cast %61 : vector<1x1x32x512xbf16> to vector<32x512xbf16>
    %cst_55 = arith.constant dense<0.000000e+00> : vector<2x512xf32>
    %63 = tpu.matmul %60, %62, %cst_55 {dimension_numbers = #tpu.dot_dimension_numbers<[1], [0], [0], [1], [0, 0, 1, 1], [], []>} : vector<2x32xbf16>, vector<32x512xbf16>, vector<2x512xf32> -> vector<2x512xf32>
    %64 = arith.addf %52, %63 : vector<2x512xf32>
    %c0_56 = arith.constant 0 : index
    %c5 = arith.constant 5 : index
    %c0_57 = arith.constant 0 : index
    %c0_58 = arith.constant 0 : index
    %65 = vector.load %arg1[%c0_56, %c5, %c0_57, %c0_58] : memref<1x16x2x512xbf16, #tpu.memory_space<vmem>>, vector<1x1x2x512xbf16>
    %66 = vector.shape_cast %65 : vector<1x1x2x512xbf16> to vector<2x512xbf16>
    %cst_59 = arith.constant dense<0.000000e+00> : vector<2x32xf32>
    %67 = tpu.matmul %66, %1, %cst_59 {dimension_numbers = #tpu.dot_dimension_numbers<[1], [0], [0], [1], [0, 0, 1, 1], [], []>} : vector<2x512xbf16>, vector<512x32xbf16>, vector<2x32xf32> -> vector<2x32xf32>
    %68 = vector.broadcast %3 : vector<1x32xf32> to vector<2x32xf32>
    %69 = arith.addf %67, %68 : vector<2x32xf32>
    %cst_60 = arith.constant 0.000000e+00 : f32
    %70 = vector.broadcast %cst_60 : f32 to vector<2x32xf32>
    %71 = arith.maximumf %69, %70 : vector<2x32xf32>
    %72 = arith.truncf %71 : vector<2x32xf32> to vector<2x32xbf16>
    %c0_61 = arith.constant 0 : index
    %c5_62 = arith.constant 5 : index
    %c0_63 = arith.constant 0 : index
    %c0_64 = arith.constant 0 : index
    %73 = vector.load %arg4[%c0_61, %c5_62, %c0_63, %c0_64] : memref<1x16x32x512xbf16, #tpu.memory_space<vmem>>, vector<1x1x32x512xbf16>
    %74 = vector.shape_cast %73 : vector<1x1x32x512xbf16> to vector<32x512xbf16>
    %cst_65 = arith.constant dense<0.000000e+00> : vector<2x512xf32>
    %75 = tpu.matmul %72, %74, %cst_65 {dimension_numbers = #tpu.dot_dimension_numbers<[1], [0], [0], [1], [0, 0, 1, 1], [], []>} : vector<2x32xbf16>, vector<32x512xbf16>, vector<2x512xf32> -> vector<2x512xf32>
    %76 = arith.addf %64, %75 : vector<2x512xf32>
    %c0_66 = arith.constant 0 : index
    %c6 = arith.constant 6 : index
    %c0_67 = arith.constant 0 : index
    %c0_68 = arith.constant 0 : index
    %77 = vector.load %arg1[%c0_66, %c6, %c0_67, %c0_68] : memref<1x16x2x512xbf16, #tpu.memory_space<vmem>>, vector<1x1x2x512xbf16>
    %78 = vector.shape_cast %77 : vector<1x1x2x512xbf16> to vector<2x512xbf16>
    %cst_69 = arith.constant dense<0.000000e+00> : vector<2x32xf32>
    %79 = tpu.matmul %78, %1, %cst_69 {dimension_numbers = #tpu.dot_dimension_numbers<[1], [0], [0], [1], [0, 0, 1, 1], [], []>} : vector<2x512xbf16>, vector<512x32xbf16>, vector<2x32xf32> -> vector<2x32xf32>
    %80 = vector.broadcast %3 : vector<1x32xf32> to vector<2x32xf32>
    %81 = arith.addf %79, %80 : vector<2x32xf32>
    %cst_70 = arith.constant 0.000000e+00 : f32
    %82 = vector.broadcast %cst_70 : f32 to vector<2x32xf32>
    %83 = arith.maximumf %81, %82 : vector<2x32xf32>
    %84 = arith.truncf %83 : vector<2x32xf32> to vector<2x32xbf16>
    %c0_71 = arith.constant 0 : index
    %c6_72 = arith.constant 6 : index
    %c0_73 = arith.constant 0 : index
    %c0_74 = arith.constant 0 : index
    %85 = vector.load %arg4[%c0_71, %c6_72, %c0_73, %c0_74] : memref<1x16x32x512xbf16, #tpu.memory_space<vmem>>, vector<1x1x32x512xbf16>
    %86 = vector.shape_cast %85 : vector<1x1x32x512xbf16> to vector<32x512xbf16>
    %cst_75 = arith.constant dense<0.000000e+00> : vector<2x512xf32>
    %87 = tpu.matmul %84, %86, %cst_75 {dimension_numbers = #tpu.dot_dimension_numbers<[1], [0], [0], [1], [0, 0, 1, 1], [], []>} : vector<2x32xbf16>, vector<32x512xbf16>, vector<2x512xf32> -> vector<2x512xf32>
    %88 = arith.addf %76, %87 : vector<2x512xf32>
    %c0_76 = arith.constant 0 : index
    %c7 = arith.constant 7 : index
    %c0_77 = arith.constant 0 : index
    %c0_78 = arith.constant 0 : index
    %89 = vector.load %arg1[%c0_76, %c7, %c0_77, %c0_78] : memref<1x16x2x512xbf16, #tpu.memory_space<vmem>>, vector<1x1x2x512xbf16>
    %90 = vector.shape_cast %89 : vector<1x1x2x512xbf16> to vector<2x512xbf16>
    %cst_79 = arith.constant dense<0.000000e+00> : vector<2x32xf32>
    %91 = tpu.matmul %90, %1, %cst_79 {dimension_numbers = #tpu.dot_dimension_numbers<[1], [0], [0], [1], [0, 0, 1, 1], [], []>} : vector<2x512xbf16>, vector<512x32xbf16>, vector<2x32xf32> -> vector<2x32xf32>
    %92 = vector.broadcast %3 : vector<1x32xf32> to vector<2x32xf32>
    %93 = arith.addf %91, %92 : vector<2x32xf32>
    %cst_80 = arith.constant 0.000000e+00 : f32
    %94 = vector.broadcast %cst_80 : f32 to vector<2x32xf32>
    %95 = arith.maximumf %93, %94 : vector<2x32xf32>
    %96 = arith.truncf %95 : vector<2x32xf32> to vector<2x32xbf16>
    %c0_81 = arith.constant 0 : index
    %c7_82 = arith.constant 7 : index
    %c0_83 = arith.constant 0 : index
    %c0_84 = arith.constant 0 : index
    %97 = vector.load %arg4[%c0_81, %c7_82, %c0_83, %c0_84] : memref<1x16x32x512xbf16, #tpu.memory_space<vmem>>, vector<1x1x32x512xbf16>
    %98 = vector.shape_cast %97 : vector<1x1x32x512xbf16> to vector<32x512xbf16>
    %cst_85 = arith.constant dense<0.000000e+00> : vector<2x512xf32>
    %99 = tpu.matmul %96, %98, %cst_85 {dimension_numbers = #tpu.dot_dimension_numbers<[1], [0], [0], [1], [0, 0, 1, 1], [], []>} : vector<2x32xbf16>, vector<32x512xbf16>, vector<2x512xf32> -> vector<2x512xf32>
    %100 = arith.addf %88, %99 : vector<2x512xf32>
    %c0_86 = arith.constant 0 : index
    %c8 = arith.constant 8 : index
    %c0_87 = arith.constant 0 : index
    %c0_88 = arith.constant 0 : index
    %101 = vector.load %arg1[%c0_86, %c8, %c0_87, %c0_88] : memref<1x16x2x512xbf16, #tpu.memory_space<vmem>>, vector<1x1x2x512xbf16>
    %102 = vector.shape_cast %101 : vector<1x1x2x512xbf16> to vector<2x512xbf16>
    %cst_89 = arith.constant dense<0.000000e+00> : vector<2x32xf32>
    %103 = tpu.matmul %102, %1, %cst_89 {dimension_numbers = #tpu.dot_dimension_numbers<[1], [0], [0], [1], [0, 0, 1, 1], [], []>} : vector<2x512xbf16>, vector<512x32xbf16>, vector<2x32xf32> -> vector<2x32xf32>
    %104 = vector.broadcast %3 : vector<1x32xf32> to vector<2x32xf32>
    %105 = arith.addf %103, %104 : vector<2x32xf32>
    %cst_90 = arith.constant 0.000000e+00 : f32
    %106 = vector.broadcast %cst_90 : f32 to vector<2x32xf32>
    %107 = arith.maximumf %105, %106 : vector<2x32xf32>
    %108 = arith.truncf %107 : vector<2x32xf32> to vector<2x32xbf16>
    %c0_91 = arith.constant 0 : index
    %c8_92 = arith.constant 8 : index
    %c0_93 = arith.constant 0 : index
    %c0_94 = arith.constant 0 : index
    %109 = vector.load %arg4[%c0_91, %c8_92, %c0_93, %c0_94] : memref<1x16x32x512xbf16, #tpu.memory_space<vmem>>, vector<1x1x32x512xbf16>
    %110 = vector.shape_cast %109 : vector<1x1x32x512xbf16> to vector<32x512xbf16>
    %cst_95 = arith.constant dense<0.000000e+00> : vector<2x512xf32>
    %111 = tpu.matmul %108, %110, %cst_95 {dimension_numbers = #tpu.dot_dimension_numbers<[1], [0], [0], [1], [0, 0, 1, 1], [], []>} : vector<2x32xbf16>, vector<32x512xbf16>, vector<2x512xf32> -> vector<2x512xf32>
    %112 = arith.addf %100, %111 : vector<2x512xf32>
    %c0_96 = arith.constant 0 : index
    %c9 = arith.constant 9 : index
    %c0_97 = arith.constant 0 : index
    %c0_98 = arith.constant 0 : index
    %113 = vector.load %arg1[%c0_96, %c9, %c0_97, %c0_98] : memref<1x16x2x512xbf16, #tpu.memory_space<vmem>>, vector<1x1x2x512xbf16>
    %114 = vector.shape_cast %113 : vector<1x1x2x512xbf16> to vector<2x512xbf16>
    %cst_99 = arith.constant dense<0.000000e+00> : vector<2x32xf32>
    %115 = tpu.matmul %114, %1, %cst_99 {dimension_numbers = #tpu.dot_dimension_numbers<[1], [0], [0], [1], [0, 0, 1, 1], [], []>} : vector<2x512xbf16>, vector<512x32xbf16>, vector<2x32xf32> -> vector<2x32xf32>
    %116 = vector.broadcast %3 : vector<1x32xf32> to vector<2x32xf32>
    %117 = arith.addf %115, %116 : vector<2x32xf32>
    %cst_100 = arith.constant 0.000000e+00 : f32
    %118 = vector.broadcast %cst_100 : f32 to vector<2x32xf32>
    %119 = arith.maximumf %117, %118 : vector<2x32xf32>
    %120 = arith.truncf %119 : vector<2x32xf32> to vector<2x32xbf16>
    %c0_101 = arith.constant 0 : index
    %c9_102 = arith.constant 9 : index
    %c0_103 = arith.constant 0 : index
    %c0_104 = arith.constant 0 : index
    %121 = vector.load %arg4[%c0_101, %c9_102, %c0_103, %c0_104] : memref<1x16x32x512xbf16, #tpu.memory_space<vmem>>, vector<1x1x32x512xbf16>
    %122 = vector.shape_cast %121 : vector<1x1x32x512xbf16> to vector<32x512xbf16>
    %cst_105 = arith.constant dense<0.000000e+00> : vector<2x512xf32>
    %123 = tpu.matmul %120, %122, %cst_105 {dimension_numbers = #tpu.dot_dimension_numbers<[1], [0], [0], [1], [0, 0, 1, 1], [], []>} : vector<2x32xbf16>, vector<32x512xbf16>, vector<2x512xf32> -> vector<2x512xf32>
    %124 = arith.addf %112, %123 : vector<2x512xf32>
    %c0_106 = arith.constant 0 : index
    %c10 = arith.constant 10 : index
    %c0_107 = arith.constant 0 : index
    %c0_108 = arith.constant 0 : index
    %125 = vector.load %arg1[%c0_106, %c10, %c0_107, %c0_108] : memref<1x16x2x512xbf16, #tpu.memory_space<vmem>>, vector<1x1x2x512xbf16>
    %126 = vector.shape_cast %125 : vector<1x1x2x512xbf16> to vector<2x512xbf16>
    %cst_109 = arith.constant dense<0.000000e+00> : vector<2x32xf32>
    %127 = tpu.matmul %126, %1, %cst_109 {dimension_numbers = #tpu.dot_dimension_numbers<[1], [0], [0], [1], [0, 0, 1, 1], [], []>} : vector<2x512xbf16>, vector<512x32xbf16>, vector<2x32xf32> -> vector<2x32xf32>
    %128 = vector.broadcast %3 : vector<1x32xf32> to vector<2x32xf32>
    %129 = arith.addf %127, %128 : vector<2x32xf32>
    %cst_110 = arith.constant 0.000000e+00 : f32
    %130 = vector.broadcast %cst_110 : f32 to vector<2x32xf32>
    %131 = arith.maximumf %129, %130 : vector<2x32xf32>
    %132 = arith.truncf %131 : vector<2x32xf32> to vector<2x32xbf16>
    %c0_111 = arith.constant 0 : index
    %c10_112 = arith.constant 10 : index
    %c0_113 = arith.constant 0 : index
    %c0_114 = arith.constant 0 : index
    %133 = vector.load %arg4[%c0_111, %c10_112, %c0_113, %c0_114] : memref<1x16x32x512xbf16, #tpu.memory_space<vmem>>, vector<1x1x32x512xbf16>
    %134 = vector.shape_cast %133 : vector<1x1x32x512xbf16> to vector<32x512xbf16>
    %cst_115 = arith.constant dense<0.000000e+00> : vector<2x512xf32>
    %135 = tpu.matmul %132, %134, %cst_115 {dimension_numbers = #tpu.dot_dimension_numbers<[1], [0], [0], [1], [0, 0, 1, 1], [], []>} : vector<2x32xbf16>, vector<32x512xbf16>, vector<2x512xf32> -> vector<2x512xf32>
    %136 = arith.addf %124, %135 : vector<2x512xf32>
    %c0_116 = arith.constant 0 : index
    %c11 = arith.constant 11 : index
    %c0_117 = arith.constant 0 : index
    %c0_118 = arith.constant 0 : index
    %137 = vector.load %arg1[%c0_116, %c11, %c0_117, %c0_118] : memref<1x16x2x512xbf16, #tpu.memory_space<vmem>>, vector<1x1x2x512xbf16>
    %138 = vector.shape_cast %137 : vector<1x1x2x512xbf16> to vector<2x512xbf16>
    %cst_119 = arith.constant dense<0.000000e+00> : vector<2x32xf32>
    %139 = tpu.matmul %138, %1, %cst_119 {dimension_numbers = #tpu.dot_dimension_numbers<[1], [0], [0], [1], [0, 0, 1, 1], [], []>} : vector<2x512xbf16>, vector<512x32xbf16>, vector<2x32xf32> -> vector<2x32xf32>
    %140 = vector.broadcast %3 : vector<1x32xf32> to vector<2x32xf32>
    %141 = arith.addf %139, %140 : vector<2x32xf32>
    %cst_120 = arith.constant 0.000000e+00 : f32
    %142 = vector.broadcast %cst_120 : f32 to vector<2x32xf32>
    %143 = arith.maximumf %141, %142 : vector<2x32xf32>
    %144 = arith.truncf %143 : vector<2x32xf32> to vector<2x32xbf16>
    %c0_121 = arith.constant 0 : index
    %c11_122 = arith.constant 11 : index
    %c0_123 = arith.constant 0 : index
    %c0_124 = arith.constant 0 : index
    %145 = vector.load %arg4[%c0_121, %c11_122, %c0_123, %c0_124] : memref<1x16x32x512xbf16, #tpu.memory_space<vmem>>, vector<1x1x32x512xbf16>
    %146 = vector.shape_cast %145 : vector<1x1x32x512xbf16> to vector<32x512xbf16>
    %cst_125 = arith.constant dense<0.000000e+00> : vector<2x512xf32>
    %147 = tpu.matmul %144, %146, %cst_125 {dimension_numbers = #tpu.dot_dimension_numbers<[1], [0], [0], [1], [0, 0, 1, 1], [], []>} : vector<2x32xbf16>, vector<32x512xbf16>, vector<2x512xf32> -> vector<2x512xf32>
    %148 = arith.addf %136, %147 : vector<2x512xf32>
    %c0_126 = arith.constant 0 : index
    %c12 = arith.constant 12 : index
    %c0_127 = arith.constant 0 : index
    %c0_128 = arith.constant 0 : index
    %149 = vector.load %arg1[%c0_126, %c12, %c0_127, %c0_128] : memref<1x16x2x512xbf16, #tpu.memory_space<vmem>>, vector<1x1x2x512xbf16>
    %150 = vector.shape_cast %149 : vector<1x1x2x512xbf16> to vector<2x512xbf16>
    %cst_129 = arith.constant dense<0.000000e+00> : vector<2x32xf32>
    %151 = tpu.matmul %150, %1, %cst_129 {dimension_numbers = #tpu.dot_dimension_numbers<[1], [0], [0], [1], [0, 0, 1, 1], [], []>} : vector<2x512xbf16>, vector<512x32xbf16>, vector<2x32xf32> -> vector<2x32xf32>
    %152 = vector.broadcast %3 : vector<1x32xf32> to vector<2x32xf32>
    %153 = arith.addf %151, %152 : vector<2x32xf32>
    %cst_130 = arith.constant 0.000000e+00 : f32
    %154 = vector.broadcast %cst_130 : f32 to vector<2x32xf32>
    %155 = arith.maximumf %153, %154 : vector<2x32xf32>
    %156 = arith.truncf %155 : vector<2x32xf32> to vector<2x32xbf16>
    %c0_131 = arith.constant 0 : index
    %c12_132 = arith.constant 12 : index
    %c0_133 = arith.constant 0 : index
    %c0_134 = arith.constant 0 : index
    %157 = vector.load %arg4[%c0_131, %c12_132, %c0_133, %c0_134] : memref<1x16x32x512xbf16, #tpu.memory_space<vmem>>, vector<1x1x32x512xbf16>
    %158 = vector.shape_cast %157 : vector<1x1x32x512xbf16> to vector<32x512xbf16>
    %cst_135 = arith.constant dense<0.000000e+00> : vector<2x512xf32>
    %159 = tpu.matmul %156, %158, %cst_135 {dimension_numbers = #tpu.dot_dimension_numbers<[1], [0], [0], [1], [0, 0, 1, 1], [], []>} : vector<2x32xbf16>, vector<32x512xbf16>, vector<2x512xf32> -> vector<2x512xf32>
    %160 = arith.addf %148, %159 : vector<2x512xf32>
    %c0_136 = arith.constant 0 : index
    %c13 = arith.constant 13 : index
    %c0_137 = arith.constant 0 : index
    %c0_138 = arith.constant 0 : index
    %161 = vector.load %arg1[%c0_136, %c13, %c0_137, %c0_138] : memref<1x16x2x512xbf16, #tpu.memory_space<vmem>>, vector<1x1x2x512xbf16>
    %162 = vector.shape_cast %161 : vector<1x1x2x512xbf16> to vector<2x512xbf16>
    %cst_139 = arith.constant dense<0.000000e+00> : vector<2x32xf32>
    %163 = tpu.matmul %162, %1, %cst_139 {dimension_numbers = #tpu.dot_dimension_numbers<[1], [0], [0], [1], [0, 0, 1, 1], [], []>} : vector<2x512xbf16>, vector<512x32xbf16>, vector<2x32xf32> -> vector<2x32xf32>
    %164 = vector.broadcast %3 : vector<1x32xf32> to vector<2x32xf32>
    %165 = arith.addf %163, %164 : vector<2x32xf32>
    %cst_140 = arith.constant 0.000000e+00 : f32
    %166 = vector.broadcast %cst_140 : f32 to vector<2x32xf32>
    %167 = arith.maximumf %165, %166 : vector<2x32xf32>
    %168 = arith.truncf %167 : vector<2x32xf32> to vector<2x32xbf16>
    %c0_141 = arith.constant 0 : index
    %c13_142 = arith.constant 13 : index
    %c0_143 = arith.constant 0 : index
    %c0_144 = arith.constant 0 : index
    %169 = vector.load %arg4[%c0_141, %c13_142, %c0_143, %c0_144] : memref<1x16x32x512xbf16, #tpu.memory_space<vmem>>, vector<1x1x32x512xbf16>
    %170 = vector.shape_cast %169 : vector<1x1x32x512xbf16> to vector<32x512xbf16>
    %cst_145 = arith.constant dense<0.000000e+00> : vector<2x512xf32>
    %171 = tpu.matmul %168, %170, %cst_145 {dimension_numbers = #tpu.dot_dimension_numbers<[1], [0], [0], [1], [0, 0, 1, 1], [], []>} : vector<2x32xbf16>, vector<32x512xbf16>, vector<2x512xf32> -> vector<2x512xf32>
    %172 = arith.addf %160, %171 : vector<2x512xf32>
    %c0_146 = arith.constant 0 : index
    %c14 = arith.constant 14 : index
    %c0_147 = arith.constant 0 : index
    %c0_148 = arith.constant 0 : index
    %173 = vector.load %arg1[%c0_146, %c14, %c0_147, %c0_148] : memref<1x16x2x512xbf16, #tpu.memory_space<vmem>>, vector<1x1x2x512xbf16>
    %174 = vector.shape_cast %173 : vector<1x1x2x512xbf16> to vector<2x512xbf16>
    %cst_149 = arith.constant dense<0.000000e+00> : vector<2x32xf32>
    %175 = tpu.matmul %174, %1, %cst_149 {dimension_numbers = #tpu.dot_dimension_numbers<[1], [0], [0], [1], [0, 0, 1, 1], [], []>} : vector<2x512xbf16>, vector<512x32xbf16>, vector<2x32xf32> -> vector<2x32xf32>
    %176 = vector.broadcast %3 : vector<1x32xf32> to vector<2x32xf32>
    %177 = arith.addf %175, %176 : vector<2x32xf32>
    %cst_150 = arith.constant 0.000000e+00 : f32
    %178 = vector.broadcast %cst_150 : f32 to vector<2x32xf32>
    %179 = arith.maximumf %177, %178 : vector<2x32xf32>
    %180 = arith.truncf %179 : vector<2x32xf32> to vector<2x32xbf16>
    %c0_151 = arith.constant 0 : index
    %c14_152 = arith.constant 14 : index
    %c0_153 = arith.constant 0 : index
    %c0_154 = arith.constant 0 : index
    %181 = vector.load %arg4[%c0_151, %c14_152, %c0_153, %c0_154] : memref<1x16x32x512xbf16, #tpu.memory_space<vmem>>, vector<1x1x32x512xbf16>
    %182 = vector.shape_cast %181 : vector<1x1x32x512xbf16> to vector<32x512xbf16>
    %cst_155 = arith.constant dense<0.000000e+00> : vector<2x512xf32>
    %183 = tpu.matmul %180, %182, %cst_155 {dimension_numbers = #tpu.dot_dimension_numbers<[1], [0], [0], [1], [0, 0, 1, 1], [], []>} : vector<2x32xbf16>, vector<32x512xbf16>, vector<2x512xf32> -> vector<2x512xf32>
    %184 = arith.addf %172, %183 : vector<2x512xf32>
    %c0_156 = arith.constant 0 : index
    %c15 = arith.constant 15 : index
    %c0_157 = arith.constant 0 : index
    %c0_158 = arith.constant 0 : index
    %185 = vector.load %arg1[%c0_156, %c15, %c0_157, %c0_158] : memref<1x16x2x512xbf16, #tpu.memory_space<vmem>>, vector<1x1x2x512xbf16>
    %186 = vector.shape_cast %185 : vector<1x1x2x512xbf16> to vector<2x512xbf16>
    %cst_159 = arith.constant dense<0.000000e+00> : vector<2x32xf32>
    %187 = tpu.matmul %186, %1, %cst_159 {dimension_numbers = #tpu.dot_dimension_numbers<[1], [0], [0], [1], [0, 0, 1, 1], [], []>} : vector<2x512xbf16>, vector<512x32xbf16>, vector<2x32xf32> -> vector<2x32xf32>
    %188 = vector.broadcast %3 : vector<1x32xf32> to vector<2x32xf32>
    %189 = arith.addf %187, %188 : vector<2x32xf32>
    %cst_160 = arith.constant 0.000000e+00 : f32
    %190 = vector.broadcast %cst_160 : f32 to vector<2x32xf32>
    %191 = arith.maximumf %189, %190 : vector<2x32xf32>
    %192 = arith.truncf %191 : vector<2x32xf32> to vector<2x32xbf16>
    %c0_161 = arith.constant 0 : index
    %c15_162 = arith.constant 15 : index
    %c0_163 = arith.constant 0 : index
    %c0_164 = arith.constant 0 : index
    %193 = vector.load %arg4[%c0_161, %c15_162, %c0_163, %c0_164] : memref<1x16x32x512xbf16, #tpu.memory_space<vmem>>, vector<1x1x32x512xbf16>
    %194 = vector.shape_cast %193 : vector<1x1x32x512xbf16> to vector<32x512xbf16>
    %cst_165 = arith.constant dense<0.000000e+00> : vector<2x512xf32>
    %195 = tpu.matmul %192, %194, %cst_165 {dimension_numbers = #tpu.dot_dimension_numbers<[1], [0], [0], [1], [0, 0, 1, 1], [], []>} : vector<2x32xbf16>, vector<32x512xbf16>, vector<2x512xf32> -> vector<2x512xf32>
    %196 = arith.addf %184, %195 : vector<2x512xf32>
    %c0_166 = arith.constant 0 : index
    %c0_167 = arith.constant 0 : index
    %c0_168 = arith.constant 0 : index
    %197 = vector.load %arg5[%c0_166, %c0_167, %c0_168] : memref<1x1x512xf32, #tpu.memory_space<vmem>>, vector<1x1x512xf32>
    %198 = vector.shape_cast %197 : vector<1x1x512xf32> to vector<1x512xf32>
    %199 = vector.broadcast %198 : vector<1x512xf32> to vector<2x512xf32>
    %200 = arith.addf %196, %199 : vector<2x512xf32>
    %cst_169 = arith.constant 0.000000e+00 : f32
    %201 = vector.broadcast %cst_169 : f32 to vector<2x512xf32>
    %202 = arith.maximumf %200, %201 : vector<2x512xf32>
    %203 = arith.truncf %202 : vector<2x512xf32> to vector<2x512xbf16>
    %c0_170 = arith.constant 0 : index
    %c0_171 = arith.constant 0 : index
    %c0_172 = arith.constant 0 : index
    %204 = vector.load %arg6[%c0_170, %c0_171, %c0_172] : memref<1x512x10xbf16, #tpu.memory_space<vmem>>, vector<1x512x10xbf16>
    %205 = vector.shape_cast %204 : vector<1x512x10xbf16> to vector<512x10xbf16>
    %cst_173 = arith.constant dense<0.000000e+00> : vector<2x10xf32>
    %206 = tpu.matmul %203, %205, %cst_173 {dimension_numbers = #tpu.dot_dimension_numbers<[1], [0], [0], [1], [0, 0, 1, 1], [], []>} : vector<2x512xbf16>, vector<512x10xbf16>, vector<2x10xf32> -> vector<2x10xf32>
    %c0_174 = arith.constant 0 : index
    %c0_175 = arith.constant 0 : index
    %c0_176 = arith.constant 0 : index
    %207 = vector.load %arg7[%c0_174, %c0_175, %c0_176] : memref<1x1x10xf32, #tpu.memory_space<vmem>>, vector<1x1x10xf32>
    %208 = vector.shape_cast %207 : vector<1x1x10xf32> to vector<1x10xf32>
    %209 = vector.broadcast %208 : vector<1x10xf32> to vector<2x10xf32>
    %210 = arith.addf %206, %209 : vector<2x10xf32>
    %c0_177 = arith.constant 0 : index
    %c0_178 = arith.constant 0 : index
    %c0_179 = arith.constant 0 : index
    %211 = vector.load %arg8[%c0_177, %c0_178, %c0_179] : memref<1x2x10xf32, #tpu.memory_space<vmem>>, vector<1x2x10xf32>
    %212 = vector.shape_cast %211 : vector<1x2x10xf32> to vector<2x10xf32>
    %213 = vector.shape_cast %210 : vector<2x10xf32> to vector<1x2x10xf32>
    tpu.vector_store %arg8[%c0_177, %c0_178, %c0_179], %213 {strides = array<i32>} : memref<1x2x10xf32, #tpu.memory_space<vmem>>, vector<1x2x10xf32>,
    return
  }
  func.func @transform_0(%arg0: i32) -> (i32, i32, i32, i32) {
    %c0_i32 = arith.constant 0 : i32
    %c0_i32_0 = arith.constant 0 : i32
    %c0_i32_1 = arith.constant 0 : i32
    %c0_i32_2 = arith.constant 0 : i32
    return %arg0, %c0_i32, %c0_i32_0, %c0_i32_1 : i32, i32, i32, i32
  }
  func.func @transform_1(%arg0: i32) -> (i32, i32, i32) {
    %c0_i32 = arith.constant 0 : i32
    %c0_i32_0 = arith.constant 0 : i32
    %c0_i32_1 = arith.constant 0 : i32
    return %arg0, %c0_i32, %c0_i32_0 : i32, i32, i32
  }
  func.func @transform_2(%arg0: i32) -> (i32, i32, i32) {
    %c0_i32 = arith.constant 0 : i32
    %c0_i32_0 = arith.constant 0 : i32
    %c0_i32_1 = arith.constant 0 : i32
    return %arg0, %c0_i32, %c0_i32_0 : i32, i32, i32
  }
  func.func @transform_3(%arg0: i32) -> (i32, i32, i32, i32) {
    %c0_i32 = arith.constant 0 : i32
    %c0_i32_0 = arith.constant 0 : i32
    %c0_i32_1 = arith.constant 0 : i32
    %c0_i32_2 = arith.constant 0 : i32
    return %arg0, %c0_i32, %c0_i32_0, %c0_i32_1 : i32, i32, i32, i32
  }
  func.func @transform_4(%arg0: i32) -> (i32, i32, i32) {
    %c0_i32 = arith.constant 0 : i32
    %c0_i32_0 = arith.constant 0 : i32
    %c0_i32_1 = arith.constant 0 : i32
    return %arg0, %c0_i32, %c0_i32_0 : i32, i32, i32
  }
  func.func @transform_5(%arg0: i32) -> (i32, i32, i32) {
    %c0_i32 = arith.constant 0 : i32
    %c0_i32_0 = arith.constant 0 : i32
    %c0_i32_1 = arith.constant 0 : i32
    return %arg0, %c0_i32, %c0_i32_0 : i32, i32, i32
  }
  func.func @transform_6(%arg0: i32) -> (i32, i32, i32) {
    %c0_i32 = arith.constant 0 : i32
    %c0_i32_0 = arith.constant 0 : i32
    %c0_i32_1 = arith.constant 0 : i32
    return %arg0, %c0_i32, %c0_i32_0 : i32, i32, i32
  }
  func.func @transform_7(%arg0: i32) -> (i32, i32, i32) {
    %c0_i32 = arith.constant 0 : i32
    %c0_i32_0 = arith.constant 0 : i32
    %c0_i32_1 = arith.constant 0 : i32
    return %arg0, %c0_i32, %c0_i32_0 : i32, i32, i32
  }
}

</mosaic_0001>

<bundles_post_ra>
// kernel: gp_model_forward.3
= control target key start
LH: loop header
LB: loop body
LE: loop exit
PB: predicated region body
PF: predicated region fallthrough
CT: control target
= control target key end

     0   :  { %vm267_vm0 = vcmask 392192   ;;  %vm661_vm1 = vcmask 257024   ;;  %s1429_s1 = inlined_call_operand.vmem [shape: bf16[48,32], index: 1, kind: input, shape index: {}]   ;;  %s1430_s2 = inlined_call_operand.vmem [shape: f32[1,32], index: 2, kind: input, shape index: {}]   ;;  %s1431_s0 = inlined_call_operand.vmem [shape: bf16[512,48], index: 0, kind: input, shape index: {}]   ;;  %s1432_s3 = inlined_call_operand.vmem [shape: bf16[512,32], index: 3, kind: output, shape index: {}]  }
   0x1   :  { %v936_v0 = vld [vmem:[%s1429_s1 + $0x10] sm:$0xff]  ;;  %v935_v1 = vld [vmem:[%s1429_s1 + $0x8] sm:$0xff]  ;;  %v934_v2 = vld [vmem:[%s1429_s1] sm:$0xff] }
   0x2   :  { %369 = vmatpush.bf16.msra.mxu0 %v936_v0  ;;  %937 = vmatpush.bf16.msra.mxu1 %v936_v0  ;;  %v902_v3 = vld [vmem:[%s1431_s0] sm:$0xff]  ;;  %v903_v7 = vld [vmem:[%s1431_s0 + $0x8] sm:$0xff]  ;;  %v904_v11 = vld [vmem:[%s1431_s0 + $0x10] sm:$0xff] }
   0x3   :  { %938 = vmatpush.bf16.msra.mxu2 %v936_v0  ;;  %939 = vmatpush.bf16.msra.mxu3 %v936_v0  ;;  %v910_v4 = vld [vmem:[%s1431_s0 + $0x40] sm:$0xff]  ;;  %v911_v8 = vld [vmem:[%s1431_s0 + $0x48] sm:$0xff]  ;;  %v912_v12 = vld [vmem:[%s1431_s0 + $0x50] sm:$0xff] }
   0x4   :  { %v918_v5 = vld [vmem:[%s1431_s0 + $0x80] sm:$0xff]  ;;  %v919_v9 = vld [vmem:[%s1431_s0 + $0x88] sm:$0xff]  ;;  %v920_v13 = vld [vmem:[%s1431_s0 + $0x90] sm:$0xff] }
   0x5   :  { %v926_v6 = vld [vmem:[%s1431_s0 + $0xc0] sm:$0xff]  ;;  %v927_v10 = vld [vmem:[%s1431_s0 + $0xc8] sm:$0xff]  ;;  %v928_v14 = vld [vmem:[%s1431_s0 + $0xd0] sm:$0xff] }
   0x6   :  { %370 = vmatpush.bf16.msra.mxu0 %v935_v1  ;;  %940 = vmatpush.bf16.msra.mxu1 %v935_v1  ;;  %v905_v15 = vld [vmem:[%s1431_s0 + $0x18] sm:$0xff]  ;;  %v906_v19 = vld [vmem:[%s1431_s0 + $0x20] sm:$0xff]  ;;  %v907_v23 = vld [vmem:[%s1431_s0 + $0x28] sm:$0xff] }
   0x7   :  { %941 = vmatpush.bf16.msra.mxu2 %v935_v1  ;;  %942 = vmatpush.bf16.msra.mxu3 %v935_v1  ;;  %v913_v16 = vld [vmem:[%s1431_s0 + $0x58] sm:$0xff]  ;;  %v914_v20 = vld [vmem:[%s1431_s0 + $0x60] sm:$0xff]  ;;  %v915_v24 = vld [vmem:[%s1431_s0 + $0x68] sm:$0xff] }
   0x8   :  { %v921_v17 = vld [vmem:[%s1431_s0 + $0x98] sm:$0xff]  ;;  %v922_v21 = vld [vmem:[%s1431_s0 + $0xa0] sm:$0xff]  ;;  %v923_v25 = vld [vmem:[%s1431_s0 + $0xa8] sm:$0xff] }
   0x9   :  { %v929_v18 = vld [vmem:[%s1431_s0 + $0xd8] sm:$0xff]  ;;  %v930_v22 = vld [vmem:[%s1431_s0 + $0xe0] sm:$0xff]  ;;  %v931_v26 = vld [vmem:[%s1431_s0 + $0xe8] sm:$0xff] }
   0xa   :  { %371 = vmatpush.bf16.msra.mxu0 %v934_v2  ;;  %943 = vmatpush.bf16.msra.mxu1 %v934_v2  ;;  %v908_v27 = vld [vmem:[%s1431_s0 + $0x30] sm:$0xff]  ;;  %v909_v31 = vld [vmem:[%s1431_s0 + $0x38] sm:$0xff]  ;;  %v1107_v35 = vld [vmem:[%s1430_s2] ss:$0 sm:$0xff] }
   0xb   :  { %944 = vmatpush.bf16.msra.mxu2 %v934_v2  ;;  %945 = vmatpush.bf16.msra.mxu3 %v934_v2  ;;  %v916_v28 = vld [vmem:[%s1431_s0 + $0x70] sm:$0xff]  ;;  %v917_v32 = vld [vmem:[%s1431_s0 + $0x78] sm:$0xff] }
   0xc   :  { %v924_v29 = vld [vmem:[%s1431_s0 + $0xb0] sm:$0xff]  ;;  %v925_v33 = vld [vmem:[%s1431_s0 + $0xb8] sm:$0xff] }
   0xd   :  { %870 = vmatmul.msk.bf16.vlgmr.msra.gmra.mxu0 %vm267_vm0, %v902_v3  ;;  %878 = vmatmul.msk.bf16.vlgmr.msra.gmra.mxu1 %vm267_vm0, %v910_v4  ;;  %v932_v30 = vld [vmem:[%s1431_s0 + $0xf0] sm:$0xff]  ;;  %v933_v34 = vld [vmem:[%s1431_s0 + $0xf8] sm:$0xff] }
   0xe   :  { %886 = vmatmul.msk.bf16.vlgmr.msra.gmra.mxu2 %vm267_vm0, %v918_v5  ;;  %894 = vmatmul.msk.bf16.vlgmr.msra.gmra.mxu3 %vm267_vm0, %v926_v6 }
  0x1d   :  { %871 = vmatmul.msk.bf16.gmra.mxu0 %vm267_vm0, %v903_v7  ;;  %879 = vmatmul.msk.bf16.gmra.mxu1 %vm267_vm0, %v911_v8 }
  0x1e   :  { %887 = vmatmul.msk.bf16.gmra.mxu2 %vm267_vm0, %v919_v9  ;;  %895 = vmatmul.msk.bf16.gmra.mxu3 %vm267_vm0, %v927_v10 }
  0x2d   :  { %872 = vmatmul.msk.bf16.gmra.mxu0 %vm267_vm0, %v904_v11  ;;  %880 = vmatmul.msk.bf16.gmra.mxu1 %vm267_vm0, %v912_v12 }
  0x2e   :  { %888 = vmatmul.msk.bf16.gmra.mxu2 %vm267_vm0, %v920_v13  ;;  %896 = vmatmul.msk.bf16.gmra.mxu3 %vm267_vm0, %v928_v14 }
  0x3d   :  { %873 = vmatmul.msk.bf16.gmra.mxu0 %vm267_vm0, %v905_v15  ;;  %881 = vmatmul.msk.bf16.gmra.mxu1 %vm267_vm0, %v913_v16 }
  0x3e   :  { %889 = vmatmul.msk.bf16.gmra.mxu2 %vm267_vm0, %v921_v17  ;;  %897 = vmatmul.msk.bf16.gmra.mxu3 %vm267_vm0, %v929_v18 }
  0x4d   :  { %874 = vmatmul.msk.bf16.gmra.mxu0 %vm267_vm0, %v906_v19  ;;  %882 = vmatmul.msk.bf16.gmra.mxu1 %vm267_vm0, %v914_v20 }
  0x4e   :  { %890 = vmatmul.msk.bf16.gmra.mxu2 %vm267_vm0, %v922_v21  ;;  %898 = vmatmul.msk.bf16.gmra.mxu3 %vm267_vm0, %v930_v22 }
  0x5d   :  { %875 = vmatmul.msk.bf16.gmra.mxu0 %vm267_vm0, %v907_v23  ;;  %883 = vmatmul.msk.bf16.gmra.mxu1 %vm267_vm0, %v915_v24 }
  0x5e   :  { %891 = vmatmul.msk.bf16.gmra.mxu2 %vm267_vm0, %v923_v25  ;;  %899 = vmatmul.msk.bf16.gmra.mxu3 %vm267_vm0, %v931_v26 }
  0x6d   :  { %876 = vmatmul.msk.bf16.gmra.mxu0 %vm267_vm0, %v908_v27  ;;  %884 = vmatmul.msk.bf16.gmra.mxu1 %vm267_vm0, %v916_v28 }
  0x6e   :  { %892 = vmatmul.msk.bf16.gmra.mxu2 %vm267_vm0, %v924_v29  ;;  %900 = vmatmul.msk.bf16.gmra.mxu3 %vm267_vm0, %v932_v30 }
  0x7d   :  { %877 = vmatmul.msk.bf16.gmra.mxu0 %vm267_vm0, %v909_v31  ;;  %885 = vmatmul.msk.bf16.gmra.mxu1 %vm267_vm0, %v917_v32 }
  0x7e   :  { %893 = vmatmul.msk.bf16.gmra.mxu2 %vm267_vm0, %v925_v33  ;;  %901 = vmatmul.msk.bf16.gmra.mxu3 %vm267_vm0, %v933_v34 }
  0x8a   :  { %v373_v36 = vpop.f32.mrf.mxu0  ;;  %v413_v37 = vpop.f32.mrf.mxu1 }
  0x8b   :  { %v374_v38 = vadd.f32 %v1107_v35, %v373_v36  ;;  %v414_v39 = vadd.f32 %v1107_v35, %v413_v37 }
  0x8d   :  { %v533_v40 = vmax.f32 %v374_v38, 0.0  ;;  %v549_v41 = vmax.f32 %v414_v39, 0.0 }
  0x8f   :  { %v597_v42 = vpack.c.bf16 %v533_v40, %v533_v40  ;;  %v613_v43 = vpack.c.bf16 %v549_v41, %v549_v41 }
  0x91   :  { %662 = vst.msk [vmem:[%s1432_s3] sm:$0xf] %vm661_vm1, %v597_v42  ;;  %v453_v44 = vpop.f32.mrf.mxu2  ;;  %v493_v45 = vpop.f32.mrf.mxu3 }
  0x92   :  { %678 = vst.msk [vmem:[%s1432_s3 + $0x40] sm:$0xf] %vm661_vm1, %v613_v43  ;;  %v454_v46 = vadd.f32 %v1107_v35, %v453_v44  ;;  %v494_v47 = vadd.f32 %v1107_v35, %v493_v45  ;;  %v375_v48 = vpop.f32.mrf.mxu0  ;;  %v415_v49 = vpop.f32.mrf.mxu1 }
  0x93   :  { %v376_v50 = vadd.f32 %v1107_v35, %v375_v48  ;;  %v416_v51 = vadd.f32 %v1107_v35, %v415_v49 }
  0x94   :  { %v565_v52 = vmax.f32 %v454_v46, 0.0  ;;  %v581_v53 = vmax.f32 %v494_v47, 0.0 }
  0x95   :  { %v534_v54 = vmax.f32 %v376_v50, 0.0  ;;  %v550_v55 = vmax.f32 %v416_v51, 0.0 }
  0x96   :  { %v629_v56 = vpack.c.bf16 %v565_v52, %v565_v52  ;;  %v645_v57 = vpack.c.bf16 %v581_v53, %v581_v53 }
  0x97   :  { %v598_v58 = vpack.c.bf16 %v534_v54, %v534_v54  ;;  %v614_v59 = vpack.c.bf16 %v550_v55, %v550_v55 }
  0x98   :  { %694 = vst.msk [vmem:[%s1432_s3 + $0x80] sm:$0xf] %vm661_vm1, %v629_v56 }
  0x99   :  { %710 = vst.msk [vmem:[%s1432_s3 + $0xc0] sm:$0xf] %vm661_vm1, %v645_v57  ;;  %v455_v60 = vpop.f32.mrf.mxu2  ;;  %v495_v61 = vpop.f32.mrf.mxu3 }
  0x9a   :  { %663 = vst.msk [vmem:[%s1432_s3 + $0x4] sm:$0xf] %vm661_vm1, %v598_v58  ;;  %v456_v62 = vadd.f32 %v1107_v35, %v455_v60  ;;  %v496_v63 = vadd.f32 %v1107_v35, %v495_v61  ;;  %v378_v0 = vpop.f32.mrf.mxu0  ;;  %v418_v1 = vpop.f32.mrf.mxu1 }
  0x9b   :  { %679 = vst.msk [vmem:[%s1432_s3 + $0x44] sm:$0xf] %vm661_vm1, %v614_v59  ;;  %v379_v2 = vadd.f32 %v1107_v35, %v378_v0  ;;  %v419_v3 = vadd.f32 %v1107_v35, %v418_v1 }
  0x9c   :  { %v566_v4 = vmax.f32 %v456_v62, 0.0  ;;  %v582_v5 = vmax.f32 %v496_v63, 0.0 }
  0x9d   :  { %v535_v6 = vmax.f32 %v379_v2, 0.0  ;;  %v551_v7 = vmax.f32 %v419_v3, 0.0 }
  0x9e   :  { %v630_v8 = vpack.c.bf16 %v566_v4, %v566_v4  ;;  %v646_v9 = vpack.c.bf16 %v582_v5, %v582_v5 }
  0x9f   :  { %v599_v10 = vpack.c.bf16 %v535_v6, %v535_v6  ;;  %v615_v11 = vpack.c.bf16 %v551_v7, %v551_v7 }
  0xa0   :  { %695 = vst.msk [vmem:[%s1432_s3 + $0x84] sm:$0xf] %vm661_vm1, %v630_v8 }
  0xa1   :  { %711 = vst.msk [vmem:[%s1432_s3 + $0xc4] sm:$0xf] %vm661_vm1, %v646_v9  ;;  %v458_v12 = vpop.f32.mrf.mxu2  ;;  %v498_v13 = vpop.f32.mrf.mxu3 }
  0xa2   :  { %664 = vst.msk [vmem:[%s1432_s3 + $0x8] sm:$0xf] %vm661_vm1, %v599_v10  ;;  %v459_v14 = vadd.f32 %v1107_v35, %v458_v12  ;;  %v499_v15 = vadd.f32 %v1107_v35, %v498_v13  ;;  %v380_v16 = vpop.f32.mrf.mxu0  ;;  %v420_v17 = vpop.f32.mrf.mxu1 }
  0xa3   :  { %680 = vst.msk [vmem:[%s1432_s3 + $0x48] sm:$0xf] %vm661_vm1, %v615_v11  ;;  %v381_v18 = vadd.f32 %v1107_v35, %v380_v16  ;;  %v421_v19 = vadd.f32 %v1107_v35, %v420_v17 }
  0xa4   :  { %v567_v20 = vmax.f32 %v459_v14, 0.0  ;;  %v583_v21 = vmax.f32 %v499_v15, 0.0 }
  0xa5   :  { %v536_v22 = vmax.f32 %v381_v18, 0.0  ;;  %v552_v23 = vmax.f32 %v421_v19, 0.0 }
  0xa6   :  { %v631_v24 = vpack.c.bf16 %v567_v20, %v567_v20  ;;  %v647_v25 = vpack.c.bf16 %v583_v21, %v583_v21 }
  0xa7   :  { %v600_v26 = vpack.c.bf16 %v536_v22, %v536_v22  ;;  %v616_v27 = vpack.c.bf16 %v552_v23, %v552_v23 }
  0xa8   :  { %696 = vst.msk [vmem:[%s1432_s3 + $0x88] sm:$0xf] %vm661_vm1, %v631_v24 }
  0xa9   :  { %712 = vst.msk [vmem:[%s1432_s3 + $0xc8] sm:$0xf] %vm661_vm1, %v647_v25  ;;  %v460_v28 = vpop.f32.mrf.mxu2  ;;  %v500_v29 = vpop.f32.mrf.mxu3 }
  0xaa   :  { %665 = vst.msk [vmem:[%s1432_s3 + $0xc] sm:$0xf] %vm661_vm1, %v600_v26  ;;  %v461_v30 = vadd.f32 %v1107_v35, %v460_v28  ;;  %v501_v31 = vadd.f32 %v1107_v35, %v500_v29  ;;  %v383_v32 = vpop.f32.mrf.mxu0  ;;  %v423_v33 = vpop.f32.mrf.mxu1 }
  0xab   :  { %681 = vst.msk [vmem:[%s1432_s3 + $0x4c] sm:$0xf] %vm661_vm1, %v616_v27  ;;  %v384_v34 = vadd.f32 %v1107_v35, %v383_v32  ;;  %v424_v36 = vadd.f32 %v1107_v35, %v423_v33 }
  0xac   :  { %v568_v37 = vmax.f32 %v461_v30, 0.0  ;;  %v584_v38 = vmax.f32 %v501_v31, 0.0 }
  0xad   :  { %v537_v39 = vmax.f32 %v384_v34, 0.0  ;;  %v553_v40 = vmax.f32 %v424_v36, 0.0 }
  0xae   :  { %v632_v41 = vpack.c.bf16 %v568_v37, %v568_v37  ;;  %v648_v42 = vpack.c.bf16 %v584_v38, %v584_v38 }
  0xaf   :  { %v601_v43 = vpack.c.bf16 %v537_v39, %v537_v39  ;;  %v617_v44 = vpack.c.bf16 %v553_v40, %v553_v40 }
  0xb0   :  { %697 = vst.msk [vmem:[%s1432_s3 + $0x8c] sm:$0xf] %vm661_vm1, %v632_v41 }
  0xb1   :  { %713 = vst.msk [vmem:[%s1432_s3 + $0xcc] sm:$0xf] %vm661_vm1, %v648_v42  ;;  %v463_v45 = vpop.f32.mrf.mxu2  ;;  %v503_v46 = vpop.f32.mrf.mxu3 }
  0xb2   :  { %666 = vst.msk [vmem:[%s1432_s3 + $0x10] sm:$0xf] %vm661_vm1, %v601_v43  ;;  %v464_v47 = vadd.f32 %v1107_v35, %v463_v45  ;;  %v504_v48 = vadd.f32 %v1107_v35, %v503_v46  ;;  %v385_v49 = vpop.f32.mrf.mxu0  ;;  %v425_v50 = vpop.f32.mrf.mxu1 }
  0xb3   :  { %682 = vst.msk [vmem:[%s1432_s3 + $0x50] sm:$0xf] %vm661_vm1, %v617_v44  ;;  %v386_v51 = vadd.f32 %v1107_v35, %v385_v49  ;;  %v426_v52 = vadd.f32 %v1107_v35, %v425_v50 }
  0xb4   :  { %v569_v53 = vmax.f32 %v464_v47, 0.0  ;;  %v585_v54 = vmax.f32 %v504_v48, 0.0 }
  0xb5   :  { %v538_v55 = vmax.f32 %v386_v51, 0.0  ;;  %v554_v56 = vmax.f32 %v426_v52, 0.0 }
  0xb6   :  { %v633_v57 = vpack.c.bf16 %v569_v53, %v569_v53  ;;  %v649_v58 = vpack.c.bf16 %v585_v54, %v585_v54 }
  0xb7   :  { %v602_v59 = vpack.c.bf16 %v538_v55, %v538_v55  ;;  %v618_v60 = vpack.c.bf16 %v554_v56, %v554_v56 }
  0xb8   :  { %698 = vst.msk [vmem:[%s1432_s3 + $0x90] sm:$0xf] %vm661_vm1, %v633_v57 }
  0xb9   :  { %714 = vst.msk [vmem:[%s1432_s3 + $0xd0] sm:$0xf] %vm661_vm1, %v649_v58  ;;  %v465_v61 = vpop.f32.mrf.mxu2  ;;  %v505_v62 = vpop.f32.mrf.mxu3 }
  0xba   :  { %667 = vst.msk [vmem:[%s1432_s3 + $0x14] sm:$0xf] %vm661_vm1, %v602_v59  ;;  %v466_v63 = vadd.f32 %v1107_v35, %v465_v61  ;;  %v506_v0 = vadd.f32 %v1107_v35, %v505_v62  ;;  %v388_v1 = vpop.f32.mrf.mxu0  ;;  %v428_v2 = vpop.f32.mrf.mxu1 }
  0xbb   :  { %683 = vst.msk [vmem:[%s1432_s3 + $0x54] sm:$0xf] %vm661_vm1, %v618_v60  ;;  %v389_v3 = vadd.f32 %v1107_v35, %v388_v1  ;;  %v429_v4 = vadd.f32 %v1107_v35, %v428_v2 }
  0xbc   :  { %v570_v5 = vmax.f32 %v466_v63, 0.0  ;;  %v586_v6 = vmax.f32 %v506_v0, 0.0 }
  0xbd   :  { %v539_v7 = vmax.f32 %v389_v3, 0.0  ;;  %v555_v8 = vmax.f32 %v429_v4, 0.0 }
  0xbe   :  { %v634_v9 = vpack.c.bf16 %v570_v5, %v570_v5  ;;  %v650_v10 = vpack.c.bf16 %v586_v6, %v586_v6 }
  0xbf   :  { %v603_v11 = vpack.c.bf16 %v539_v7, %v539_v7  ;;  %v619_v12 = vpack.c.bf16 %v555_v8, %v555_v8 }
  0xc0   :  { %699 = vst.msk [vmem:[%s1432_s3 + $0x94] sm:$0xf] %vm661_vm1, %v634_v9 }
  0xc1   :  { %715 = vst.msk [vmem:[%s1432_s3 + $0xd4] sm:$0xf] %vm661_vm1, %v650_v10  ;;  %v468_v13 = vpop.f32.mrf.mxu2  ;;  %v508_v14 = vpop.f32.mrf.mxu3 }
  0xc2   :  { %668 = vst.msk [vmem:[%s1432_s3 + $0x18] sm:$0xf] %vm661_vm1, %v603_v11  ;;  %v469_v15 = vadd.f32 %v1107_v35, %v468_v13  ;;  %v509_v16 = vadd.f32 %v1107_v35, %v508_v14  ;;  %v390_v17 = vpop.f32.mrf.mxu0  ;;  %v430_v18 = vpop.f32.mrf.mxu1 }
  0xc3   :  { %684 = vst.msk [vmem:[%s1432_s3 + $0x58] sm:$0xf] %vm661_vm1, %v619_v12  ;;  %v391_v19 = vadd.f32 %v1107_v35, %v390_v17  ;;  %v431_v20 = vadd.f32 %v1107_v35, %v430_v18 }
  0xc4   :  { %v571_v21 = vmax.f32 %v469_v15, 0.0  ;;  %v587_v22 = vmax.f32 %v509_v16, 0.0 }
  0xc5   :  { %v540_v23 = vmax.f32 %v391_v19, 0.0  ;;  %v556_v24 = vmax.f32 %v431_v20, 0.0 }
  0xc6   :  { %v635_v25 = vpack.c.bf16 %v571_v21, %v571_v21  ;;  %v651_v26 = vpack.c.bf16 %v587_v22, %v587_v22 }
  0xc7   :  { %v604_v27 = vpack.c.bf16 %v540_v23, %v540_v23  ;;  %v620_v28 = vpack.c.bf16 %v556_v24, %v556_v24 }
  0xc8   :  { %700 = vst.msk [vmem:[%s1432_s3 + $0x98] sm:$0xf] %vm661_vm1, %v635_v25 }
  0xc9   :  { %716 = vst.msk [vmem:[%s1432_s3 + $0xd8] sm:$0xf] %vm661_vm1, %v651_v26  ;;  %v470_v29 = vpop.f32.mrf.mxu2  ;;  %v510_v30 = vpop.f32.mrf.mxu3 }
  0xca   :  { %669 = vst.msk [vmem:[%s1432_s3 + $0x1c] sm:$0xf] %vm661_vm1, %v604_v27  ;;  %v471_v31 = vadd.f32 %v1107_v35, %v470_v29  ;;  %v511_v32 = vadd.f32 %v1107_v35, %v510_v30  ;;  %v393_v33 = vpop.f32.mrf.mxu0  ;;  %v433_v34 = vpop.f32.mrf.mxu1 }
  0xcb   :  { %685 = vst.msk [vmem:[%s1432_s3 + $0x5c] sm:$0xf] %vm661_vm1, %v620_v28  ;;  %v394_v36 = vadd.f32 %v1107_v35, %v393_v33  ;;  %v434_v37 = vadd.f32 %v1107_v35, %v433_v34 }
  0xcc   :  { %v572_v38 = vmax.f32 %v471_v31, 0.0  ;;  %v588_v39 = vmax.f32 %v511_v32, 0.0 }
  0xcd   :  { %v541_v40 = vmax.f32 %v394_v36, 0.0  ;;  %v557_v41 = vmax.f32 %v434_v37, 0.0 }
  0xce   :  { %v636_v42 = vpack.c.bf16 %v572_v38, %v572_v38  ;;  %v652_v43 = vpack.c.bf16 %v588_v39, %v588_v39 }
  0xcf   :  { %v605_v44 = vpack.c.bf16 %v541_v40, %v541_v40  ;;  %v621_v45 = vpack.c.bf16 %v557_v41, %v557_v41 }
  0xd0   :  { %701 = vst.msk [vmem:[%s1432_s3 + $0x9c] sm:$0xf] %vm661_vm1, %v636_v42 }
  0xd1   :  { %717 = vst.msk [vmem:[%s1432_s3 + $0xdc] sm:$0xf] %vm661_vm1, %v652_v43  ;;  %v473_v46 = vpop.f32.mrf.mxu2  ;;  %v513_v47 = vpop.f32.mrf.mxu3 }
  0xd2   :  { %670 = vst.msk [vmem:[%s1432_s3 + $0x20] sm:$0xf] %vm661_vm1, %v605_v44  ;;  %v474_v48 = vadd.f32 %v1107_v35, %v473_v46  ;;  %v514_v49 = vadd.f32 %v1107_v35, %v513_v47  ;;  %v395_v50 = vpop.f32.mrf.mxu0  ;;  %v435_v51 = vpop.f32.mrf.mxu1 }
  0xd3   :  { %686 = vst.msk [vmem:[%s1432_s3 + $0x60] sm:$0xf] %vm661_vm1, %v621_v45  ;;  %v396_v52 = vadd.f32 %v1107_v35, %v395_v50  ;;  %v436_v53 = vadd.f32 %v1107_v35, %v435_v51 }
  0xd4   :  { %v573_v54 = vmax.f32 %v474_v48, 0.0  ;;  %v589_v55 = vmax.f32 %v514_v49, 0.0 }
  0xd5   :  { %v542_v56 = vmax.f32 %v396_v52, 0.0  ;;  %v558_v57 = vmax.f32 %v436_v53, 0.0 }
  0xd6   :  { %v637_v58 = vpack.c.bf16 %v573_v54, %v573_v54  ;;  %v653_v59 = vpack.c.bf16 %v589_v55, %v589_v55 }
  0xd7   :  { %v606_v60 = vpack.c.bf16 %v542_v56, %v542_v56  ;;  %v622_v61 = vpack.c.bf16 %v558_v57, %v558_v57 }
  0xd8   :  { %702 = vst.msk [vmem:[%s1432_s3 + $0xa0] sm:$0xf] %vm661_vm1, %v637_v58 }
  0xd9   :  { %718 = vst.msk [vmem:[%s1432_s3 + $0xe0] sm:$0xf] %vm661_vm1, %v653_v59  ;;  %v475_v62 = vpop.f32.mrf.mxu2  ;;  %v515_v63 = vpop.f32.mrf.mxu3 }
  0xda   :  { %671 = vst.msk [vmem:[%s1432_s3 + $0x24] sm:$0xf] %vm661_vm1, %v606_v60  ;;  %v476_v0 = vadd.f32 %v1107_v35, %v475_v62  ;;  %v516_v1 = vadd.f32 %v1107_v35, %v515_v63  ;;  %v398_v2 = vpop.f32.mrf.mxu0  ;;  %v438_v3 = vpop.f32.mrf.mxu1 }
  0xdb   :  { %687 = vst.msk [vmem:[%s1432_s3 + $0x64] sm:$0xf] %vm661_vm1, %v622_v61  ;;  %v399_v4 = vadd.f32 %v1107_v35, %v398_v2  ;;  %v439_v5 = vadd.f32 %v1107_v35, %v438_v3 }
  0xdc   :  { %v574_v6 = vmax.f32 %v476_v0, 0.0  ;;  %v590_v7 = vmax.f32 %v516_v1, 0.0 }
  0xdd   :  { %v543_v8 = vmax.f32 %v399_v4, 0.0  ;;  %v559_v9 = vmax.f32 %v439_v5, 0.0 }
  0xde   :  { %v638_v10 = vpack.c.bf16 %v574_v6, %v574_v6  ;;  %v654_v11 = vpack.c.bf16 %v590_v7, %v590_v7 }
  0xdf   :  { %v607_v12 = vpack.c.bf16 %v543_v8, %v543_v8  ;;  %v623_v13 = vpack.c.bf16 %v559_v9, %v559_v9 }
  0xe0   :  { %703 = vst.msk [vmem:[%s1432_s3 + $0xa4] sm:$0xf] %vm661_vm1, %v638_v10 }
  0xe1   :  { %719 = vst.msk [vmem:[%s1432_s3 + $0xe4] sm:$0xf] %vm661_vm1, %v654_v11  ;;  %v478_v14 = vpop.f32.mrf.mxu2  ;;  %v518_v15 = vpop.f32.mrf.mxu3 }
  0xe2   :  { %672 = vst.msk [vmem:[%s1432_s3 + $0x28] sm:$0xf] %vm661_vm1, %v607_v12  ;;  %v479_v16 = vadd.f32 %v1107_v35, %v478_v14  ;;  %v519_v17 = vadd.f32 %v1107_v35, %v518_v15  ;;  %v400_v18 = vpop.f32.mrf.mxu0  ;;  %v440_v19 = vpop.f32.mrf.mxu1 }
  0xe3   :  { %688 = vst.msk [vmem:[%s1432_s3 + $0x68] sm:$0xf] %vm661_vm1, %v623_v13  ;;  %v401_v20 = vadd.f32 %v1107_v35, %v400_v18  ;;  %v441_v21 = vadd.f32 %v1107_v35, %v440_v19 }
  0xe4   :  { %v575_v22 = vmax.f32 %v479_v16, 0.0  ;;  %v591_v23 = vmax.f32 %v519_v17, 0.0 }
  0xe5   :  { %v544_v24 = vmax.f32 %v401_v20, 0.0  ;;  %v560_v25 = vmax.f32 %v441_v21, 0.0 }
  0xe6   :  { %v639_v26 = vpack.c.bf16 %v575_v22, %v575_v22  ;;  %v655_v27 = vpack.c.bf16 %v591_v23, %v591_v23 }
  0xe7   :  { %v608_v28 = vpack.c.bf16 %v544_v24, %v544_v24  ;;  %v624_v29 = vpack.c.bf16 %v560_v25, %v560_v25 }
  0xe8   :  { %704 = vst.msk [vmem:[%s1432_s3 + $0xa8] sm:$0xf] %vm661_vm1, %v639_v26 }
  0xe9   :  { %720 = vst.msk [vmem:[%s1432_s3 + $0xe8] sm:$0xf] %vm661_vm1, %v655_v27  ;;  %v480_v30 = vpop.f32.mrf.mxu2  ;;  %v520_v31 = vpop.f32.mrf.mxu3 }
  0xea   :  { %673 = vst.msk [vmem:[%s1432_s3 + $0x2c] sm:$0xf] %vm661_vm1, %v608_v28  ;;  %v481_v32 = vadd.f32 %v1107_v35, %v480_v30  ;;  %v521_v33 = vadd.f32 %v1107_v35, %v520_v31  ;;  %v403_v34 = vpop.f32.mrf.mxu0  ;;  %v443_v36 = vpop.f32.mrf.mxu1 }
  0xeb   :  { %689 = vst.msk [vmem:[%s1432_s3 + $0x6c] sm:$0xf] %vm661_vm1, %v624_v29  ;;  %v404_v37 = vadd.f32 %v1107_v35, %v403_v34  ;;  %v444_v38 = vadd.f32 %v1107_v35, %v443_v36 }
  0xec   :  { %v576_v39 = vmax.f32 %v481_v32, 0.0  ;;  %v592_v40 = vmax.f32 %v521_v33, 0.0 }
  0xed   :  { %v545_v41 = vmax.f32 %v404_v37, 0.0  ;;  %v561_v42 = vmax.f32 %v444_v38, 0.0 }
  0xee   :  { %v640_v43 = vpack.c.bf16 %v576_v39, %v576_v39  ;;  %v656_v44 = vpack.c.bf16 %v592_v40, %v592_v40 }
  0xef   :  { %v609_v45 = vpack.c.bf16 %v545_v41, %v545_v41  ;;  %v625_v46 = vpack.c.bf16 %v561_v42, %v561_v42 }
  0xf0   :  { %705 = vst.msk [vmem:[%s1432_s3 + $0xac] sm:$0xf] %vm661_vm1, %v640_v43 }
  0xf1   :  { %721 = vst.msk [vmem:[%s1432_s3 + $0xec] sm:$0xf] %vm661_vm1, %v656_v44  ;;  %v483_v47 = vpop.f32.mrf.mxu2  ;;  %v523_v48 = vpop.f32.mrf.mxu3 }
  0xf2   :  { %674 = vst.msk [vmem:[%s1432_s3 + $0x30] sm:$0xf] %vm661_vm1, %v609_v45  ;;  %v484_v49 = vadd.f32 %v1107_v35, %v483_v47  ;;  %v524_v50 = vadd.f32 %v1107_v35, %v523_v48  ;;  %v405_v51 = vpop.f32.mrf.mxu0  ;;  %v445_v52 = vpop.f32.mrf.mxu1 }
  0xf3   :  { %690 = vst.msk [vmem:[%s1432_s3 + $0x70] sm:$0xf] %vm661_vm1, %v625_v46  ;;  %v406_v53 = vadd.f32 %v1107_v35, %v405_v51  ;;  %v446_v54 = vadd.f32 %v1107_v35, %v445_v52 }
  0xf4   :  { %v577_v55 = vmax.f32 %v484_v49, 0.0  ;;  %v593_v56 = vmax.f32 %v524_v50, 0.0 }
  0xf5   :  { %v546_v57 = vmax.f32 %v406_v53, 0.0  ;;  %v562_v58 = vmax.f32 %v446_v54, 0.0 }
  0xf6   :  { %v641_v59 = vpack.c.bf16 %v577_v55, %v577_v55  ;;  %v657_v60 = vpack.c.bf16 %v593_v56, %v593_v56 }
  0xf7   :  { %v610_v61 = vpack.c.bf16 %v546_v57, %v546_v57  ;;  %v626_v62 = vpack.c.bf16 %v562_v58, %v562_v58 }
  0xf8   :  { %706 = vst.msk [vmem:[%s1432_s3 + $0xb0] sm:$0xf] %vm661_vm1, %v641_v59 }
  0xf9   :  { %722 = vst.msk [vmem:[%s1432_s3 + $0xf0] sm:$0xf] %vm661_vm1, %v657_v60  ;;  %v485_v63 = vpop.f32.mrf.mxu2  ;;  %v525_v0 = vpop.f32.mrf.mxu3 }
  0xfa   :  { %675 = vst.msk [vmem:[%s1432_s3 + $0x34] sm:$0xf] %vm661_vm1, %v610_v61  ;;  %v486_v1 = vadd.f32 %v1107_v35, %v485_v63  ;;  %v526_v2 = vadd.f32 %v1107_v35, %v525_v0  ;;  %v408_v3 = vpop.f32.mrf.mxu0  ;;  %v448_v4 = vpop.f32.mrf.mxu1 }
  0xfb   :  { %691 = vst.msk [vmem:[%s1432_s3 + $0x74] sm:$0xf] %vm661_vm1, %v626_v62  ;;  %v409_v5 = vadd.f32 %v1107_v35, %v408_v3  ;;  %v449_v6 = vadd.f32 %v1107_v35, %v448_v4 }
  0xfc   :  { %v578_v7 = vmax.f32 %v486_v1, 0.0  ;;  %v594_v8 = vmax.f32 %v526_v2, 0.0 }
  0xfd   :  { %v547_v9 = vmax.f32 %v409_v5, 0.0  ;;  %v563_v10 = vmax.f32 %v449_v6, 0.0 }
  0xfe   :  { %v642_v11 = vpack.c.bf16 %v578_v7, %v578_v7  ;;  %v658_v12 = vpack.c.bf16 %v594_v8, %v594_v8 }
  0xff   :  { %v611_v13 = vpack.c.bf16 %v547_v9, %v547_v9  ;;  %v627_v14 = vpack.c.bf16 %v563_v10, %v563_v10 }
 0x100   :  { %707 = vst.msk [vmem:[%s1432_s3 + $0xb4] sm:$0xf] %vm661_vm1, %v642_v11 }
 0x101   :  { %723 = vst.msk [vmem:[%s1432_s3 + $0xf4] sm:$0xf] %vm661_vm1, %v658_v12  ;;  %v488_v15 = vpop.f32.mrf.mxu2  ;;  %v528_v16 = vpop.f32.mrf.mxu3 }
 0x102   :  { %676 = vst.msk [vmem:[%s1432_s3 + $0x38] sm:$0xf] %vm661_vm1, %v611_v13  ;;  %v489_v17 = vadd.f32 %v1107_v35, %v488_v15  ;;  %v529_v18 = vadd.f32 %v1107_v35, %v528_v16  ;;  %v410_v19 = vpop.f32.mrf.mxu0  ;;  %v450_v20 = vpop.f32.mrf.mxu1 }
 0x103   :  { %692 = vst.msk [vmem:[%s1432_s3 + $0x78] sm:$0xf] %vm661_vm1, %v627_v14  ;;  %v411_v21 = vadd.f32 %v1107_v35, %v410_v19  ;;  %v451_v22 = vadd.f32 %v1107_v35, %v450_v20 }
 0x104   :  { %v579_v23 = vmax.f32 %v489_v17, 0.0  ;;  %v595_v24 = vmax.f32 %v529_v18, 0.0 }
 0x105   :  { %v548_v25 = vmax.f32 %v411_v21, 0.0  ;;  %v564_v26 = vmax.f32 %v451_v22, 0.0 }
 0x106   :  { %v643_v27 = vpack.c.bf16 %v579_v23, %v579_v23  ;;  %v659_v28 = vpack.c.bf16 %v595_v24, %v595_v24 }
 0x107   :  { %v612_v29 = vpack.c.bf16 %v548_v25, %v548_v25  ;;  %v628_v30 = vpack.c.bf16 %v564_v26, %v564_v26 }
 0x108   :  { %708 = vst.msk [vmem:[%s1432_s3 + $0xb8] sm:$0xf] %vm661_vm1, %v643_v27 }
 0x109   :  { %724 = vst.msk [vmem:[%s1432_s3 + $0xf8] sm:$0xf] %vm661_vm1, %v659_v28  ;;  %v490_v31 = vpop.f32.mrf.mxu2  ;;  %v530_v32 = vpop.f32.mrf.mxu3 }
 0x10a   :  { %677 = vst.msk [vmem:[%s1432_s3 + $0x3c] sm:$0xf] %vm661_vm1, %v612_v29  ;;  %v491_v33 = vadd.f32 %v1107_v35, %v490_v31  ;;  %v531_v34 = vadd.f32 %v1107_v35, %v530_v32 }
 0x10b   :  { %693 = vst.msk [vmem:[%s1432_s3 + $0x7c] sm:$0xf] %vm661_vm1, %v628_v30 }
 0x10c   :  { %v580_v36 = vmax.f32 %v491_v33, 0.0  ;;  %v596_v37 = vmax.f32 %v531_v34, 0.0 }
 0x10e   :  { %v644_v38 = vpack.c.bf16 %v580_v36, %v580_v36  ;;  %v660_v39 = vpack.c.bf16 %v596_v37, %v596_v37 }
 0x110   :  { %709 = vst.msk [vmem:[%s1432_s3 + $0xbc] sm:$0xf] %vm661_vm1, %v644_v38 }
 0x111   :  { %725 = vst.msk [vmem:[%s1432_s3 + $0xfc] sm:$0xf] %vm661_vm1, %v660_v39 }

// kernel: gp_model_forward.4
= control target key start
LH: loop header
LB: loop body
LE: loop exit
PB: predicated region body
PF: predicated region fallthrough
CT: control target
= control target key end

     0   :  { %s885_s12 = smov 0   ;;  %s1026_s0 = inlined_call_operand.vmem [shape: bf16[2,128,256], index: 0, kind: input, shape index: {}]   ;;  %s1027_s1 = inlined_call_operand.vmem [shape: bf16[2,256,32], index: 1, kind: input, shape index: {}]   ;;  %s1028_s2 = inlined_call_operand.vmem [shape: f32[2,1,32], index: 2, kind: input, shape index: {}]   ;;  %s1029_s3 = inlined_call_operand.vmem [shape: bf16[2,128,32], index: 3, kind: output, shape index: {}]  }
   0x1 LB: > { %s656_s13 = sadd.s32 4294967295, %s863_s12   ;;  %p660_p0 = scmp.ge.s32.totalorder %s863_s12, 1  ;;  %s863_s12 = sphi %s885_s12, %s13_s12  }
   0x2   : > { %p155_p1 = scmp.lt.s32.totalorder %s863_s12, 3 }
   0x4   : > { %p156_p2 = pnand %p660_p0, %p155_p1 }
   0x5   : > { %p187_p3 = scmp.lt.s32.totalorder (!%p156_p2), %s656_s13, 1 }
   0x6   : > { %159 = sbr.rel (%p156_p2) target bundleno = 243 (0xf3), region = 32 }
   0xb   : > { %s1031_s13 = smov (!%p187_p3, %s656_s13), 1  ;;  %vm563_vm0 = vcmask 257024  }
   0xc   : > { %s797_s14 = sshll.u32 %s1031_s13, 7  ;;  %s199_s17 = scalar_lea.vmem %s1028_s2, %s1031_s13 }
   0xd   : > { %s905_s20 = scalar_lea.vmem %s1027_s1, %s797_s14  ;;  %s925_s23 = scalar_lea.vmem %s1026_s0, %s797_s14 }
   0xe   : > { %v823_v0 = vld [vmem:[%s905_s20 + $0x38] sm:$0xff]  ;;  %v822_v2 = vld [vmem:[%s905_s20 + $0x30] sm:$0xff]  ;;  %v821_v4 = vld [vmem:[%s905_s20 + $0x28] sm:$0xff]  ;;  %s799_s26 = sshll.u32 %s1031_s13, 6 }
   0xf   : > { %v831_v1 = vld [vmem:[%s905_s20 + $0x78] sm:$0xff]  ;;  %433 = vmatpush.bf16.msra.mxu0 %v823_v0  ;;  %832 = vmatpush.bf16.msra.mxu2 %v823_v0  ;;  %v830_v3 = vld [vmem:[%s905_s20 + $0x70] sm:$0xff]  ;;  %v829_v5 = vld [vmem:[%s905_s20 + $0x68] sm:$0xff]  ;;  %s974_s29 = scalar_lea.vmem %s1029_s3, %s799_s26 }
  0x10   : > { %482 = vmatpush.bf16.msra.mxu1 %v831_v1  ;;  %840 = vmatpush.bf16.msra.mxu3 %v831_v1  ;;  %v820_v6 = vld [vmem:[%s905_s20 + $0x20] sm:$0xff]  ;;  %v819_v8 = vld [vmem:[%s905_s20 + $0x18] sm:$0xff]  ;;  %v818_v10 = vld [vmem:[%s905_s20 + $0x10] sm:$0xff] }
  0x11   : > { %v828_v7 = vld [vmem:[%s905_s20 + $0x60] sm:$0xff]  ;;  %v827_v9 = vld [vmem:[%s905_s20 + $0x58] sm:$0xff]  ;;  %v826_v11 = vld [vmem:[%s905_s20 + $0x50] sm:$0xff] }
  0x12   : > { %v817_v12 = vld [vmem:[%s905_s20 + $0x8] sm:$0xff]  ;;  %v816_v14 = vld [vmem:[%s905_s20] sm:$0xff]  ;;  %v677_v28 = vld [vmem:[%s925_s23 + $0x10] sm:$0xf] }
  0x13   : > { %434 = vmatpush.bf16.msra.mxu0 %v822_v2  ;;  %833 = vmatpush.bf16.msra.mxu2 %v822_v2  ;;  %v825_v13 = vld [vmem:[%s905_s20 + $0x48] sm:$0xff]  ;;  %v824_v15 = vld [vmem:[%s905_s20 + $0x40] sm:$0xff]  ;;  %v803_v29 = vld [vmem:[%s925_s23 + $0x14] sm:$0xf0] }
  0x14   : > { %483 = vmatpush.bf16.msra.mxu1 %v830_v3  ;;  %841 = vmatpush.bf16.msra.mxu3 %v830_v3  ;;  %v669_v16 = vld [vmem:[%s925_s23] sm:$0xf]  ;;  %v801_v17 = vld [vmem:[%s925_s23 + $0x4] sm:$0xf0]  ;;  %v800_v20 = vld [vmem:[%s925_s23 + $0x4] sm:$0xf]  ;;  %v678_v36 = vor.u32 %v803_v29, %v677_v28 }
  0x15   : > { %v701_v18 = vld [vmem:[%s925_s23 + $0x40] sm:$0xf]  ;;  %v809_v19 = vld [vmem:[%s925_s23 + $0x44] sm:$0xf0]  ;;  %v671_v21 = vld [vmem:[%s925_s23 + $0x8] sm:$0xf0]  ;;  %v670_v24 = vor.u32 %v801_v17, %v669_v16 }
  0x16   : > { %v808_v22 = vld [vmem:[%s925_s23 + $0x44] sm:$0xf]  ;;  %v703_v23 = vld [vmem:[%s925_s23 + $0x48] sm:$0xf0]  ;;  %v702_v25 = vor.u32 %v809_v19, %v701_v18  ;;  %v674_v26 = vor.u32 %v800_v20, %v671_v21  ;;  %v709_v30 = vld [vmem:[%s925_s23 + $0x50] sm:$0xf] }
  0x17   : > { %435 = vmatpush.bf16.msra.mxu0 %v821_v4  ;;  %834 = vmatpush.bf16.msra.mxu2 %v821_v4  ;;  %v706_v27 = vor.u32 %v808_v22, %v703_v23  ;;  %v811_v31 = vld [vmem:[%s925_s23 + $0x54] sm:$0xf0]  ;;  %v802_v32 = vld [vmem:[%s925_s23 + $0x14] sm:$0xf]  ;;  %v679_v33 = vld [vmem:[%s925_s23 + $0x18] sm:$0xf0] }
  0x18   : > { %484 = vmatpush.bf16.msra.mxu1 %v829_v5  ;;  %842 = vmatpush.bf16.msra.mxu3 %v829_v5  ;;  %v810_v34 = vld [vmem:[%s925_s23 + $0x54] sm:$0xf]  ;;  %v711_v35 = vld [vmem:[%s925_s23 + $0x58] sm:$0xf0]  ;;  %v710_v37 = vor.u32 %v811_v31, %v709_v30  ;;  %v682_v38 = vor.u32 %v802_v32, %v679_v33  ;;  %v685_v40 = vld [vmem:[%s925_s23 + $0x20] sm:$0xf] }
  0x19   : > { %v714_v39 = vor.u32 %v810_v34, %v711_v35  ;;  %v805_v41 = vld [vmem:[%s925_s23 + $0x24] sm:$0xf0]  ;;  %v717_v42 = vld [vmem:[%s925_s23 + $0x60] sm:$0xf]  ;;  %v804_v44 = vld [vmem:[%s925_s23 + $0x24] sm:$0xf] }
  0x1a   : > { %v813_v43 = vld [vmem:[%s925_s23 + $0x64] sm:$0xf0]  ;;  %v687_v45 = vld [vmem:[%s925_s23 + $0x28] sm:$0xf0]  ;;  %v812_v46 = vld [vmem:[%s925_s23 + $0x64] sm:$0xf]  ;;  %v686_v48 = vor.u32 %v805_v41, %v685_v40 }
  0x1b   : > { %436 = vmatpush.bf16.msra.mxu0 %v820_v6  ;;  %835 = vmatpush.bf16.msra.mxu2 %v820_v6  ;;  %v719_v47 = vld [vmem:[%s925_s23 + $0x68] sm:$0xf0]  ;;  %v718_v49 = vor.u32 %v813_v43, %v717_v42  ;;  %v690_v50 = vor.u32 %v804_v44, %v687_v45  ;;  %v693_v52 = vld [vmem:[%s925_s23 + $0x30] sm:$0xf]  ;;  %v807_v53 = vld [vmem:[%s925_s23 + $0x34] sm:$0xf0] }
  0x1c   : > { %485 = vmatpush.bf16.msra.mxu1 %v828_v7  ;;  %843 = vmatpush.bf16.msra.mxu3 %v828_v7  ;;  %v722_v51 = vor.u32 %v812_v46, %v719_v47  ;;  %v725_v54 = vld [vmem:[%s925_s23 + $0x70] sm:$0xf]  ;;  %v815_v55 = vld [vmem:[%s925_s23 + $0x74] sm:$0xf0]  ;;  %v806_v56 = vld [vmem:[%s925_s23 + $0x34] sm:$0xf]  ;;  %v694_v60 = vor.u32 %v807_v53, %v693_v52 }
  0x1d   : > { %v695_v57 = vld [vmem:[%s925_s23 + $0x38] sm:$0xf0]  ;;  %v814_v58 = vld [vmem:[%s925_s23 + $0x74] sm:$0xf]  ;;  %v726_v61 = vor.u32 %v815_v55, %v725_v54  ;;  %v967_v0 = vld [vmem:[%s199_s17] ss:$0 sm:$0xff] }
  0x1e   : > { %v727_v59 = vld [vmem:[%s925_s23 + $0x78] sm:$0xf0]  ;;  %v698_v62 = vor.u32 %v806_v56, %v695_v57 }
  0x1f   : > { %437 = vmatpush.bf16.msra.mxu0 %v819_v8  ;;  %836 = vmatpush.bf16.msra.mxu2 %v819_v8  ;;  %v730_v63 = vor.u32 %v814_v58, %v727_v59 }
  0x20   : > { %486 = vmatpush.bf16.msra.mxu1 %v827_v9  ;;  %844 = vmatpush.bf16.msra.mxu3 %v827_v9 }
  0x23   : > { %438 = vmatpush.bf16.msra.mxu0 %v818_v10  ;;  %837 = vmatpush.bf16.msra.mxu2 %v818_v10 }
  0x24   : > { %487 = vmatpush.bf16.msra.mxu1 %v826_v11  ;;  %845 = vmatpush.bf16.msra.mxu3 %v826_v11 }
  0x27   : > { %439 = vmatpush.bf16.msra.mxu0 %v817_v12  ;;  %838 = vmatpush.bf16.msra.mxu2 %v817_v12 }
  0x28   : > { %488 = vmatpush.bf16.msra.mxu1 %v825_v13  ;;  %846 = vmatpush.bf16.msra.mxu3 %v825_v13 }
  0x2b   : > { %440 = vmatpush.bf16.msra.mxu0 %v816_v14  ;;  %839 = vmatpush.bf16.msra.mxu2 %v816_v14 }
  0x2c   : > { %489 = vmatpush.bf16.msra.mxu1 %v824_v15  ;;  %847 = vmatpush.bf16.msra.mxu3 %v824_v15 }
  0x2e   : > { %441 = vmatmul.bf16.vlgmr.msra.gmra.mxu0 %v670_v24  ;;  %461 = vmatmul.bf16.vlgmr.msra.gmra.mxu2 %v702_v25 }
  0x2f   : > { %490 = vmatmul.bf16.vlgmr.msra.gmra.mxu1 %v674_v26  ;;  %510 = vmatmul.bf16.vlgmr.msra.gmra.mxu3 %v706_v27 }
  0x3e   : > { %446 = vmatmul.bf16.gmra.mxu0 %v678_v36  ;;  %466 = vmatmul.bf16.gmra.mxu2 %v710_v37 }
  0x3f   : > { %495 = vmatmul.bf16.gmra.mxu1 %v682_v38  ;;  %515 = vmatmul.bf16.gmra.mxu3 %v714_v39 }
  0x4e   : > { %451 = vmatmul.bf16.gmra.mxu0 %v686_v48  ;;  %471 = vmatmul.bf16.gmra.mxu2 %v718_v49 }
  0x4f   : > { %500 = vmatmul.bf16.gmra.mxu1 %v690_v50  ;;  %520 = vmatmul.bf16.gmra.mxu3 %v722_v51 }
  0x5e   : > { %456 = vmatmul.bf16.gmra.mxu0 %v694_v60  ;;  %476 = vmatmul.bf16.gmra.mxu2 %v726_v61 }
  0x5f   : > { %505 = vmatmul.bf16.gmra.mxu1 %v698_v62  ;;  %525 = vmatmul.bf16.gmra.mxu3 %v730_v63 }
  0xab   : > { %v442_v1 = vpop.f32.mrf.mxu0 }
  0xac   : > { %v443_v2 = vadd.f32 %v967_v0, %v442_v1  ;;  %v491_v3 = vpop.f32.mrf.mxu1 }
  0xae   : > { %v492_v4 = vadd.f32 %v491_v3, %v443_v2 }
  0xb0   : > { %v531_v5 = vmax.f32 %v492_v4, 0.0 }
  0xb1   : > { %v462_v6 = vpop.f32.mrf.mxu2 }
  0xb2   : > { %v547_v7 = vpack.c.bf16 %v531_v5, %v531_v5  ;;  %v463_v8 = vadd.f32 %v967_v0, %v462_v6  ;;  %v511_v9 = vpop.f32.mrf.mxu3 }
  0xb3   : > { %v444_v10 = vpop.f32.mrf.mxu0 }
  0xb4   : > { %564 = vst.msk [vmem:[%s974_s29] sm:$0xf] %vm563_vm0, %v547_v7  ;;  %v512_v11 = vadd.f32 %v511_v9, %v463_v8  ;;  %v445_v12 = vadd.f32 %v967_v0, %v444_v10  ;;  %v493_v13 = vpop.f32.mrf.mxu1 }
  0xb6   : > { %v539_v14 = vmax.f32 %v512_v11, 0.0  ;;  %v494_v15 = vadd.f32 %v493_v13, %v445_v12 }
  0xb8   : > { %v555_v16 = vpack.c.bf16 %v539_v14, %v539_v14  ;;  %v532_v17 = vmax.f32 %v494_v15, 0.0 }
  0xb9   : > { %v464_v18 = vpop.f32.mrf.mxu2 }
  0xba   : > { %572 = vst.msk [vmem:[%s974_s29 + $0x20] sm:$0xf] %vm563_vm0, %v555_v16  ;;  %v548_v19 = vpack.c.bf16 %v532_v17, %v532_v17  ;;  %v465_v20 = vadd.f32 %v967_v0, %v464_v18  ;;  %v513_v21 = vpop.f32.mrf.mxu3 }
  0xbb   : > { %v447_v22 = vpop.f32.mrf.mxu0 }
  0xbc   : > { %565 = vst.msk [vmem:[%s974_s29 + $0x4] sm:$0xf] %vm563_vm0, %v548_v19  ;;  %v514_v23 = vadd.f32 %v513_v21, %v465_v20  ;;  %v448_v24 = vadd.f32 %v967_v0, %v447_v22  ;;  %v496_v25 = vpop.f32.mrf.mxu1 }
  0xbe   : > { %v540_v26 = vmax.f32 %v514_v23, 0.0  ;;  %v497_v27 = vadd.f32 %v496_v25, %v448_v24 }
  0xc0   : > { %v556_v28 = vpack.c.bf16 %v540_v26, %v540_v26  ;;  %v533_v29 = vmax.f32 %v497_v27, 0.0 }
  0xc1   : > { %v467_v30 = vpop.f32.mrf.mxu2 }
  0xc2   : > { %573 = vst.msk [vmem:[%s974_s29 + $0x24] sm:$0xf] %vm563_vm0, %v556_v28  ;;  %v549_v31 = vpack.c.bf16 %v533_v29, %v533_v29  ;;  %v468_v32 = vadd.f32 %v967_v0, %v467_v30  ;;  %v516_v33 = vpop.f32.mrf.mxu3 }
  0xc3   : > { %v449_v34 = vpop.f32.mrf.mxu0 }
  0xc4   : > { %566 = vst.msk [vmem:[%s974_s29 + $0x8] sm:$0xf] %vm563_vm0, %v549_v31  ;;  %v517_v35 = vadd.f32 %v516_v33, %v468_v32  ;;  %v450_v36 = vadd.f32 %v967_v0, %v449_v34  ;;  %v498_v37 = vpop.f32.mrf.mxu1 }
  0xc6   : > { %v541_v38 = vmax.f32 %v517_v35, 0.0  ;;  %v499_v39 = vadd.f32 %v498_v37, %v450_v36 }
  0xc8   : > { %v557_v40 = vpack.c.bf16 %v541_v38, %v541_v38  ;;  %v534_v41 = vmax.f32 %v499_v39, 0.0 }
  0xc9   : > { %v469_v42 = vpop.f32.mrf.mxu2 }
  0xca   : > { %574 = vst.msk [vmem:[%s974_s29 + $0x28] sm:$0xf] %vm563_vm0, %v557_v40  ;;  %v550_v43 = vpack.c.bf16 %v534_v41, %v534_v41  ;;  %v470_v44 = vadd.f32 %v967_v0, %v469_v42  ;;  %v518_v45 = vpop.f32.mrf.mxu3 }
  0xcb   : > { %v452_v46 = vpop.f32.mrf.mxu0 }
  0xcc   : > { %567 = vst.msk [vmem:[%s974_s29 + $0xc] sm:$0xf] %vm563_vm0, %v550_v43  ;;  %v519_v47 = vadd.f32 %v518_v45, %v470_v44  ;;  %v453_v48 = vadd.f32 %v967_v0, %v452_v46  ;;  %v501_v49 = vpop.f32.mrf.mxu1 }
  0xce   : > { %v542_v50 = vmax.f32 %v519_v47, 0.0  ;;  %v502_v51 = vadd.f32 %v501_v49, %v453_v48 }
  0xd0   : > { %v558_v52 = vpack.c.bf16 %v542_v50, %v542_v50  ;;  %v535_v53 = vmax.f32 %v502_v51, 0.0 }
  0xd1   : > { %v472_v54 = vpop.f32.mrf.mxu2 }
  0xd2   : > { %575 = vst.msk [vmem:[%s974_s29 + $0x2c] sm:$0xf] %vm563_vm0, %v558_v52  ;;  %v551_v55 = vpack.c.bf16 %v535_v53, %v535_v53  ;;  %v473_v56 = vadd.f32 %v967_v0, %v472_v54  ;;  %v521_v57 = vpop.f32.mrf.mxu3 }
  0xd3   : > { %v454_v58 = vpop.f32.mrf.mxu0 }
  0xd4   : > { %568 = vst.msk [vmem:[%s974_s29 + $0x10] sm:$0xf] %vm563_vm0, %v551_v55  ;;  %v522_v59 = vadd.f32 %v521_v57, %v473_v56  ;;  %v455_v60 = vadd.f32 %v967_v0, %v454_v58  ;;  %v503_v61 = vpop.f32.mrf.mxu1 }
  0xd6   : > { %v543_v62 = vmax.f32 %v522_v59, 0.0  ;;  %v504_v63 = vadd.f32 %v503_v61, %v455_v60 }
  0xd8   : > { %v559_v1 = vpack.c.bf16 %v543_v62, %v543_v62  ;;  %v536_v2 = vmax.f32 %v504_v63, 0.0 }
  0xd9   : > { %v474_v3 = vpop.f32.mrf.mxu2 }
  0xda   : > { %576 = vst.msk [vmem:[%s974_s29 + $0x30] sm:$0xf] %vm563_vm0, %v559_v1  ;;  %v552_v4 = vpack.c.bf16 %v536_v2, %v536_v2  ;;  %v475_v5 = vadd.f32 %v967_v0, %v474_v3  ;;  %v523_v6 = vpop.f32.mrf.mxu3 }
  0xdb   : > { %v457_v7 = vpop.f32.mrf.mxu0 }
  0xdc   : > { %569 = vst.msk [vmem:[%s974_s29 + $0x14] sm:$0xf] %vm563_vm0, %v552_v4  ;;  %v524_v8 = vadd.f32 %v523_v6, %v475_v5  ;;  %v458_v9 = vadd.f32 %v967_v0, %v457_v7  ;;  %v506_v10 = vpop.f32.mrf.mxu1 }
  0xde   : > { %v544_v11 = vmax.f32 %v524_v8, 0.0  ;;  %v507_v12 = vadd.f32 %v506_v10, %v458_v9 }
  0xe0   : > { %v560_v13 = vpack.c.bf16 %v544_v11, %v544_v11  ;;  %v537_v14 = vmax.f32 %v507_v12, 0.0 }
  0xe1   : > { %v477_v15 = vpop.f32.mrf.mxu2 }
  0xe2   : > { %577 = vst.msk [vmem:[%s974_s29 + $0x34] sm:$0xf] %vm563_vm0, %v560_v13  ;;  %v553_v16 = vpack.c.bf16 %v537_v14, %v537_v14  ;;  %v478_v17 = vadd.f32 %v967_v0, %v477_v15  ;;  %v526_v18 = vpop.f32.mrf.mxu3 }
  0xe3   : > { %v459_v19 = vpop.f32.mrf.mxu0 }
  0xe4   : > { %570 = vst.msk [vmem:[%s974_s29 + $0x18] sm:$0xf] %vm563_vm0, %v553_v16  ;;  %v527_v20 = vadd.f32 %v526_v18, %v478_v17  ;;  %v460_v21 = vadd.f32 %v967_v0, %v459_v19  ;;  %v508_v22 = vpop.f32.mrf.mxu1 }
  0xe6   : > { %v545_v23 = vmax.f32 %v527_v20, 0.0  ;;  %v509_v24 = vadd.f32 %v508_v22, %v460_v21 }
  0xe8   : > { %v561_v25 = vpack.c.bf16 %v545_v23, %v545_v23  ;;  %v538_v26 = vmax.f32 %v509_v24, 0.0 }
  0xe9   : > { %v479_v27 = vpop.f32.mrf.mxu2 }
  0xea   : > { %578 = vst.msk [vmem:[%s974_s29 + $0x38] sm:$0xf] %vm563_vm0, %v561_v25  ;;  %v554_v28 = vpack.c.bf16 %v538_v26, %v538_v26  ;;  %v480_v29 = vadd.f32 %v967_v0, %v479_v27  ;;  %v528_v30 = vpop.f32.mrf.mxu3 }
  0xec   : > { %571 = vst.msk [vmem:[%s974_s29 + $0x1c] sm:$0xf] %vm563_vm0, %v554_v28  ;;  %v529_v31 = vadd.f32 %v528_v30, %v480_v29 }
  0xee   : > { %v546_v32 = vmax.f32 %v529_v31, 0.0 }
  0xf0   : > { %v562_v33 = vpack.c.bf16 %v546_v32, %v546_v32 }
  0xf2   : > { %579 = vst.msk [vmem:[%s974_s29 + $0x3c] sm:$0xf] %vm563_vm0, %v562_v33 }
  0xf3 PF: > { %s13_s12 = sadd.s32 1, %s863_s12  }
  0xf4   : > { %p10_p4 = scmp.ge.s32.totalorder %s13_s12, 4  }
  0xf6   :  { %12 = sbr.rel (!%p10_p4) target bundleno = 1 (0x1), region = 68 }

// kernel: gp_model_forward.5
= control target key start
LH: loop header
LB: loop body
LE: loop exit
PB: predicated region body
PF: predicated region fallthrough
CT: control target
= control target key end

     0   :  { %s5178_s24 = smov 0   ;;  %s6614_s0 = inlined_call_operand.vmem [shape: bf16[2,16,2,512], index: 0, kind: input, shape index: {}]   ;;  %s6615_s1 = inlined_call_operand.vmem [shape: bf16[2,512,32], index: 1, kind: input, shape index: {}]   ;;  %s6616_s2 = inlined_call_operand.vmem [shape: f32[2,1,32], index: 2, kind: input, shape index: {}]   ;;  %s6617_s3 = inlined_call_operand.vmem [shape: bf16[2,16,32,512], index: 3, kind: input, shape index: {}]   ;;  %s6618_s4 = inlined_call_operand.vmem [shape: f32[2,1,512], index: 4, kind: input, shape index: {}]   ;;  %s6619_s5 = inlined_call_operand.vmem [shape: bf16[2,512,10], index: 5, kind: input, shape index: {}]   ;;  %s6620_s6 = inlined_call_operand.vmem [shape: f32[2,1,10], index: 6, kind: input, shape index: {}]   ;;  %s6621_s7 = inlined_call_operand.vmem [shape: f32[2,2,10], index: 7, kind: output, shape index: {}]  }
   0x1 LB: > { %s3870_s25 = sadd.s32 4294967295, %s5136_s24   ;;  %p3874_p0 = scmp.ge.s32.totalorder %s5136_s24, 1  ;;  %s5136_s24 = sphi %s5178_s24, %s17_s24  }
   0x2   : > { %p291_p1 = scmp.lt.s32.totalorder %s5136_s24, 3 }
   0x4   : > { %p292_p2 = pnand %p3874_p0, %p291_p1 }
   0x5   : > { %p346_p3 = scmp.lt.s32.totalorder (!%p292_p2), %s3870_s25, 1 }
   0x6   : > { %295 = sbr.rel (%p292_p2) target bundleno = 2716 (0xa9c), region = 48 }
   0xb   : > { %s6623_s25 = smov (!%p346_p3, %s3870_s25), 1  ;;  %vm828_vm0 = vcmask 261120   ;;  %vm3749_vm1 = vcmask 74752  }
   0xc   : > { %s4853_s26 = sshll.u32 %s6623_s25, 8  ;;  %s3875_s30 = sshll.u32 %s6623_s25, 6 }
   0xd   : > { %s5194_s29 = scalar_lea.vmem %s6615_s1, %s4853_s26  ;;  %s5244_s10 = scalar_lea.vmem %s6614_s0, %s3875_s30 }
   0xe   : > { %v5197_v0 = vld [vmem:[%s5194_s29 + $0x38] sm:$0xff]  ;;  %v5211_v4 = vld [vmem:[%s5194_s29 + $0x30] sm:$0xff]  ;;  %v5228_v8 = vld [vmem:[%s5194_s29 + $0x28] sm:$0xff]  ;;  %s5267_s13 = scalar_lea.vmem %s6616_s2, %s6623_s25  ;;  %s4854_s14 = sshll.u32 %s6623_s25, 10 }
   0xf   : > { %v5200_v1 = vld [vmem:[%s5194_s29 + $0x78] sm:$0xff]  ;;  %651 = vmatpush.bf16.msra.mxu0 %v5197_v0  ;;  %v5214_v5 = vld [vmem:[%s5194_s29 + $0x70] sm:$0xff]  ;;  %v5231_v9 = vld [vmem:[%s5194_s29 + $0x68] sm:$0xff]  ;;  %s5374_s17 = scalar_lea.vmem %s6617_s3, %s4854_s14  ;;  %s6539_s20 = scalar_lea.vmem %s6619_s5, %s4853_s26 }
  0x10   : > { %v5203_v2 = vld [vmem:[%s5194_s29 + $0xb8] sm:$0xff]  ;;  %664 = vmatpush.bf16.msra.mxu1 %v5200_v1  ;;  %v5219_v6 = vld [vmem:[%s5194_s29 + $0xb0] sm:$0xff]  ;;  %v5236_v10 = vld [vmem:[%s5194_s29 + $0xa8] sm:$0xff]  ;;  %s374_s23 = scalar_lea.vmem %s6620_s6, %s6623_s25  ;;  %s3880_s26 = sshll.u32 %s6623_s25, 2 }
  0x11   : > { %v5206_v3 = vld [vmem:[%s5194_s29 + $0xf8] sm:$0xff]  ;;  %677 = vmatpush.bf16.msra.mxu2 %v5203_v2  ;;  %v5222_v7 = vld [vmem:[%s5194_s29 + $0xf0] sm:$0xff]  ;;  %v5239_v11 = vld [vmem:[%s5194_s29 + $0xe8] sm:$0xff]  ;;  %s3883_s9 = sshll.u32 %s6623_s25, 1 }
  0x12   : > { %690 = vmatpush.bf16.msra.mxu3 %v5206_v3  ;;  %v5249_v12 = vld [vmem:[%s5194_s29 + $0x20] sm:$0xff]  ;;  %v5272_v17 = vld [vmem:[%s5194_s29 + $0x18] sm:$0xff]  ;;  %v5288_v21 = vld [vmem:[%s5194_s29 + $0x10] sm:$0xff]  ;;  %s378_s12 = scalar_lea.vmem %s6621_s7, %s3883_s9 }
  0x13   : > { %652 = vmatpush.bf16.msra.mxu0 %v5211_v4  ;;  %v5252_v13 = vld [vmem:[%s5194_s29 + $0x60] sm:$0xff]  ;;  %v5275_v18 = vld [vmem:[%s5194_s29 + $0x58] sm:$0xff]  ;;  %v5291_v22 = vld [vmem:[%s5194_s29 + $0x50] sm:$0xff] }
  0x14   : > { %665 = vmatpush.bf16.msra.mxu1 %v5214_v5  ;;  %v445_v14 = vld [vmem:[%s5244_s10] sm:$0xf]  ;;  %v5280_v19 = vld [vmem:[%s5194_s29 + $0x98] sm:$0xff]  ;;  %v5296_v23 = vld [vmem:[%s5194_s29 + $0x90] sm:$0xff] }
  0x15   : > { %678 = vmatpush.bf16.msra.mxu2 %v5219_v6  ;;  %v5258_v15 = vld [vmem:[%s5194_s29 + $0xa0] sm:$0xff]  ;;  %450 = vst [vmem:[#allocation1] ss:$9 sm:$0xff] %v445_v14  ;;  %v5283_v20 = vld [vmem:[%s5194_s29 + $0xd8] sm:$0xff]  ;;  %v5299_v24 = vld [vmem:[%s5194_s29 + $0xd0] sm:$0xff] }
  0x16   : > { %691 = vmatpush.bf16.msra.mxu3 %v5222_v7  ;;  %v5261_v16 = vld [vmem:[%s5194_s29 + $0xe0] sm:$0xff]  ;;  %v5302_v25 = vld [vmem:[%s5194_s29 + $0x8] sm:$0xff]  ;;  %v4903_v43 = vld [vmem:[%s5374_s17 + $0x74] sm:$0xf0] }
  0x17   : > { %653 = vmatpush.bf16.msra.mxu0 %v5228_v8  ;;  %v5305_v26 = vld [vmem:[%s5194_s29 + $0x48] sm:$0xff]  ;;  %v4012_v33 = vld [vmem:[%s5244_s10 + $0x4] sm:$0xf]  ;;  %v4039_v46 = vld [vmem:[%s5374_s17 + $0x60] sm:$0xf] }
  0x18   : > { %666 = vmatpush.bf16.msra.mxu1 %v5231_v9  ;;  %v5308_v27 = vld [vmem:[%s5194_s29 + $0x88] sm:$0xff]  ;;  %v5321_v34 = vld [vmem:[%s5194_s29] sm:$0xff]  ;;  %v4902_v47 = vld [vmem:[%s5374_s17 + $0x6c] sm:$0xf0] }
  0x19   : > { %679 = vmatpush.bf16.msra.mxu2 %v5236_v10  ;;  %v5313_v28 = vld [vmem:[%s5194_s29 + $0xc8] sm:$0xff]  ;;  %v5324_v35 = vld [vmem:[%s5194_s29 + $0x40] sm:$0xff]  ;;  %v4040_v50 = vor.u32 %v4902_v47, %v4039_v46  ;;  %v4049_v51 = vld [vmem:[%s5374_s17 + $0x78] sm:$0xf0] }
  0x1a   : > { %692 = vmatpush.bf16.msra.mxu3 %v5239_v11  ;;  %v5329_v36 = vld [vmem:[%s5194_s29 + $0x80] sm:$0xff]  ;;  %v4047_v42 = vld [vmem:[%s5374_s17 + $0x68] sm:$0xf]  ;;  %v4901_v48 = vld [vmem:[%s5374_s17 + $0x6c] sm:$0xf] }
  0x1b   : > { %654 = vmatpush.bf16.msra.mxu0 %v5249_v12  ;;  %v5332_v37 = vld [vmem:[%s5194_s29 + $0xc0] sm:$0xff]  ;;  %v4048_v44 = vor.u32 %v4903_v43, %v4047_v42  ;;  %v4041_v53 = vld [vmem:[%s5374_s17 + $0x70] sm:$0xf0]  ;;  %v4052_v54 = vor.u32 %v4901_v48, %v4049_v51  ;;  %v4031_v56 = vld [vmem:[%s5374_s17 + $0x48] sm:$0xf] }
  0x1c   : > { %667 = vmatpush.bf16.msra.mxu1 %v5252_v13  ;;  %v453_v29 = vld [vmem:[#allocation1 + $0x12] sm:$0xff]  ;;  %v451_v30 = vld [vmem:[#allocation1] sm:$0xff]  ;;  %v452_v32 = vld [vmem:[#allocation1 + $0x9] sm:$0xff] }
  0x1d   : > { %680 = vmatpush.bf16.msra.mxu2 %v5258_v15  ;;  %v454_v31 = vld [vmem:[#allocation1 + $0x1b] sm:$0xff]  ;;  %v4900_v52 = vld [vmem:[%s5374_s17 + $0x64] sm:$0xf]  ;;  %v4898_v61 = vld [vmem:[%s5374_s17 + $0x4c] sm:$0xf0] }
  0x1e   : > { %693 = vmatpush.bf16.msra.mxu3 %v5261_v16  ;;  %716 = vst [vmem:[#allocation1] ss:$9 sm:$0xff] %v4012_v33  ;;  %v4044_v55 = vor.u32 %v4900_v52, %v4041_v53  ;;  %v4899_v57 = vld [vmem:[%s5374_s17 + $0x54] sm:$0xf0]  ;;  %v4023_v58 = vld [vmem:[%s5374_s17 + $0x40] sm:$0xf] }
  0x1f   : > { %655 = vmatpush.bf16.msra.mxu0 %v5272_v17  ;;  %v4032_v60 = vor.u32 %v4899_v57, %v4031_v56  ;;  %v4897_v62 = vld [vmem:[%s5374_s17 + $0x4c] sm:$0xf]  ;;  %v4033_v63 = vld [vmem:[%s5374_s17 + $0x58] sm:$0xf0]  ;;  %v4075_v33 = vld [vmem:[%s5374_s17 + $0x20] sm:$0xf] }
  0x20   : > { %668 = vmatpush.bf16.msra.mxu1 %v5275_v18  ;;  %v4077_v42 = vld [vmem:[%s5374_s17 + $0x30] sm:$0xf0]  ;;  %v4083_v47 = vld [vmem:[%s5374_s17 + $0x28] sm:$0xf]  ;;  %v4895_v48 = vld [vmem:[%s5374_s17 + $0x34] sm:$0xf0] }
  0x21   : > { %681 = vmatpush.bf16.msra.mxu2 %v5280_v19  ;;  %v4084_v51 = vor.u32 %v4895_v48, %v4083_v47  ;;  %v4085_v52 = vld [vmem:[%s5374_s17 + $0x38] sm:$0xf0]  ;;  %v4888_v57 = vld [vmem:[%s5374_s17 + $0x4] sm:$0xf] }
  0x22   : > { %694 = vmatpush.bf16.msra.mxu3 %v5283_v20 }
  0x23   : > { %656 = vmatpush.bf16.msra.mxu0 %v5288_v21 }
  0x24   : > { %669 = vmatpush.bf16.msra.mxu1 %v5291_v22 }
  0x25   : > { %682 = vmatpush.bf16.msra.mxu2 %v5296_v23  ;;  %v717_v38 = vld [vmem:[#allocation1] sm:$0xff]  ;;  %v718_v39 = vld [vmem:[#allocation1 + $0x9] sm:$0xff]  ;;  %v719_v40 = vld [vmem:[#allocation1 + $0x12] sm:$0xff] }
  0x26   : > { %695 = vmatpush.bf16.msra.mxu3 %v5299_v24  ;;  %v720_v41 = vld [vmem:[#allocation1 + $0x1b] sm:$0xff] }
  0x27   : > { %657 = vmatpush.bf16.msra.mxu0 %v5302_v25 }
  0x28   : > { %670 = vmatpush.bf16.msra.mxu1 %v5305_v26 }
  0x29   : > { %683 = vmatpush.bf16.msra.mxu2 %v5308_v27 }
  0x2a   : > { %696 = vmatpush.bf16.msra.mxu3 %v5313_v28 }
  0x2b   : > { %658 = vmatpush.bf16.msra.mxu0 %v5321_v34 }
  0x2c   : > { %671 = vmatpush.bf16.msra.mxu1 %v5324_v35 }
  0x2d   : > { %684 = vmatpush.bf16.msra.mxu2 %v5329_v36 }
  0x2e   : > { %697 = vmatpush.bf16.msra.mxu3 %v5332_v37  ;;  %659 = vmatmul.bf16.vlgmr.msra.gmra.mxu0 %v451_v30  ;;  %v4036_v30 = vor.u32 %v4897_v62, %v4033_v63  ;;  %v4891_v62 = vld [vmem:[%s5374_s17 + $0x14] sm:$0xf0]  ;;  %v4889_v63 = vld [vmem:[%s5374_s17 + $0xc] sm:$0xf] }
  0x2f   : > { %725 = vmatpush.bf16.msrb.mxu0 %v5197_v0  ;;  %672 = vmatmul.bf16.vlgmr.msra.gmra.mxu1 %v452_v32  ;;  %v4025_v32 = vld [vmem:[%s5374_s17 + $0x50] sm:$0xf0] }
  0x30   : > { %738 = vmatpush.bf16.msrb.mxu1 %v5200_v1  ;;  %685 = vmatmul.bf16.vlgmr.msra.gmra.mxu2 %v453_v29  ;;  %v4024_v29 = vor.u32 %v4898_v61, %v4023_v58  ;;  %v4061_v58 = vld [vmem:[%s5374_s17 + $0x10] sm:$0xf0]  ;;  %v4067_v61 = vld [vmem:[%s5374_s17 + $0x8] sm:$0xf] }
  0x31   : > { %751 = vmatpush.bf16.msrb.mxu2 %v5203_v2  ;;  %698 = vmatmul.bf16.vlgmr.msra.gmra.mxu3 %v454_v31  ;;  %v4896_v31 = vld [vmem:[%s5374_s17 + $0x44] sm:$0xf] }
  0x32   : > { %764 = vmatpush.bf16.msrb.mxu3 %v5206_v3 }
  0x33   : > { %726 = vmatpush.bf16.msrb.mxu0 %v5211_v4 }
  0x34   : > { %739 = vmatpush.bf16.msrb.mxu1 %v5214_v5 }
  0x35   : > { %752 = vmatpush.bf16.msrb.mxu2 %v5219_v6 }
  0x36   : > { %765 = vmatpush.bf16.msrb.mxu3 %v5222_v7 }
  0x37   : > { %727 = vmatpush.bf16.msrb.mxu0 %v5228_v8 }
  0x38   : > { %740 = vmatpush.bf16.msrb.mxu1 %v5231_v9 }
  0x39   : > { %753 = vmatpush.bf16.msrb.mxu2 %v5236_v10 }
  0x3a   : > { %766 = vmatpush.bf16.msrb.mxu3 %v5239_v11 }
  0x3b   : > { %728 = vmatpush.bf16.msrb.mxu0 %v5249_v12 }
  0x3c   : > { %741 = vmatpush.bf16.msrb.mxu1 %v5252_v13 }
  0x3d   : > { %754 = vmatpush.bf16.msrb.mxu2 %v5258_v15 }
  0x3e   : > { %767 = vmatpush.bf16.msrb.mxu3 %v5261_v16 }
  0x3f   : > { %729 = vmatpush.bf16.msrb.mxu0 %v5272_v17 }
  0x40   : > { %742 = vmatpush.bf16.msrb.mxu1 %v5275_v18 }
  0x41   : > { %755 = vmatpush.bf16.msrb.mxu2 %v5280_v19 }
  0x42   : > { %768 = vmatpush.bf16.msrb.mxu3 %v5283_v20 }
  0x43   : > { %730 = vmatpush.bf16.msrb.mxu0 %v5288_v21 }
  0x44   : > { %743 = vmatpush.bf16.msrb.mxu1 %v5291_v22 }
  0x45   : > { %756 = vmatpush.bf16.msrb.mxu2 %v5296_v23 }
  0x46   : > { %769 = vmatpush.bf16.msrb.mxu3 %v5299_v24 }
  0x47   : > { %731 = vmatpush.bf16.msrb.mxu0 %v5302_v25 }
  0x48   : > { %744 = vmatpush.bf16.msrb.mxu1 %v5305_v26 }
  0x49   : > { %757 = vmatpush.bf16.msrb.mxu2 %v5308_v27 }
  0x4a   : > { %770 = vmatpush.bf16.msrb.mxu3 %v5313_v28 }
  0x4b   : > { %732 = vmatpush.bf16.msrb.mxu0 %v5321_v34 }
  0x4c   : > { %745 = vmatpush.bf16.msrb.mxu1 %v5324_v35 }
  0x4d   : > { %758 = vmatpush.bf16.msrb.mxu2 %v5329_v36 }
  0x4e   : > { %771 = vmatpush.bf16.msrb.mxu3 %v5332_v37  ;;  %733 = vmatmul.bf16.vlgmr.msrb.gmra.mxu0 %v717_v38 }
  0x4f   : > { %746 = vmatmul.bf16.vlgmr.msrb.gmra.mxu1 %v718_v39  ;;  %838 = vmatpush.bf16.msra.mxu0 %v4040_v50  ;;  %v4028_v39 = vor.u32 %v4896_v31, %v4025_v32  ;;  %v4893_v50 = vld [vmem:[%s5374_s17 + $0x2c] sm:$0xf]  ;;  %v4069_v31 = vld [vmem:[%s5374_s17 + $0x18] sm:$0xf0] }
  0x50   : > { %759 = vmatmul.bf16.vlgmr.msrb.gmra.mxu2 %v719_v40  ;;  %851 = vmatpush.bf16.msra.mxu1 %v4044_v55  ;;  %v4894_v40 = vld [vmem:[%s5374_s17 + $0x2c] sm:$0xf0]  ;;  %v4088_v53 = vor.u32 %v4893_v50, %v4085_v52  ;;  %v4093_v50 = vld [vmem:[%s5244_s10 + $0x8] sm:$0xf] }
  0x51   : > { %772 = vmatmul.bf16.vlgmr.msrb.gmra.mxu3 %v720_v41  ;;  %864 = vmatpush.bf16.msra.mxu2 %v4048_v44  ;;  %v4892_v41 = vld [vmem:[%s5374_s17 + $0x24] sm:$0xf]  ;;  %v4076_v44 = vor.u32 %v4894_v40, %v4075_v33  ;;  %v4890_v55 = vld [vmem:[%s5374_s17 + $0xc] sm:$0xf0]  ;;  %v4072_v33 = vor.u32 %v4889_v63, %v4069_v31  ;;  %982 = vst [vmem:[#allocation1] ss:$9 sm:$0xff] %v4093_v50 }
  0x52   : > { %877 = vmatpush.bf16.msra.mxu3 %v4052_v54  ;;  %v4080_v46 = vor.u32 %v4892_v41, %v4077_v42  ;;  %v4059_v54 = vld [vmem:[%s5374_s17] sm:$0xf] }
  0x53   : > { %839 = vmatpush.bf16.msra.mxu0 %v4024_v29  ;;  %v4060_v56 = vor.u32 %v4890_v55, %v4059_v54  ;;  %v4120_v63 = vld [vmem:[%s5374_s17 + $0xa0] sm:$0xf] }
  0x54   : > { %852 = vmatpush.bf16.msra.mxu1 %v4028_v39 }
  0x55   : > { %865 = vmatpush.bf16.msra.mxu2 %v4032_v60  ;;  %v4064_v60 = vor.u32 %v4888_v57, %v4061_v58 }
  0x56   : > { %878 = vmatpush.bf16.msra.mxu3 %v4036_v30  ;;  %v4068_v30 = vor.u32 %v4891_v62, %v4067_v61 }
  0x57   : > { %933 = vmatpush.bf16.msrb.mxu0 %v4076_v44 }
  0x58   : > { %946 = vmatpush.bf16.msrb.mxu1 %v4080_v46  ;;  %v985_v61 = vld [vmem:[#allocation1 + $0x12] sm:$0xff]  ;;  %v986_v62 = vld [vmem:[#allocation1 + $0x1b] sm:$0xff] }
  0x59   : > { %959 = vmatpush.bf16.msrb.mxu2 %v4084_v51 }
  0x5a   : > { %972 = vmatpush.bf16.msrb.mxu3 %v4088_v53 }
  0x5b   : > { %934 = vmatpush.bf16.msrb.mxu0 %v4060_v56 }
  0x5c   : > { %947 = vmatpush.bf16.msrb.mxu1 %v4064_v60  ;;  %v984_v60 = vld [vmem:[#allocation1 + $0x9] sm:$0xff] }
  0x5d   : > { %960 = vmatpush.bf16.msrb.mxu2 %v4068_v30  ;;  %v4908_v30 = vld [vmem:[%s5374_s17 + $0xa4] sm:$0xf] }
  0x5e   : > { %973 = vmatpush.bf16.msrb.mxu3 %v4072_v33  ;;  %v4128_v33 = vld [vmem:[%s5374_s17 + $0xa8] sm:$0xf] }
  0xab   : > { %v5378_v45 = vpop.f32.mrf.mxu0 }
  0xac   : > { %v5383_v49 = vpop.f32.mrf.mxu1 }
  0xb3   : > { %v5391_v59 = vpop.f32.mrf.mxu2  ;;  %v662_v38 = vpop.f32.mrf.mxu0 }
  0xb4   : > { %v5396_v14 = vpop.f32.mrf.mxu3  ;;  %v675_v43 = vpop.f32.mrf.mxu1  ;;  %v5417_v38 = vld [vmem:[%s5267_s13] ss:$0 sm:$0xff] }
  0xb5   : > { %v661_v51 = vadd.f32 %v5417_v38, %v5378_v45 }
  0xb7   : > { %v674_v54 = vadd.f32 %v5383_v49, %v661_v51  ;;  %v4106_v51 = vld [vmem:[%s5374_s17 + $0x90] sm:$0xf0] }
  0xb9   : > { %v687_v58 = vadd.f32 %v5391_v59, %v674_v54 }
  0xbb   : > { %v688_v29 = vpop.f32.mrf.mxu2  ;;  %v700_v45 = vadd.f32 %v5396_v14, %v687_v58  ;;  %v983_v14 = vld [vmem:[#allocation1] sm:$0xff]  ;;  %v4905_v58 = vld [vmem:[%s5374_s17 + $0x8c] sm:$0xf] }
  0xbc   : > { %v701_v32 = vpop.f32.mrf.mxu3  ;;  %v4910_v29 = vld [vmem:[%s5374_s17 + $0xac] sm:$0xf0] }
  0xbd   : > { %v703_v49 = vmax.f32 %v700_v45, 0.0  ;;  %v4121_v31 = vor.u32 %v4910_v29, %v4120_v63  ;;  %v4122_v32 = vld [vmem:[%s5374_s17 + $0xb0] sm:$0xf0]  ;;  %v4114_v45 = vld [vmem:[%s5374_s17 + $0x98] sm:$0xf0] }
  0xbf   : > { %v704_v59 = vpack.c.bf16 %v703_v49, %v703_v49  ;;  %v4117_v49 = vor.u32 %v4905_v58, %v4114_v45 }
  0xcb   : > { %v734_v39 = vpop.f32.mrf.mxu0 }
  0xcc   : > { %v747_v40 = vpop.f32.mrf.mxu1  ;;  %v735_v41 = vadd.f32 %v5417_v38, %v734_v39  ;;  %v4911_v39 = vld [vmem:[%s5374_s17 + $0xb4] sm:$0xf0] }
  0xce   : > { %v748_v42 = vadd.f32 %v747_v40, %v735_v41  ;;  %v4125_v40 = vor.u32 %v4908_v30, %v4122_v32  ;;  %v4129_v41 = vor.u32 %v4911_v39, %v4128_v33  ;;  %v4138_v33 = vld [vmem:[%s5244_s10 + $0xc] sm:$0xf] }
  0xcf   : > { %1156 = vst [vmem:[#allocation1] ss:$9 sm:$0xff] %v4138_v33  ;;  %v4916_v33 = vld [vmem:[%s5374_s17 + $0xe4] sm:$0xf] }
  0xd3   : > { %v760_v43 = vpop.f32.mrf.mxu2  ;;  %v736_v47 = vpop.f32.mrf.mxu0 }
  0xd4   : > { %v773_v44 = vpop.f32.mrf.mxu3  ;;  %v761_v46 = vadd.f32 %v760_v43, %v748_v42  ;;  %v749_v48 = vpop.f32.mrf.mxu1  ;;  %v4909_v42 = vld [vmem:[%s5374_s17 + $0xac] sm:$0xf]  ;;  %v4130_v43 = vld [vmem:[%s5374_s17 + $0xb8] sm:$0xf0]  ;;  %v4906_v47 = vld [vmem:[%s5374_s17 + $0x8c] sm:$0xf0] }
  0xd5   : > { %v4904_v48 = vld [vmem:[%s5374_s17 + $0x84] sm:$0xf] }
  0xd6   : > { %v774_v52 = vadd.f32 %v773_v44, %v761_v46  ;;  %v4133_v44 = vor.u32 %v4909_v42, %v4130_v43  ;;  %v4104_v46 = vld [vmem:[%s5374_s17 + $0x80] sm:$0xf] }
  0xd7   : > { %v4105_v50 = vor.u32 %v4906_v47, %v4104_v46 }
  0xd8   : > { %v777_v53 = vmax.f32 %v774_v52, 0.0  ;;  %v4112_v52 = vld [vmem:[%s5374_s17 + $0x88] sm:$0xf] }
  0xda   : > { %v778_v55 = vpack.c.bf16 %v777_v53, %v777_v53  ;;  %v4907_v53 = vld [vmem:[%s5374_s17 + $0x94] sm:$0xf0] }
  0xdb   : > { %v762_v56 = vpop.f32.mrf.mxu2 }
  0xdc   : > { %v775_v57 = vpop.f32.mrf.mxu3  ;;  %4053 = vmatmul.msk.bf16.vlgmr.msra.gmra.mxu0 %vm828_vm0, %v778_v55  ;;  %4054 = vmatmul.msk.bf16.vlgmr.msra.gmra.mxu1 %vm828_vm0, %v778_v55  ;;  %v4109_v56 = vor.u32 %v4904_v48, %v4106_v51 }
  0xdd   : > { %4055 = vmatmul.msk.bf16.vlgmr.msra.gmra.mxu2 %vm828_vm0, %v778_v55  ;;  %4056 = vmatmul.msk.bf16.vlgmr.msra.gmra.mxu3 %vm828_vm0, %v778_v55  ;;  %v4113_v57 = vor.u32 %v4907_v53, %v4112_v52 }
  0xde   : > { %991 = vmatpush.bf16.msra.mxu0 %v5197_v0  ;;  %1004 = vmatpush.bf16.msra.mxu1 %v5200_v1 }
  0xdf   : > { %1017 = vmatpush.bf16.msra.mxu2 %v5203_v2  ;;  %1030 = vmatpush.bf16.msra.mxu3 %v5206_v3 }
  0xe2   : > { %992 = vmatpush.bf16.msra.mxu0 %v5211_v4  ;;  %1005 = vmatpush.bf16.msra.mxu1 %v5214_v5 }
  0xe3   : > { %1018 = vmatpush.bf16.msra.mxu2 %v5219_v6  ;;  %1031 = vmatpush.bf16.msra.mxu3 %v5222_v7 }
  0xe6   : > { %993 = vmatpush.bf16.msra.mxu0 %v5228_v8  ;;  %1006 = vmatpush.bf16.msra.mxu1 %v5231_v9 }
  0xe7   : > { %1019 = vmatpush.bf16.msra.mxu2 %v5236_v10  ;;  %1032 = vmatpush.bf16.msra.mxu3 %v5239_v11 }
  0xea   : > { %994 = vmatpush.bf16.msra.mxu0 %v5249_v12  ;;  %1007 = vmatpush.bf16.msra.mxu1 %v5252_v13 }
  0xeb   : > { %1020 = vmatpush.bf16.msra.mxu2 %v5258_v15  ;;  %1033 = vmatpush.bf16.msra.mxu3 %v5261_v16 }
  0xec   : > { %4089 = vmatmul.msk.bf16.vlgmr.msrb.gmra.mxu0 %vm828_vm0, %v704_v59  ;;  %4090 = vmatmul.msk.bf16.vlgmr.msrb.gmra.mxu1 %vm828_vm0, %v704_v59 }
  0xed   : > { %4091 = vmatmul.msk.bf16.vlgmr.msrb.gmra.mxu2 %vm828_vm0, %v704_v59  ;;  %4092 = vmatmul.msk.bf16.vlgmr.msrb.gmra.mxu3 %vm828_vm0, %v704_v59 }
  0xee   : > { %995 = vmatpush.bf16.msra.mxu0 %v5272_v17  ;;  %1008 = vmatpush.bf16.msra.mxu1 %v5275_v18 }
  0xef   : > { %1021 = vmatpush.bf16.msra.mxu2 %v5280_v19  ;;  %1034 = vmatpush.bf16.msra.mxu3 %v5283_v20 }
  0xf2   : > { %996 = vmatpush.bf16.msra.mxu0 %v5288_v21  ;;  %1009 = vmatpush.bf16.msra.mxu1 %v5291_v22 }
  0xf3   : > { %1022 = vmatpush.bf16.msra.mxu2 %v5296_v23  ;;  %1035 = vmatpush.bf16.msra.mxu3 %v5299_v24 }
  0xf6   : > { %997 = vmatpush.bf16.msra.mxu0 %v5302_v25  ;;  %1010 = vmatpush.bf16.msra.mxu1 %v5305_v26 }
  0xf7   : > { %1023 = vmatpush.bf16.msra.mxu2 %v5308_v27  ;;  %1036 = vmatpush.bf16.msra.mxu3 %v5313_v28 }
  0xfa   : > { %998 = vmatpush.bf16.msra.mxu0 %v5321_v34  ;;  %1011 = vmatpush.bf16.msra.mxu1 %v5324_v35 }
  0xfb   : > { %1024 = vmatpush.bf16.msra.mxu2 %v5329_v36  ;;  %1037 = vmatpush.bf16.msra.mxu3 %v5332_v37 }
  0xfd   : > { %999 = vmatmul.bf16.vlgmr.msra.gmra.mxu0 %v983_v14  ;;  %1012 = vmatmul.bf16.vlgmr.msra.gmra.mxu1 %v984_v60 }
  0xfe   : > { %1025 = vmatmul.bf16.vlgmr.msra.gmra.mxu2 %v985_v61  ;;  %1038 = vmatmul.bf16.vlgmr.msra.gmra.mxu3 %v986_v62 }
  0xff   : > { %1103 = vmatpush.bf16.msrb.mxu0 %v4121_v31  ;;  %1116 = vmatpush.bf16.msrb.mxu1 %v4125_v40 }
 0x100   : > { %1129 = vmatpush.bf16.msrb.mxu2 %v4129_v41  ;;  %1142 = vmatpush.bf16.msrb.mxu3 %v4133_v44 }
 0x103   : > { %1104 = vmatpush.bf16.msrb.mxu0 %v4105_v50  ;;  %1117 = vmatpush.bf16.msrb.mxu1 %v4109_v56 }
 0x104   : > { %1130 = vmatpush.bf16.msrb.mxu2 %v4113_v57  ;;  %1143 = vmatpush.bf16.msrb.mxu3 %v4117_v49 }
 0x107   : > { %1165 = vmatpush.bf16.msra.mxu0 %v5197_v0  ;;  %1178 = vmatpush.bf16.msra.mxu1 %v5200_v1 }
 0x108   : > { %1191 = vmatpush.bf16.msra.mxu2 %v5203_v2  ;;  %1204 = vmatpush.bf16.msra.mxu3 %v5206_v3 }
 0x10b   : > { %1166 = vmatpush.bf16.msra.mxu0 %v5211_v4  ;;  %1179 = vmatpush.bf16.msra.mxu1 %v5214_v5 }
 0x10c   : > { %1192 = vmatpush.bf16.msra.mxu2 %v5219_v6  ;;  %1205 = vmatpush.bf16.msra.mxu3 %v5222_v7 }
 0x10f   : > { %1167 = vmatpush.bf16.msra.mxu0 %v5228_v8  ;;  %1180 = vmatpush.bf16.msra.mxu1 %v5231_v9 }
 0x110   : > { %1193 = vmatpush.bf16.msra.mxu2 %v5236_v10  ;;  %1206 = vmatpush.bf16.msra.mxu3 %v5239_v11 }
 0x113   : > { %1168 = vmatpush.bf16.msra.mxu0 %v5249_v12  ;;  %1181 = vmatpush.bf16.msra.mxu1 %v5252_v13 }
 0x114   : > { %1194 = vmatpush.bf16.msra.mxu2 %v5258_v15  ;;  %1207 = vmatpush.bf16.msra.mxu3 %v5261_v16 }
 0x117   : > { %1169 = vmatpush.bf16.msra.mxu0 %v5272_v17  ;;  %1182 = vmatpush.bf16.msra.mxu1 %v5275_v18 }
 0x118   : > { %1195 = vmatpush.bf16.msra.mxu2 %v5280_v19  ;;  %1208 = vmatpush.bf16.msra.mxu3 %v5283_v20 }
 0x11b   : > { %1170 = vmatpush.bf16.msra.mxu0 %v5288_v21  ;;  %1183 = vmatpush.bf16.msra.mxu1 %v5291_v22 }
 0x11c   : > { %1196 = vmatpush.bf16.msra.mxu2 %v5296_v23  ;;  %1209 = vmatpush.bf16.msra.mxu3 %v5299_v24 }
 0x11f   : > { %1171 = vmatpush.bf16.msra.mxu0 %v5302_v25  ;;  %1184 = vmatpush.bf16.msra.mxu1 %v5305_v26 }
 0x120   : > { %1197 = vmatpush.bf16.msra.mxu2 %v5308_v27  ;;  %1210 = vmatpush.bf16.msra.mxu3 %v5313_v28 }
 0x123   : > { %1172 = vmatpush.bf16.msra.mxu0 %v5321_v34  ;;  %1185 = vmatpush.bf16.msra.mxu1 %v5324_v35 }
 0x124   : > { %1198 = vmatpush.bf16.msra.mxu2 %v5329_v36  ;;  %1211 = vmatpush.bf16.msra.mxu3 %v5332_v37 }
 0x159   : > { %v841_v54 = vpop.f32.mrf.mxu0  ;;  %v854_v55 = vpop.f32.mrf.mxu1 }
 0x160   : > { %v867_v59 = vpop.f32.mrf.mxu2  ;;  %v880_v14 = vpop.f32.mrf.mxu3 }
 0x161   : > { %v843_v60 = vpop.f32.mrf.mxu0  ;;  %v856_v61 = vpop.f32.mrf.mxu1 }
 0x162   : > { %v1157_v60 = vld [vmem:[#allocation1] sm:$0xff]  ;;  %v1158_v61 = vld [vmem:[#allocation1 + $0x9] sm:$0xff] }
 0x168   : > { %v869_v62 = vpop.f32.mrf.mxu2  ;;  %v882_v63 = vpop.f32.mrf.mxu3 }
 0x169   : > { %v936_v29 = vpop.f32.mrf.mxu0  ;;  %v949_v30 = vpop.f32.mrf.mxu1  ;;  %v1159_v62 = vld [vmem:[#allocation1 + $0x12] sm:$0xff]  ;;  %v1160_v63 = vld [vmem:[#allocation1 + $0x1b] sm:$0xff] }
 0x16a   : > { %v5497_v31 = vadd.f32 %v936_v29, %v841_v54  ;;  %v5499_v32 = vadd.f32 %v949_v30, %v854_v55  ;;  %v4165_v29 = vld [vmem:[%s5374_s17 + $0xe0] sm:$0xf]  ;;  %v4918_v30 = vld [vmem:[%s5374_s17 + $0xec] sm:$0xf0] }
 0x170   : > { %v962_v39 = vpop.f32.mrf.mxu2  ;;  %v975_v40 = vpop.f32.mrf.mxu3 }
 0x171   : > { %v5508_v41 = vadd.f32 %v962_v39, %v867_v59  ;;  %v5510_v42 = vadd.f32 %v975_v40, %v880_v14  ;;  %v938_v43 = vpop.f32.mrf.mxu0  ;;  %v951_v44 = vpop.f32.mrf.mxu1  ;;  %v4166_v39 = vor.u32 %v4918_v30, %v4165_v29  ;;  %v4167_v40 = vld [vmem:[%s5374_s17 + $0xf0] sm:$0xf0] }
 0x172   : > { %v4173_v43 = vld [vmem:[%s5374_s17 + $0xe8] sm:$0xf]  ;;  %v4919_v44 = vld [vmem:[%s5374_s17 + $0xf4] sm:$0xf0] }
 0x178   : > { %v964_v46 = vpop.f32.mrf.mxu2  ;;  %v977_v47 = vpop.f32.mrf.mxu3 }
 0x179   : > { %v4170_v46 = vor.u32 %v4916_v33, %v4167_v40  ;;  %v4174_v47 = vor.u32 %v4919_v44, %v4173_v43 }
 0x17a   : > { %v1000_v48 = vpop.f32.mrf.mxu0  ;;  %v1013_v50 = vpop.f32.mrf.mxu1 }
 0x17b   : > { %v1001_v51 = vadd.f32 %v5417_v38, %v1000_v48  ;;  %v4917_v48 = vld [vmem:[%s5374_s17 + $0xec] sm:$0xf] }
 0x17d   : > { %v1014_v52 = vadd.f32 %v1013_v50, %v1001_v51  ;;  %v4175_v50 = vld [vmem:[%s5374_s17 + $0xf8] sm:$0xf0] }
 0x17e   : > { %v4178_v51 = vor.u32 %v4917_v48, %v4175_v50 }
 0x181   : > { %v1026_v53 = vpop.f32.mrf.mxu2  ;;  %v1039_v54 = vpop.f32.mrf.mxu3 }
 0x182   : > { %v1027_v55 = vadd.f32 %v1026_v53, %v1014_v52  ;;  %v1002_v56 = vpop.f32.mrf.mxu0  ;;  %v1015_v57 = vpop.f32.mrf.mxu1  ;;  %v4149_v52 = vld [vmem:[%s5374_s17 + $0xc0] sm:$0xf]  ;;  %v4914_v53 = vld [vmem:[%s5374_s17 + $0xcc] sm:$0xf0] }
 0x183   : > { %v4151_v56 = vld [vmem:[%s5374_s17 + $0xd0] sm:$0xf0]  ;;  %v4157_v57 = vld [vmem:[%s5374_s17 + $0xc8] sm:$0xf] }
 0x184   : > { %v1040_v58 = vadd.f32 %v1039_v54, %v1027_v55  ;;  %v4912_v54 = vld [vmem:[%s5374_s17 + $0xc4] sm:$0xf]  ;;  %v4150_v55 = vor.u32 %v4914_v53, %v4149_v52 }
 0x186   : > { %v1043_v45 = vmax.f32 %v1040_v58, 0.0  ;;  %v4915_v58 = vld [vmem:[%s5374_s17 + $0xd4] sm:$0xf0] }
 0x188   : > { %v1044_v49 = vpack.c.bf16 %v1043_v45, %v1043_v45  ;;  %v4154_v45 = vor.u32 %v4912_v54, %v4151_v56 }
 0x189   : > { %v1028_v59 = vpop.f32.mrf.mxu2  ;;  %v1041_v14 = vpop.f32.mrf.mxu3 }
 0x18a   : > { %4134 = vmatmul.msk.bf16.vlgmr.msrb.gmra.mxu0 %vm828_vm0, %v1044_v49  ;;  %4135 = vmatmul.msk.bf16.vlgmr.msrb.gmra.mxu1 %vm828_vm0, %v1044_v49  ;;  %v4913_v59 = vld [vmem:[%s5374_s17 + $0xcc] sm:$0xf]  ;;  %v4159_v14 = vld [vmem:[%s5374_s17 + $0xd8] sm:$0xf0] }
 0x18b   : > { %4136 = vmatmul.msk.bf16.vlgmr.msrb.gmra.mxu2 %vm828_vm0, %v1044_v49  ;;  %4137 = vmatmul.msk.bf16.vlgmr.msrb.gmra.mxu3 %vm828_vm0, %v1044_v49  ;;  %v4158_v49 = vor.u32 %v4915_v58, %v4157_v57  ;;  %v4210_v58 = vld [vmem:[%s5374_s17 + $0x120] sm:$0xf] }
 0x18c   : > { %1277 = vmatpush.bf16.msrb.mxu0 %v4166_v39  ;;  %1290 = vmatpush.bf16.msrb.mxu1 %v4170_v46 }
 0x18d   : > { %1303 = vmatpush.bf16.msrb.mxu2 %v4174_v47  ;;  %1316 = vmatpush.bf16.msrb.mxu3 %v4178_v51 }
 0x190   : > { %1278 = vmatpush.bf16.msrb.mxu0 %v4150_v55  ;;  %1291 = vmatpush.bf16.msrb.mxu1 %v4154_v45  ;;  %v4926_v45 = vld [vmem:[%s5374_s17 + $0x12c] sm:$0xf0] }
 0x191   : > { %1304 = vmatpush.bf16.msrb.mxu2 %v4158_v49  ;;  %v4924_v49 = vld [vmem:[%s5374_s17 + $0x124] sm:$0xf] }
 0x19a   : > { %1173 = vmatmul.bf16.vlgmr.msra.gmra.mxu0 %v1157_v60  ;;  %1186 = vmatmul.bf16.vlgmr.msra.gmra.mxu1 %v1158_v61  ;;  %v4162_v60 = vor.u32 %v4913_v59, %v4159_v14  ;;  %v4211_v59 = vor.u32 %v4926_v45, %v4210_v58  ;;  %v4212_v14 = vld [vmem:[%s5374_s17 + $0x130] sm:$0xf0]  ;;  %v4934_v58 = vld [vmem:[%s5374_s17 + $0x16c] sm:$0xf0]  ;;  %v4932_v45 = vld [vmem:[%s5374_s17 + $0x164] sm:$0xf] }
 0x19b   : > { %1199 = vmatmul.bf16.vlgmr.msra.gmra.mxu2 %v1159_v62  ;;  %1212 = vmatmul.bf16.vlgmr.msra.gmra.mxu3 %v1160_v63 }
 0x19c   : > { %1317 = vmatpush.bf16.msrb.mxu3 %v4162_v60  ;;  %1339 = vmatpush.bf16.msra.mxu0 %v5197_v0  ;;  %v4218_v60 = vld [vmem:[%s5374_s17 + $0x128] sm:$0xf] }
 0x19d   : > { %1352 = vmatpush.bf16.msra.mxu1 %v5200_v1  ;;  %1365 = vmatpush.bf16.msra.mxu2 %v5203_v2 }
 0x1a0   : > { %1378 = vmatpush.bf16.msra.mxu3 %v5206_v3  ;;  %1340 = vmatpush.bf16.msra.mxu0 %v5211_v4  ;;  %v4183_v4 = vld [vmem:[%s5244_s10 + $0x10] sm:$0xf] }
 0x1a1   : > { %1353 = vmatpush.bf16.msra.mxu1 %v5214_v5  ;;  %1366 = vmatpush.bf16.msra.mxu2 %v5219_v6  ;;  %1330 = vst [vmem:[#allocation1] ss:$9 sm:$0xff] %v4183_v4 }
 0x1a4   : > { %1379 = vmatpush.bf16.msra.mxu3 %v5222_v7  ;;  %1341 = vmatpush.bf16.msra.mxu0 %v5228_v8 }
 0x1a5   : > { %1354 = vmatpush.bf16.msra.mxu1 %v5231_v9  ;;  %1367 = vmatpush.bf16.msra.mxu2 %v5236_v10 }
 0x1a8   : > { %1380 = vmatpush.bf16.msra.mxu3 %v5239_v11  ;;  %1342 = vmatpush.bf16.msra.mxu0 %v5249_v12  ;;  %v1331_v54 = vld [vmem:[#allocation1] sm:$0xff]  ;;  %v1332_v55 = vld [vmem:[#allocation1 + $0x9] sm:$0xff]  ;;  %v1333_v56 = vld [vmem:[#allocation1 + $0x12] sm:$0xff] }
 0x1a9   : > { %1355 = vmatpush.bf16.msra.mxu1 %v5252_v13  ;;  %1368 = vmatpush.bf16.msra.mxu2 %v5258_v15  ;;  %v1334_v57 = vld [vmem:[#allocation1 + $0x1b] sm:$0xff] }
 0x1ac   : > { %1381 = vmatpush.bf16.msra.mxu3 %v5261_v16  ;;  %1343 = vmatpush.bf16.msra.mxu0 %v5272_v17 }
 0x1ad   : > { %1356 = vmatpush.bf16.msra.mxu1 %v5275_v18  ;;  %1369 = vmatpush.bf16.msra.mxu2 %v5280_v19 }
 0x1b0   : > { %1382 = vmatpush.bf16.msra.mxu3 %v5283_v20  ;;  %1344 = vmatpush.bf16.msra.mxu0 %v5288_v21 }
 0x1b1   : > { %1357 = vmatpush.bf16.msra.mxu1 %v5291_v22  ;;  %1370 = vmatpush.bf16.msra.mxu2 %v5296_v23 }
 0x1b4   : > { %1383 = vmatpush.bf16.msra.mxu3 %v5299_v24  ;;  %1345 = vmatpush.bf16.msra.mxu0 %v5302_v25 }
 0x1b5   : > { %1358 = vmatpush.bf16.msra.mxu1 %v5305_v26  ;;  %1371 = vmatpush.bf16.msra.mxu2 %v5308_v27 }
 0x1b8   : > { %1384 = vmatpush.bf16.msra.mxu3 %v5313_v28  ;;  %1346 = vmatpush.bf16.msra.mxu0 %v5321_v34 }
 0x1b9   : > { %1359 = vmatpush.bf16.msra.mxu1 %v5324_v35  ;;  %1372 = vmatpush.bf16.msra.mxu2 %v5329_v36 }
 0x1bc   : > { %1385 = vmatpush.bf16.msra.mxu3 %v5332_v37 }
 0x207   : > { %v1106_v0 = vpop.f32.mrf.mxu0  ;;  %v1119_v1 = vpop.f32.mrf.mxu1 }
 0x208   : > { %v5561_v2 = vadd.f32 %v1106_v0, %v5497_v31  ;;  %v5564_v3 = vadd.f32 %v1119_v1, %v5499_v32  ;;  %v4927_v0 = vld [vmem:[%s5374_s17 + $0x134] sm:$0xf0]  ;;  %v4215_v1 = vor.u32 %v4924_v49, %v4212_v14  ;;  %v4263_v14 = vld [vmem:[%s5374_s17 + $0x168] sm:$0xf] }
 0x209   : > { %v4219_v4 = vor.u32 %v4927_v0, %v4218_v60  ;;  %v4935_v60 = vld [vmem:[%s5374_s17 + $0x174] sm:$0xf0] }
 0x20e   : > { %v1132_v5 = vpop.f32.mrf.mxu2  ;;  %v1145_v61 = vpop.f32.mrf.mxu3 }
 0x20f   : > { %v5575_v31 = vadd.f32 %v1132_v5, %v5508_v41  ;;  %v5578_v32 = vadd.f32 %v1145_v61, %v5510_v42  ;;  %v1108_v62 = vpop.f32.mrf.mxu0  ;;  %v1121_v63 = vpop.f32.mrf.mxu1  ;;  %v4925_v5 = vld [vmem:[%s5374_s17 + $0x12c] sm:$0xf]  ;;  %v4220_v61 = vld [vmem:[%s5374_s17 + $0x138] sm:$0xf0] }
 0x210   : > { %v4223_v62 = vor.u32 %v4925_v5, %v4220_v61  ;;  %v4194_v63 = vld [vmem:[%s5374_s17 + $0x100] sm:$0xf]  ;;  %v4265_v5 = vld [vmem:[%s5374_s17 + $0x178] sm:$0xf0] }
 0x216   : > { %v1134_v29 = vpop.f32.mrf.mxu2  ;;  %v1147_v41 = vpop.f32.mrf.mxu3 }
 0x217   : > { %v1174_v42 = vpop.f32.mrf.mxu0  ;;  %v1187_v30 = vpop.f32.mrf.mxu1  ;;  %v4922_v29 = vld [vmem:[%s5374_s17 + $0x10c] sm:$0xf0]  ;;  %v4920_v41 = vld [vmem:[%s5374_s17 + $0x104] sm:$0xf] }
 0x218   : > { %v1175_v33 = vadd.f32 %v5417_v38, %v1174_v42  ;;  %v4195_v42 = vor.u32 %v4922_v29, %v4194_v63  ;;  %v4930_v63 = vld [vmem:[%s5374_s17 + $0x14c] sm:$0xf0]  ;;  %v4928_v29 = vld [vmem:[%s5374_s17 + $0x144] sm:$0xf] }
 0x21a   : > { %v1188_v39 = vadd.f32 %v1187_v30, %v1175_v33  ;;  %v4196_v30 = vld [vmem:[%s5374_s17 + $0x110] sm:$0xf0]  ;;  %v4202_v33 = vld [vmem:[%s5374_s17 + $0x108] sm:$0xf] }
 0x21e   : > { %v1200_v40 = vpop.f32.mrf.mxu2  ;;  %v1213_v43 = vpop.f32.mrf.mxu3 }
 0x21f   : > { %v1201_v44 = vadd.f32 %v1200_v40, %v1188_v39  ;;  %v1176_v46 = vpop.f32.mrf.mxu0  ;;  %v1189_v47 = vpop.f32.mrf.mxu1  ;;  %v4923_v39 = vld [vmem:[%s5374_s17 + $0x114] sm:$0xf0]  ;;  %v4199_v40 = vor.u32 %v4920_v41, %v4196_v30  ;;  %v4247_v30 = vld [vmem:[%s5374_s17 + $0x148] sm:$0xf] }
 0x220   : > { %v4204_v46 = vld [vmem:[%s5374_s17 + $0x118] sm:$0xf0] }
 0x221   : > { %v1214_v48 = vadd.f32 %v1213_v43, %v1201_v44  ;;  %v4203_v43 = vor.u32 %v4923_v39, %v4202_v33  ;;  %v4921_v44 = vld [vmem:[%s5374_s17 + $0x10c] sm:$0xf]  ;;  %v4931_v33 = vld [vmem:[%s5374_s17 + $0x154] sm:$0xf0] }
 0x222   : > { %v4207_v47 = vor.u32 %v4921_v44, %v4204_v46  ;;  %v4249_v44 = vld [vmem:[%s5374_s17 + $0x158] sm:$0xf0] }
 0x223   : > { %v1217_v50 = vmax.f32 %v1214_v48, 0.0  ;;  %v5611_v48 = vld [vmem:[%s5194_s29 + $0x38] sm:$0xff] }
 0x225   : > { %v1218_v51 = vpack.c.bf16 %v1217_v50, %v1217_v50  ;;  %v5615_v50 = vld [vmem:[%s5194_s29 + $0x78] sm:$0xff] }
 0x226   : > { %v1202_v52 = vpop.f32.mrf.mxu2  ;;  %v1215_v53 = vpop.f32.mrf.mxu3 }
 0x227   : > { %4179 = vmatmul.msk.bf16.vlgmr.msrb.gmra.mxu0 %vm828_vm0, %v1218_v51  ;;  %4180 = vmatmul.msk.bf16.vlgmr.msrb.gmra.mxu1 %vm828_vm0, %v1218_v51  ;;  %v5623_v52 = vld [vmem:[%s5194_s29 + $0xf8] sm:$0xff]  ;;  %v5627_v53 = vld [vmem:[%s5194_s29 + $0x30] sm:$0xff] }
 0x228   : > { %4181 = vmatmul.msk.bf16.vlgmr.msrb.gmra.mxu2 %vm828_vm0, %v1218_v51  ;;  %4182 = vmatmul.msk.bf16.vlgmr.msrb.gmra.mxu3 %vm828_vm0, %v1218_v51  ;;  %v5619_v51 = vld [vmem:[%s5194_s29 + $0xb8] sm:$0xff] }
 0x229   : > { %1451 = vmatpush.bf16.msrb.mxu0 %v4211_v59  ;;  %1464 = vmatpush.bf16.msrb.mxu1 %v4215_v1  ;;  %v4257_v59 = vld [vmem:[%s5374_s17 + $0x170] sm:$0xf0]  ;;  %v4264_v1 = vor.u32 %v4935_v60, %v4263_v14 }
 0x22a   : > { %1477 = vmatpush.bf16.msrb.mxu2 %v4219_v4  ;;  %1490 = vmatpush.bf16.msrb.mxu3 %v4223_v62  ;;  %v4260_v0 = vor.u32 %v4932_v45, %v4257_v59  ;;  %v4933_v4 = vld [vmem:[%s5374_s17 + $0x16c] sm:$0xf]  ;;  %v4239_v62 = vld [vmem:[%s5374_s17 + $0x140] sm:$0xf] }
 0x22b   : > { %v4268_v61 = vor.u32 %v4933_v4, %v4265_v5  ;;  %v4240_v41 = vor.u32 %v4930_v63, %v4239_v62  ;;  %v5811_v59 = vld [vmem:[%s5194_s29 + $0x80] sm:$0xff] }
 0x22d   : > { %1452 = vmatpush.bf16.msrb.mxu0 %v4195_v42  ;;  %1465 = vmatpush.bf16.msrb.mxu1 %v4199_v40  ;;  %v4241_v42 = vld [vmem:[%s5374_s17 + $0x150] sm:$0xf0]  ;;  %v4248_v40 = vor.u32 %v4931_v33, %v4247_v30 }
 0x22e   : > { %1478 = vmatpush.bf16.msrb.mxu2 %v4203_v43  ;;  %1491 = vmatpush.bf16.msrb.mxu3 %v4207_v47  ;;  %v4244_v39 = vor.u32 %v4928_v29, %v4241_v42  ;;  %v4929_v43 = vld [vmem:[%s5374_s17 + $0x14c] sm:$0xf]  ;;  %v5702_v47 = vld [vmem:[%s5194_s29 + $0xb0] sm:$0xff] }
 0x22f   : > { %v4252_v46 = vor.u32 %v4929_v43, %v4249_v44 }
 0x237   : > { %1347 = vmatmul.bf16.vlgmr.msra.gmra.mxu0 %v1331_v54  ;;  %1360 = vmatmul.bf16.vlgmr.msra.gmra.mxu1 %v1332_v55  ;;  %v5631_v54 = vld [vmem:[%s5194_s29 + $0x70] sm:$0xff] }
 0x238   : > { %1373 = vmatmul.bf16.vlgmr.msra.gmra.mxu2 %v1333_v56  ;;  %1386 = vmatmul.bf16.vlgmr.msra.gmra.mxu3 %v1334_v57  ;;  %v4255_v57 = vld [vmem:[%s5374_s17 + $0x160] sm:$0xf] }
 0x239   : > { %1513 = vmatpush.bf16.msra.mxu0 %v5611_v48  ;;  %1526 = vmatpush.bf16.msra.mxu1 %v5615_v50  ;;  %v4256_v49 = vor.u32 %v4934_v58, %v4255_v57  ;;  %v5803_v57 = vld [vmem:[%s5194_s29] sm:$0xff] }
 0x23a   : > { %1539 = vmatpush.bf16.msra.mxu2 %v5619_v51  ;;  %1552 = vmatpush.bf16.msra.mxu3 %v5623_v52 }
 0x23d   : > { %1514 = vmatpush.bf16.msra.mxu0 %v5627_v53  ;;  %1527 = vmatpush.bf16.msra.mxu1 %v5631_v54 }
 0x23e   : > { %1540 = vmatpush.bf16.msra.mxu2 %v5219_v6  ;;  %1553 = vmatpush.bf16.msra.mxu3 %v5222_v7 }
 0x241   : > { %1515 = vmatpush.bf16.msra.mxu0 %v5228_v8  ;;  %1528 = vmatpush.bf16.msra.mxu1 %v5231_v9  ;;  %v4228_v8 = vld [vmem:[%s5244_s10 + $0x14] sm:$0xf] }
 0x242   : > { %1541 = vmatpush.bf16.msra.mxu2 %v5236_v10  ;;  %1554 = vmatpush.bf16.msra.mxu3 %v5239_v11  ;;  %1504 = vst [vmem:[#allocation1] ss:$9 sm:$0xff] %v4228_v8  ;;  %v5714_v8 = vld [vmem:[%s5194_s29 + $0x68] sm:$0xff] }
 0x245   : > { %1516 = vmatpush.bf16.msra.mxu0 %v5249_v12  ;;  %1529 = vmatpush.bf16.msra.mxu1 %v5252_v13 }
 0x246   : > { %1542 = vmatpush.bf16.msra.mxu2 %v5258_v15  ;;  %1555 = vmatpush.bf16.msra.mxu3 %v5261_v16  ;;  %v4273_v16 = vld [vmem:[%s5244_s10 + $0x18] sm:$0xf] }
 0x249   : > { %1517 = vmatpush.bf16.msra.mxu0 %v5272_v17  ;;  %1530 = vmatpush.bf16.msra.mxu1 %v5275_v18 }
 0x24a   : > { %1543 = vmatpush.bf16.msra.mxu2 %v5280_v19  ;;  %1556 = vmatpush.bf16.msra.mxu3 %v5283_v20  ;;  %v1505_v19 = vld [vmem:[#allocation1] sm:$0xff] }
 0x24d   : > { %1518 = vmatpush.bf16.msra.mxu0 %v5288_v21  ;;  %1531 = vmatpush.bf16.msra.mxu1 %v5291_v22  ;;  %v1506_v22 = vld [vmem:[#allocation1 + $0x9] sm:$0xff] }
 0x24e   : > { %1544 = vmatpush.bf16.msra.mxu2 %v5296_v23  ;;  %1557 = vmatpush.bf16.msra.mxu3 %v5299_v24  ;;  %v1507_v23 = vld [vmem:[#allocation1 + $0x12] sm:$0xff]  ;;  %v1508_v24 = vld [vmem:[#allocation1 + $0x1b] sm:$0xff] }
 0x24f   : > { %1678 = vst [vmem:[#allocation1] ss:$9 sm:$0xff] %v4273_v16  ;;  %v5734_v16 = vld [vmem:[%s5194_s29 + $0xa0] sm:$0xff] }
 0x251   : > { %1519 = vmatpush.bf16.msra.mxu0 %v5302_v25  ;;  %1532 = vmatpush.bf16.msra.mxu1 %v5305_v26 }
 0x252   : > { %1545 = vmatpush.bf16.msra.mxu2 %v5308_v27  ;;  %1558 = vmatpush.bf16.msra.mxu3 %v5313_v28 }
 0x255   : > { %1520 = vmatpush.bf16.msra.mxu0 %v5321_v34  ;;  %1533 = vmatpush.bf16.msra.mxu1 %v5324_v35 }
 0x256   : > { %1546 = vmatpush.bf16.msra.mxu2 %v5329_v36  ;;  %1559 = vmatpush.bf16.msra.mxu3 %v5332_v37  ;;  %v1679_v14 = vld [vmem:[#allocation1] sm:$0xff]  ;;  %v1680_v4 = vld [vmem:[#allocation1 + $0x9] sm:$0xff]  ;;  %v1681_v5 = vld [vmem:[#allocation1 + $0x12] sm:$0xff] }
 0x2a4   : > { %v1280_v55 = vpop.f32.mrf.mxu0  ;;  %v1293_v56 = vpop.f32.mrf.mxu1 }
 0x2a5   : > { %v5645_v6 = vadd.f32 %v1280_v55, %v5561_v2  ;;  %v5648_v7 = vadd.f32 %v1293_v56, %v5564_v3  ;;  %v5706_v55 = vld [vmem:[%s5194_s29 + $0xf0] sm:$0xff]  ;;  %v5710_v56 = vld [vmem:[%s5194_s29 + $0x28] sm:$0xff] }
 0x2ab   : > { %v1306_v9 = vpop.f32.mrf.mxu2  ;;  %v1319_v10 = vpop.f32.mrf.mxu3 }
 0x2ac   : > { %v5659_v11 = vadd.f32 %v1306_v9, %v5575_v31  ;;  %v5662_v12 = vadd.f32 %v1319_v10, %v5578_v32  ;;  %v1282_v13 = vpop.f32.mrf.mxu0  ;;  %v1295_v15 = vpop.f32.mrf.mxu1  ;;  %v5718_v9 = vld [vmem:[%s5194_s29 + $0xa8] sm:$0xff] }
 0x2ad   : > { %v5722_v10 = vld [vmem:[%s5194_s29 + $0xe8] sm:$0xff]  ;;  %v5726_v13 = vld [vmem:[%s5194_s29 + $0x20] sm:$0xff] }
 0x2ae   : > { %v5730_v15 = vld [vmem:[%s5194_s29 + $0x60] sm:$0xff] }
 0x2b3   : > { %v1308_v17 = vpop.f32.mrf.mxu2  ;;  %v1321_v18 = vpop.f32.mrf.mxu3 }
 0x2b4   : > { %v1348_v20 = vpop.f32.mrf.mxu0  ;;  %v1361_v21 = vpop.f32.mrf.mxu1 }
 0x2b5   : > { %v1349_v25 = vadd.f32 %v5417_v38, %v1348_v20 }
 0x2b7   : > { %v1362_v26 = vadd.f32 %v1361_v21, %v1349_v25  ;;  %v5760_v25 = vld [vmem:[%s5194_s29 + $0xd8] sm:$0xff] }
 0x2bb   : > { %v1374_v27 = vpop.f32.mrf.mxu2  ;;  %v1387_v28 = vpop.f32.mrf.mxu3 }
 0x2bc   : > { %v1375_v34 = vadd.f32 %v1374_v27, %v1362_v26  ;;  %v1350_v2 = vpop.f32.mrf.mxu0  ;;  %v1363_v35 = vpop.f32.mrf.mxu1  ;;  %v5768_v27 = vld [vmem:[%s5194_s29 + $0x50] sm:$0xff] }
 0x2be   : > { %v1388_v36 = vadd.f32 %v1387_v28, %v1375_v34  ;;  %v5772_v28 = vld [vmem:[%s5194_s29 + $0x90] sm:$0xff] }
 0x2c0   : > { %v1391_v3 = vmax.f32 %v1388_v36, 0.0 }
 0x2c2   : > { %v1392_v31 = vpack.c.bf16 %v1391_v3, %v1391_v3  ;;  %v5782_v3 = vld [vmem:[%s5194_s29 + $0xd0] sm:$0xff] }
 0x2c3   : > { %v1376_v37 = vpop.f32.mrf.mxu2  ;;  %v1389_v32 = vpop.f32.mrf.mxu3 }
 0x2c4   : > { %4224 = vmatmul.msk.bf16.vlgmr.msrb.gmra.mxu0 %vm828_vm0, %v1392_v31  ;;  %4225 = vmatmul.msk.bf16.vlgmr.msrb.gmra.mxu1 %vm828_vm0, %v1392_v31  ;;  %v5790_v37 = vld [vmem:[%s5194_s29 + $0x48] sm:$0xff]  ;;  %v4318_v32 = vld [vmem:[%s5244_s10 + $0x1c] sm:$0xf] }
 0x2c5   : > { %4226 = vmatmul.msk.bf16.vlgmr.msrb.gmra.mxu2 %vm828_vm0, %v1392_v31  ;;  %4227 = vmatmul.msk.bf16.vlgmr.msrb.gmra.mxu3 %vm828_vm0, %v1392_v31  ;;  %v5786_v31 = vld [vmem:[%s5194_s29 + $0x8] sm:$0xff] }
 0x2c6   : > { %1625 = vmatpush.bf16.msrb.mxu0 %v4256_v49  ;;  %1638 = vmatpush.bf16.msrb.mxu1 %v4260_v0  ;;  %v5807_v49 = vld [vmem:[%s5194_s29 + $0x40] sm:$0xff] }
 0x2c7   : > { %1651 = vmatpush.bf16.msrb.mxu2 %v4264_v1  ;;  %1664 = vmatpush.bf16.msrb.mxu3 %v4268_v61  ;;  %v5815_v1 = vld [vmem:[%s5194_s29 + $0xc0] sm:$0xff] }
 0x2c8   : > { %v1682_v61 = vld [vmem:[#allocation1 + $0x1b] sm:$0xff] }
 0x2c9   : > { %1852 = vst [vmem:[#allocation1] ss:$9 sm:$0xff] %v4318_v32 }
 0x2ca   : > { %1626 = vmatpush.bf16.msrb.mxu0 %v4240_v41  ;;  %1639 = vmatpush.bf16.msrb.mxu1 %v4244_v39 }
 0x2cb   : > { %1652 = vmatpush.bf16.msrb.mxu2 %v4248_v40  ;;  %1665 = vmatpush.bf16.msrb.mxu3 %v4252_v46 }
 0x2d4   : > { %1521 = vmatmul.bf16.vlgmr.msra.gmra.mxu0 %v1505_v19  ;;  %1534 = vmatmul.bf16.vlgmr.msra.gmra.mxu1 %v1506_v22  ;;  %v5738_v19 = vld [vmem:[%s5194_s29 + $0xe0] sm:$0xff]  ;;  %v5748_v22 = vld [vmem:[%s5194_s29 + $0x18] sm:$0xff] }
 0x2d5   : > { %1547 = vmatmul.bf16.vlgmr.msra.gmra.mxu2 %v1507_v23  ;;  %1560 = vmatmul.bf16.vlgmr.msra.gmra.mxu3 %v1508_v24  ;;  %v5752_v23 = vld [vmem:[%s5194_s29 + $0x58] sm:$0xff] }
 0x2d6   : > { %1687 = vmatpush.bf16.msra.mxu0 %v5611_v48  ;;  %1700 = vmatpush.bf16.msra.mxu1 %v5615_v50  ;;  %v5756_v24 = vld [vmem:[%s5194_s29 + $0x98] sm:$0xff] }
 0x2d7   : > { %1713 = vmatpush.bf16.msra.mxu2 %v5619_v51  ;;  %1726 = vmatpush.bf16.msra.mxu3 %v5623_v52 }
 0x2da   : > { %1688 = vmatpush.bf16.msra.mxu0 %v5627_v53  ;;  %1701 = vmatpush.bf16.msra.mxu1 %v5631_v54 }
 0x2db   : > { %1714 = vmatpush.bf16.msra.mxu2 %v5702_v47  ;;  %1727 = vmatpush.bf16.msra.mxu3 %v5706_v55 }
 0x2de   : > { %1689 = vmatpush.bf16.msra.mxu0 %v5710_v56  ;;  %1702 = vmatpush.bf16.msra.mxu1 %v5714_v8 }
 0x2df   : > { %1715 = vmatpush.bf16.msra.mxu2 %v5718_v9  ;;  %1728 = vmatpush.bf16.msra.mxu3 %v5722_v10 }
 0x2e2   : > { %1690 = vmatpush.bf16.msra.mxu0 %v5726_v13  ;;  %1703 = vmatpush.bf16.msra.mxu1 %v5730_v15 }
 0x2e3   : > { %1716 = vmatpush.bf16.msra.mxu2 %v5734_v16  ;;  %1729 = vmatpush.bf16.msra.mxu3 %v5738_v19 }
 0x2e6   : > { %1691 = vmatpush.bf16.msra.mxu0 %v5748_v22  ;;  %1704 = vmatpush.bf16.msra.mxu1 %v5752_v23 }
 0x2e7   : > { %1717 = vmatpush.bf16.msra.mxu2 %v5756_v24  ;;  %1730 = vmatpush.bf16.msra.mxu3 %v5760_v25 }
 0x2ea   : > { %1705 = vmatpush.bf16.msra.mxu1 %v5768_v27 }
 0x2eb   : > { %1718 = vmatpush.bf16.msra.mxu2 %v5772_v28  ;;  %1731 = vmatpush.bf16.msra.mxu3 %v5782_v3 }
 0x2ee   : > { %1706 = vmatpush.bf16.msra.mxu1 %v5790_v37 }
 0x2f2   : > { %1707 = vmatpush.bf16.msra.mxu1 %v5807_v49 }
 0x341   : > { %v1454_v17 = vpop.f32.mrf.mxu0  ;;  %v1467_v18 = vpop.f32.mrf.mxu1 }
 0x342   : > { %v5742_v20 = vadd.f32 %v1454_v17, %v5645_v6  ;;  %v5745_v21 = vadd.f32 %v1467_v18, %v5648_v7  ;;  %v5764_v6 = vld [vmem:[%s5194_s29 + $0x10] sm:$0xff]  ;;  %v4940_v18 = vld [vmem:[%s5374_s17 + $0x1a4] sm:$0xf] }
 0x343   : > { %1692 = vmatpush.bf16.msra.mxu0 %v5764_v6  ;;  %v4942_v17 = vld [vmem:[%s5374_s17 + $0x1ac] sm:$0xf0] }
 0x347   : > { %1693 = vmatpush.bf16.msra.mxu0 %v5786_v31 }
 0x348   : > { %v1480_v7 = vpop.f32.mrf.mxu2  ;;  %v1493_v26 = vpop.f32.mrf.mxu3 }
 0x349   : > { %v5776_v34 = vadd.f32 %v1480_v7, %v5659_v11  ;;  %v5779_v2 = vadd.f32 %v1493_v26, %v5662_v12  ;;  %v1456_v35 = vpop.f32.mrf.mxu0  ;;  %v1469_v36 = vpop.f32.mrf.mxu1  ;;  %v5794_v11 = vld [vmem:[%s5194_s29 + $0x88] sm:$0xff]  ;;  %v4302_v26 = vld [vmem:[%s5374_s17 + $0x1b0] sm:$0xf0] }
 0x34a   : > { %1719 = vmatpush.bf16.msra.mxu2 %v5794_v11  ;;  %v5798_v12 = vld [vmem:[%s5194_s29 + $0xc8] sm:$0xff]  ;;  %v4943_v36 = vld [vmem:[%s5374_s17 + $0x1b4] sm:$0xf0]  ;;  %v4305_v32 = vor.u32 %v4940_v18, %v4302_v26  ;;  %v4363_v26 = vld [vmem:[%s5244_s10 + $0x20] sm:$0xf] }
 0x34b   : > { %1732 = vmatpush.bf16.msra.mxu3 %v5798_v12  ;;  %1694 = vmatpush.bf16.msra.mxu0 %v5803_v57  ;;  %v4308_v35 = vld [vmem:[%s5374_s17 + $0x1a8] sm:$0xf] }
 0x34e   : > { %1720 = vmatpush.bf16.msra.mxu2 %v5811_v59 }
 0x34f   : > { %1733 = vmatpush.bf16.msra.mxu3 %v5815_v1 }
 0x350   : > { %v1482_v58 = vpop.f32.mrf.mxu2  ;;  %v1495_v45 = vpop.f32.mrf.mxu3 }
 0x351   : > { %v1522_v60 = vpop.f32.mrf.mxu0  ;;  %v1535_v0 = vpop.f32.mrf.mxu1  ;;  %v4309_v58 = vor.u32 %v4943_v36, %v4308_v35  ;;  %v4941_v45 = vld [vmem:[%s5374_s17 + $0x1ac] sm:$0xf] }
 0x352   : > { %v1523_v62 = vadd.f32 %v5417_v38, %v1522_v60  ;;  %v4300_v38 = vld [vmem:[%s5374_s17 + $0x1a0] sm:$0xf] }
 0x353   : > { %v4301_v7 = vor.u32 %v4942_v17, %v4300_v38 }
 0x354   : > { %v1536_v63 = vadd.f32 %v1535_v0, %v1523_v62  ;;  %v4284_v0 = vld [vmem:[%s5374_s17 + $0x180] sm:$0xf]  ;;  %v4286_v62 = vld [vmem:[%s5374_s17 + $0x190] sm:$0xf0] }
 0x358   : > { %v1548_v29 = vpop.f32.mrf.mxu2  ;;  %v1561_v41 = vpop.f32.mrf.mxu3 }
 0x359   : > { %v1549_v42 = vadd.f32 %v1548_v29, %v1536_v63  ;;  %v1524_v30 = vpop.f32.mrf.mxu0  ;;  %v1537_v33 = vpop.f32.mrf.mxu1  ;;  %v4292_v63 = vld [vmem:[%s5374_s17 + $0x188] sm:$0xf]  ;;  %v4939_v29 = vld [vmem:[%s5374_s17 + $0x194] sm:$0xf0] }
 0x35a   : > { %v4937_v30 = vld [vmem:[%s5374_s17 + $0x18c] sm:$0xf]  ;;  %v4294_v33 = vld [vmem:[%s5374_s17 + $0x198] sm:$0xf0] }
 0x35b   : > { %v1562_v39 = vadd.f32 %v1561_v41, %v1549_v42  ;;  %v4293_v42 = vor.u32 %v4939_v29, %v4292_v63 }
 0x35d   : > { %v1565_v40 = vmax.f32 %v1562_v39, 0.0  ;;  %v4297_v39 = vor.u32 %v4937_v30, %v4294_v33 }
 0x35f   : > { %v1566_v43 = vpack.c.bf16 %v1565_v40, %v1565_v40 }
 0x360   : > { %v1550_v44 = vpop.f32.mrf.mxu2  ;;  %v1563_v46 = vpop.f32.mrf.mxu3 }
 0x361   : > { %4269 = vmatmul.msk.bf16.vlgmr.msrb.gmra.mxu0 %vm828_vm0, %v1566_v43  ;;  %4270 = vmatmul.msk.bf16.vlgmr.msrb.gmra.mxu1 %vm828_vm0, %v1566_v43 }
 0x362   : > { %4271 = vmatmul.msk.bf16.vlgmr.msrb.gmra.mxu2 %vm828_vm0, %v1566_v43  ;;  %4272 = vmatmul.msk.bf16.vlgmr.msrb.gmra.mxu3 %vm828_vm0, %v1566_v43 }
 0x363   : > { %1799 = vmatpush.bf16.msrb.mxu0 %v4301_v7  ;;  %1812 = vmatpush.bf16.msrb.mxu1 %v4305_v32 }
 0x364   : > { %1825 = vmatpush.bf16.msrb.mxu2 %v4309_v58  ;;  %v1854_v58 = vld [vmem:[#allocation1 + $0x9] sm:$0xff] }
 0x368   : > { %1826 = vmatpush.bf16.msrb.mxu2 %v4293_v42 }
 0x371   : > { %1695 = vmatmul.bf16.vlgmr.msra.gmra.mxu0 %v1679_v14  ;;  %1708 = vmatmul.bf16.vlgmr.msra.gmra.mxu1 %v1680_v4  ;;  %v4310_v14 = vld [vmem:[%s5374_s17 + $0x1b8] sm:$0xf0]  ;;  %v4938_v4 = vld [vmem:[%s5374_s17 + $0x18c] sm:$0xf0] }
 0x372   : > { %1721 = vmatmul.bf16.vlgmr.msra.gmra.mxu2 %v1681_v5  ;;  %1734 = vmatmul.bf16.vlgmr.msra.gmra.mxu3 %v1682_v61  ;;  %v4313_v60 = vor.u32 %v4941_v45, %v4310_v14  ;;  %v4936_v5 = vld [vmem:[%s5374_s17 + $0x184] sm:$0xf]  ;;  %v4285_v61 = vor.u32 %v4938_v4, %v4284_v0  ;;  %v1855_v45 = vld [vmem:[#allocation1 + $0x12] sm:$0xff]  ;;  %v1856_v14 = vld [vmem:[#allocation1 + $0x1b] sm:$0xff] }
 0x373   : > { %v4289_v41 = vor.u32 %v4936_v5, %v4286_v62  ;;  %1887 = vmatpush.bf16.msra.mxu2 %v5619_v51 }
 0x374   : > { %1838 = vmatpush.bf16.msrb.mxu3 %v4313_v60  ;;  %1800 = vmatpush.bf16.msrb.mxu0 %v4285_v61  ;;  %v5885_v60 = vld [vmem:[%s5267_s13] ss:$0 sm:$0xff] }
 0x375   : > { %1813 = vmatpush.bf16.msrb.mxu1 %v4289_v41 }
 0x377   : > { %1888 = vmatpush.bf16.msra.mxu2 %v5702_v47 }
 0x378   : > { %1839 = vmatpush.bf16.msrb.mxu3 %v4297_v39  ;;  %1861 = vmatpush.bf16.msra.mxu0 %v5611_v48 }
 0x379   : > { %1874 = vmatpush.bf16.msra.mxu1 %v5615_v50 }
 0x37b   : > { %1889 = vmatpush.bf16.msra.mxu2 %v5718_v9 }
 0x37c   : > { %1900 = vmatpush.bf16.msra.mxu3 %v5623_v52  ;;  %1862 = vmatpush.bf16.msra.mxu0 %v5627_v53 }
 0x37d   : > { %1875 = vmatpush.bf16.msra.mxu1 %v5631_v54 }
 0x37f   : > { %1890 = vmatpush.bf16.msra.mxu2 %v5734_v16 }
 0x380   : > { %1901 = vmatpush.bf16.msra.mxu3 %v5706_v55  ;;  %1863 = vmatpush.bf16.msra.mxu0 %v5710_v56 }
 0x381   : > { %1876 = vmatpush.bf16.msra.mxu1 %v5714_v8 }
 0x383   : > { %1891 = vmatpush.bf16.msra.mxu2 %v5756_v24 }
 0x384   : > { %1902 = vmatpush.bf16.msra.mxu3 %v5722_v10  ;;  %1864 = vmatpush.bf16.msra.mxu0 %v5726_v13 }
 0x385   : > { %1877 = vmatpush.bf16.msra.mxu1 %v5730_v15 }
 0x387   : > { %1892 = vmatpush.bf16.msra.mxu2 %v5772_v28 }
 0x388   : > { %1903 = vmatpush.bf16.msra.mxu3 %v5738_v19  ;;  %1865 = vmatpush.bf16.msra.mxu0 %v5748_v22 }
 0x389   : > { %1878 = vmatpush.bf16.msra.mxu1 %v5752_v23 }
 0x38b   : > { %1893 = vmatpush.bf16.msra.mxu2 %v5794_v11 }
 0x38c   : > { %1904 = vmatpush.bf16.msra.mxu3 %v5760_v25  ;;  %1866 = vmatpush.bf16.msra.mxu0 %v5764_v6 }
 0x38d   : > { %1879 = vmatpush.bf16.msra.mxu1 %v5768_v27 }
 0x38f   : > { %1894 = vmatpush.bf16.msra.mxu2 %v5811_v59 }
 0x390   : > { %1905 = vmatpush.bf16.msra.mxu3 %v5782_v3  ;;  %1867 = vmatpush.bf16.msra.mxu0 %v5786_v31 }
 0x391   : > { %1880 = vmatpush.bf16.msra.mxu1 %v5790_v37 }
 0x394   : > { %1906 = vmatpush.bf16.msra.mxu3 %v5798_v12  ;;  %1868 = vmatpush.bf16.msra.mxu0 %v5803_v57 }
 0x395   : > { %1881 = vmatpush.bf16.msra.mxu1 %v5807_v49 }
 0x398   : > { %1907 = vmatpush.bf16.msra.mxu3 %v5815_v1 }
 0x3de   : > { %v1628_v40 = vpop.f32.mrf.mxu0  ;;  %v1641_v43 = vpop.f32.mrf.mxu1 }
 0x3df   : > { %v5856_v44 = vadd.f32 %v1628_v40, %v5742_v20  ;;  %v5859_v46 = vadd.f32 %v1641_v43, %v5745_v21  ;;  %v4345_v40 = vld [vmem:[%s5374_s17 + $0x1e0] sm:$0xf]  ;;  %v4950_v43 = vld [vmem:[%s5374_s17 + $0x1ec] sm:$0xf0] }
 0x3e5   : > { %v1654_v38 = vpop.f32.mrf.mxu2  ;;  %v1667_v17 = vpop.f32.mrf.mxu3 }
 0x3e6   : > { %v5869_v20 = vadd.f32 %v1654_v38, %v5776_v34  ;;  %v5872_v21 = vadd.f32 %v1667_v17, %v5779_v2  ;;  %v1630_v18 = vpop.f32.mrf.mxu0  ;;  %v1643_v7 = vpop.f32.mrf.mxu1  ;;  %v1853_v2 = vld [vmem:[#allocation1] sm:$0xff]  ;;  %v4346_v17 = vor.u32 %v4950_v43, %v4345_v40 }
 0x3e7   : > { %2026 = vst [vmem:[#allocation1] ss:$9 sm:$0xff] %v4363_v26  ;;  %v4948_v38 = vld [vmem:[%s5374_s17 + $0x1e4] sm:$0xf]  ;;  %v4347_v18 = vld [vmem:[%s5374_s17 + $0x1f0] sm:$0xf0] }
 0x3e8   : > { %v4353_v7 = vld [vmem:[%s5374_s17 + $0x1e8] sm:$0xf]  ;;  %v4951_v26 = vld [vmem:[%s5374_s17 + $0x1f4] sm:$0xf0] }
 0x3ed   : > { %v1656_v34 = vpop.f32.mrf.mxu2  ;;  %v1669_v35 = vpop.f32.mrf.mxu3 }
 0x3ee   : > { %v1696_v36 = vpop.f32.mrf.mxu0  ;;  %v1709_v32 = vpop.f32.mrf.mxu1  ;;  %v4350_v34 = vor.u32 %v4948_v38, %v4347_v18  ;;  %v4354_v35 = vor.u32 %v4951_v26, %v4353_v7  ;;  %v4408_v7 = vld [vmem:[%s5244_s10 + $0x24] sm:$0xf] }
 0x3ef   : > { %v1697_v0 = vadd.f32 %v5885_v60, %v1696_v36  ;;  %v4949_v36 = vld [vmem:[%s5374_s17 + $0x1ec] sm:$0xf] }
 0x3f1   : > { %v1710_v4 = vadd.f32 %v1709_v32, %v1697_v0 }
 0x3f5   : > { %v1722_v5 = vpop.f32.mrf.mxu2  ;;  %v1735_v61 = vpop.f32.mrf.mxu3 }
 0x3f6   : > { %v1723_v62 = vadd.f32 %v1722_v5, %v1710_v4  ;;  %v1698_v63 = vpop.f32.mrf.mxu0  ;;  %v1711_v29 = vpop.f32.mrf.mxu1  ;;  %v4331_v4 = vld [vmem:[%s5374_s17 + $0x1d0] sm:$0xf0]  ;;  %v4337_v5 = vld [vmem:[%s5374_s17 + $0x1c8] sm:$0xf] }
 0x3f7   : > { %v4945_v29 = vld [vmem:[%s5374_s17 + $0x1cc] sm:$0xf] }
 0x3f8   : > { %v1736_v41 = vadd.f32 %v1735_v61, %v1723_v62  ;;  %v4947_v61 = vld [vmem:[%s5374_s17 + $0x1d4] sm:$0xf0] }
 0x3f9   : > { %v4338_v63 = vor.u32 %v4947_v61, %v4337_v5 }
 0x3fa   : > { %v1739_v42 = vmax.f32 %v1736_v41, 0.0  ;;  %v4339_v41 = vld [vmem:[%s5374_s17 + $0x1d8] sm:$0xf0] }
 0x3fc   : > { %v1740_v30 = vpack.c.bf16 %v1739_v42, %v1739_v42  ;;  %v4342_v42 = vor.u32 %v4945_v29, %v4339_v41 }
 0x3fd   : > { %v1724_v33 = vpop.f32.mrf.mxu2  ;;  %v1737_v39 = vpop.f32.mrf.mxu3 }
 0x3fe   : > { %4314 = vmatmul.msk.bf16.vlgmr.msrb.gmra.mxu0 %vm828_vm0, %v1740_v30  ;;  %4315 = vmatmul.msk.bf16.vlgmr.msrb.gmra.mxu1 %vm828_vm0, %v1740_v30 }
 0x3ff   : > { %4316 = vmatmul.msk.bf16.vlgmr.msrb.gmra.mxu2 %vm828_vm0, %v1740_v30  ;;  %4317 = vmatmul.msk.bf16.vlgmr.msrb.gmra.mxu3 %vm828_vm0, %v1740_v30 }
 0x400   : > { %1973 = vmatpush.bf16.msrb.mxu0 %v4346_v17  ;;  %1986 = vmatpush.bf16.msrb.mxu1 %v4350_v34 }
 0x401   : > { %1999 = vmatpush.bf16.msrb.mxu2 %v4354_v35 }
 0x405   : > { %2000 = vmatpush.bf16.msrb.mxu2 %v4338_v63 }
 0x40e   : > { %1869 = vmatmul.bf16.vlgmr.msra.gmra.mxu0 %v1853_v2  ;;  %1882 = vmatmul.bf16.vlgmr.msra.gmra.mxu1 %v1854_v58  ;;  %v4355_v2 = vld [vmem:[%s5374_s17 + $0x1f8] sm:$0xf0]  ;;  %v4329_v58 = vld [vmem:[%s5374_s17 + $0x1c0] sm:$0xf] }
 0x40f   : > { %1895 = vmatmul.bf16.vlgmr.msra.gmra.mxu2 %v1855_v45  ;;  %1908 = vmatmul.bf16.vlgmr.msra.gmra.mxu3 %v1856_v14  ;;  %v4358_v32 = vor.u32 %v4949_v36, %v4355_v2  ;;  %v4946_v45 = vld [vmem:[%s5374_s17 + $0x1cc] sm:$0xf0]  ;;  %v4944_v14 = vld [vmem:[%s5374_s17 + $0x1c4] sm:$0xf] }
 0x410   : > { %v4330_v0 = vor.u32 %v4946_v45, %v4329_v58  ;;  %v4334_v62 = vor.u32 %v4944_v14, %v4331_v4  ;;  %2061 = vmatpush.bf16.msra.mxu2 %v5619_v51  ;;  %v2028_v36 = vld [vmem:[#allocation1 + $0x9] sm:$0xff]  ;;  %v2029_v2 = vld [vmem:[#allocation1 + $0x12] sm:$0xff] }
 0x411   : > { %2012 = vmatpush.bf16.msrb.mxu3 %v4358_v32  ;;  %v2030_v32 = vld [vmem:[#allocation1 + $0x1b] sm:$0xff] }
 0x412   : > { %1974 = vmatpush.bf16.msrb.mxu0 %v4330_v0  ;;  %1987 = vmatpush.bf16.msrb.mxu1 %v4334_v62 }
 0x414   : > { %2062 = vmatpush.bf16.msra.mxu2 %v5702_v47 }
 0x415   : > { %2013 = vmatpush.bf16.msrb.mxu3 %v4342_v42 }
 0x416   : > { %2035 = vmatpush.bf16.msra.mxu0 %v5611_v48  ;;  %2048 = vmatpush.bf16.msra.mxu1 %v5615_v50 }
 0x418   : > { %2063 = vmatpush.bf16.msra.mxu2 %v5718_v9 }
 0x419   : > { %2074 = vmatpush.bf16.msra.mxu3 %v5623_v52 }
 0x41a   : > { %2036 = vmatpush.bf16.msra.mxu0 %v5627_v53  ;;  %2049 = vmatpush.bf16.msra.mxu1 %v5631_v54 }
 0x41c   : > { %2064 = vmatpush.bf16.msra.mxu2 %v5734_v16 }
 0x41d   : > { %2075 = vmatpush.bf16.msra.mxu3 %v5706_v55 }
 0x41e   : > { %2037 = vmatpush.bf16.msra.mxu0 %v5710_v56  ;;  %2050 = vmatpush.bf16.msra.mxu1 %v5714_v8 }
 0x420   : > { %2065 = vmatpush.bf16.msra.mxu2 %v5756_v24 }
 0x421   : > { %2076 = vmatpush.bf16.msra.mxu3 %v5722_v10 }
 0x422   : > { %2038 = vmatpush.bf16.msra.mxu0 %v5726_v13  ;;  %2051 = vmatpush.bf16.msra.mxu1 %v5730_v15 }
 0x424   : > { %2066 = vmatpush.bf16.msra.mxu2 %v5772_v28 }
 0x425   : > { %2077 = vmatpush.bf16.msra.mxu3 %v5738_v19 }
 0x426   : > { %2039 = vmatpush.bf16.msra.mxu0 %v5748_v22  ;;  %2052 = vmatpush.bf16.msra.mxu1 %v5752_v23 }
 0x428   : > { %2067 = vmatpush.bf16.msra.mxu2 %v5794_v11 }
 0x429   : > { %2078 = vmatpush.bf16.msra.mxu3 %v5760_v25 }
 0x42a   : > { %2040 = vmatpush.bf16.msra.mxu0 %v5764_v6  ;;  %2053 = vmatpush.bf16.msra.mxu1 %v5768_v27 }
 0x42c   : > { %2068 = vmatpush.bf16.msra.mxu2 %v5811_v59 }
 0x42d   : > { %2079 = vmatpush.bf16.msra.mxu3 %v5782_v3 }
 0x42e   : > { %2041 = vmatpush.bf16.msra.mxu0 %v5786_v31  ;;  %2054 = vmatpush.bf16.msra.mxu1 %v5790_v37 }
 0x431   : > { %2080 = vmatpush.bf16.msra.mxu3 %v5798_v12 }
 0x432   : > { %2042 = vmatpush.bf16.msra.mxu0 %v5803_v57  ;;  %2055 = vmatpush.bf16.msra.mxu1 %v5807_v49 }
 0x435   : > { %2081 = vmatpush.bf16.msra.mxu3 %v5815_v1 }
 0x47b   : > { %v1802_v30 = vpop.f32.mrf.mxu0  ;;  %v1815_v33 = vpop.f32.mrf.mxu1 }
 0x47c   : > { %v5925_v39 = vadd.f32 %v1802_v30, %v5856_v44  ;;  %v5928_v40 = vadd.f32 %v1815_v33, %v5859_v46  ;;  %v4390_v30 = vld [vmem:[%s5374_s17 + $0x220] sm:$0xf]  ;;  %v4958_v33 = vld [vmem:[%s5374_s17 + $0x22c] sm:$0xf0] }
 0x482   : > { %v1828_v43 = vpop.f32.mrf.mxu2  ;;  %v1841_v38 = vpop.f32.mrf.mxu3 }
 0x483   : > { %v5938_v44 = vadd.f32 %v1828_v43, %v5869_v20  ;;  %v5941_v46 = vadd.f32 %v1841_v38, %v5872_v21  ;;  %v1804_v17 = vpop.f32.mrf.mxu0  ;;  %v1817_v18 = vpop.f32.mrf.mxu1  ;;  %v2027_v21 = vld [vmem:[#allocation1] sm:$0xff]  ;;  %v4391_v38 = vor.u32 %v4958_v33, %v4390_v30 }
 0x484   : > { %2200 = vst [vmem:[#allocation1] ss:$9 sm:$0xff] %v4408_v7  ;;  %v4956_v43 = vld [vmem:[%s5374_s17 + $0x224] sm:$0xf]  ;;  %v4392_v17 = vld [vmem:[%s5374_s17 + $0x230] sm:$0xf0] }
 0x485   : > { %v4398_v18 = vld [vmem:[%s5374_s17 + $0x228] sm:$0xf]  ;;  %v4959_v7 = vld [vmem:[%s5374_s17 + $0x234] sm:$0xf0] }
 0x48a   : > { %v1830_v20 = vpop.f32.mrf.mxu2  ;;  %v1843_v26 = vpop.f32.mrf.mxu3 }
 0x48b   : > { %v1870_v34 = vpop.f32.mrf.mxu0  ;;  %v1883_v35 = vpop.f32.mrf.mxu1  ;;  %v4395_v20 = vor.u32 %v4956_v43, %v4392_v17  ;;  %v4399_v26 = vor.u32 %v4959_v7, %v4398_v18  ;;  %v2203_v17 = vld [vmem:[#allocation1 + $0x12] sm:$0xff]  ;;  %v2204_v18 = vld [vmem:[#allocation1 + $0x1b] sm:$0xff] }
 0x48c   : > { %v1871_v58 = vadd.f32 %v5885_v60, %v1870_v34  ;;  %v4957_v34 = vld [vmem:[%s5374_s17 + $0x22c] sm:$0xf] }
 0x48e   : > { %v1884_v45 = vadd.f32 %v1883_v35, %v1871_v58 }
 0x492   : > { %v1896_v14 = vpop.f32.mrf.mxu2  ;;  %v1909_v0 = vpop.f32.mrf.mxu3 }
 0x493   : > { %v1897_v4 = vadd.f32 %v1896_v14, %v1884_v45  ;;  %v1872_v5 = vpop.f32.mrf.mxu0  ;;  %v1885_v61 = vpop.f32.mrf.mxu1  ;;  %v4376_v45 = vld [vmem:[%s5374_s17 + $0x210] sm:$0xf0]  ;;  %v4382_v14 = vld [vmem:[%s5374_s17 + $0x208] sm:$0xf] }
 0x494   : > { %v4953_v61 = vld [vmem:[%s5374_s17 + $0x20c] sm:$0xf] }
 0x495   : > { %v1910_v62 = vadd.f32 %v1909_v0, %v1897_v4  ;;  %v4955_v0 = vld [vmem:[%s5374_s17 + $0x214] sm:$0xf0] }
 0x496   : > { %v4383_v5 = vor.u32 %v4955_v0, %v4382_v14  ;;  %v4435_v0 = vld [vmem:[%s5374_s17 + $0x260] sm:$0xf] }
 0x497   : > { %v1913_v63 = vmax.f32 %v1910_v62, 0.0  ;;  %v4384_v62 = vld [vmem:[%s5374_s17 + $0x218] sm:$0xf0] }
 0x499   : > { %v1914_v29 = vpack.c.bf16 %v1913_v63, %v1913_v63  ;;  %v4387_v63 = vor.u32 %v4953_v61, %v4384_v62  ;;  %v4437_v62 = vld [vmem:[%s5374_s17 + $0x270] sm:$0xf0] }
 0x49a   : > { %v1898_v41 = vpop.f32.mrf.mxu2  ;;  %v1911_v42 = vpop.f32.mrf.mxu3 }
 0x49b   : > { %4359 = vmatmul.msk.bf16.vlgmr.msrb.gmra.mxu0 %vm828_vm0, %v1914_v29  ;;  %4360 = vmatmul.msk.bf16.vlgmr.msrb.gmra.mxu1 %vm828_vm0, %v1914_v29  ;;  %v4453_v42 = vld [vmem:[%s5244_s10 + $0x28] sm:$0xf] }
 0x49c   : > { %4361 = vmatmul.msk.bf16.vlgmr.msrb.gmra.mxu2 %vm828_vm0, %v1914_v29  ;;  %4362 = vmatmul.msk.bf16.vlgmr.msrb.gmra.mxu3 %vm828_vm0, %v1914_v29 }
 0x49d   : > { %2147 = vmatpush.bf16.msrb.mxu0 %v4391_v38  ;;  %2160 = vmatpush.bf16.msrb.mxu1 %v4395_v20  ;;  %v2202_v38 = vld [vmem:[#allocation1 + $0x9] sm:$0xff] }
 0x49e   : > { %2173 = vmatpush.bf16.msrb.mxu2 %v4399_v26 }
 0x4a2   : > { %2174 = vmatpush.bf16.msrb.mxu2 %v4383_v5  ;;  %v4964_v5 = vld [vmem:[%s5374_s17 + $0x264] sm:$0xf] }
 0x4ab   : > { %2043 = vmatmul.bf16.vlgmr.msra.gmra.mxu0 %v2027_v21  ;;  %2056 = vmatmul.bf16.vlgmr.msra.gmra.mxu1 %v2028_v36  ;;  %v4400_v21 = vld [vmem:[%s5374_s17 + $0x238] sm:$0xf0]  ;;  %v4374_v36 = vld [vmem:[%s5374_s17 + $0x200] sm:$0xf] }
 0x4ac   : > { %2069 = vmatmul.bf16.vlgmr.msra.gmra.mxu2 %v2029_v2  ;;  %2082 = vmatmul.bf16.vlgmr.msra.gmra.mxu3 %v2030_v32  ;;  %v4403_v35 = vor.u32 %v4957_v34, %v4400_v21  ;;  %v4954_v2 = vld [vmem:[%s5374_s17 + $0x20c] sm:$0xf0]  ;;  %v4952_v32 = vld [vmem:[%s5374_s17 + $0x204] sm:$0xf] }
 0x4ad   : > { %v4375_v58 = vor.u32 %v4954_v2, %v4374_v36  ;;  %v4379_v4 = vor.u32 %v4952_v32, %v4376_v45  ;;  %2235 = vmatpush.bf16.msra.mxu2 %v5619_v51 }
 0x4ae   : > { %2186 = vmatpush.bf16.msrb.mxu3 %v4403_v35 }
 0x4af   : > { %2148 = vmatpush.bf16.msrb.mxu0 %v4375_v58  ;;  %2161 = vmatpush.bf16.msrb.mxu1 %v4379_v4  ;;  %v4966_v4 = vld [vmem:[%s5374_s17 + $0x26c] sm:$0xf0] }
 0x4b0   : > { %v4436_v61 = vor.u32 %v4966_v4, %v4435_v0  ;;  %v4972_v0 = vld [vmem:[%s5374_s17 + $0x2a4] sm:$0xf] }
 0x4b1   : > { %2236 = vmatpush.bf16.msra.mxu2 %v5702_v47 }
 0x4b2   : > { %2187 = vmatpush.bf16.msrb.mxu3 %v4387_v63  ;;  %v4443_v63 = vld [vmem:[%s5374_s17 + $0x268] sm:$0xf] }
 0x4b3   : > { %2209 = vmatpush.bf16.msra.mxu0 %v5611_v48  ;;  %2222 = vmatpush.bf16.msra.mxu1 %v5615_v50 }
 0x4b5   : > { %2237 = vmatpush.bf16.msra.mxu2 %v5718_v9 }
 0x4b6   : > { %2248 = vmatpush.bf16.msra.mxu3 %v5623_v52 }
 0x4b7   : > { %2210 = vmatpush.bf16.msra.mxu0 %v5627_v53  ;;  %2223 = vmatpush.bf16.msra.mxu1 %v5631_v54 }
 0x4b9   : > { %2238 = vmatpush.bf16.msra.mxu2 %v5734_v16 }
 0x4ba   : > { %2249 = vmatpush.bf16.msra.mxu3 %v5706_v55 }
 0x4bb   : > { %2211 = vmatpush.bf16.msra.mxu0 %v5710_v56  ;;  %2224 = vmatpush.bf16.msra.mxu1 %v5714_v8 }
 0x4bd   : > { %2239 = vmatpush.bf16.msra.mxu2 %v5756_v24 }
 0x4be   : > { %2250 = vmatpush.bf16.msra.mxu3 %v5722_v10 }
 0x4bf   : > { %2212 = vmatpush.bf16.msra.mxu0 %v5726_v13  ;;  %2225 = vmatpush.bf16.msra.mxu1 %v5730_v15 }
 0x4c1   : > { %2240 = vmatpush.bf16.msra.mxu2 %v5772_v28 }
 0x4c2   : > { %2251 = vmatpush.bf16.msra.mxu3 %v5738_v19 }
 0x4c3   : > { %2213 = vmatpush.bf16.msra.mxu0 %v5748_v22  ;;  %2226 = vmatpush.bf16.msra.mxu1 %v5752_v23 }
 0x4c5   : > { %2241 = vmatpush.bf16.msra.mxu2 %v5794_v11 }
 0x4c6   : > { %2252 = vmatpush.bf16.msra.mxu3 %v5760_v25 }
 0x4c7   : > { %2214 = vmatpush.bf16.msra.mxu0 %v5764_v6  ;;  %2227 = vmatpush.bf16.msra.mxu1 %v5768_v27 }
 0x4c9   : > { %2242 = vmatpush.bf16.msra.mxu2 %v5811_v59 }
 0x4ca   : > { %2253 = vmatpush.bf16.msra.mxu3 %v5782_v3 }
 0x4cb   : > { %2215 = vmatpush.bf16.msra.mxu0 %v5786_v31  ;;  %2228 = vmatpush.bf16.msra.mxu1 %v5790_v37 }
 0x4ce   : > { %2254 = vmatpush.bf16.msra.mxu3 %v5798_v12 }
 0x4cf   : > { %2216 = vmatpush.bf16.msra.mxu0 %v5803_v57  ;;  %2229 = vmatpush.bf16.msra.mxu1 %v5807_v49 }
 0x4d2   : > { %2255 = vmatpush.bf16.msra.mxu3 %v5815_v1 }
 0x518   : > { %v1976_v48 = vpop.f32.mrf.mxu0  ;;  %v1989_v50 = vpop.f32.mrf.mxu1 }
 0x519   : > { %v5991_v51 = vadd.f32 %v1976_v48, %v5925_v39  ;;  %v5994_v52 = vadd.f32 %v1989_v50, %v5928_v40  ;;  %v4967_v48 = vld [vmem:[%s5374_s17 + $0x274] sm:$0xf0]  ;;  %v4440_v50 = vor.u32 %v4964_v5, %v4437_v62  ;;  %v4482_v5 = vld [vmem:[%s5374_s17 + $0x2b0] sm:$0xf0] }
 0x51a   : > { %v4975_v62 = vld [vmem:[%s5374_s17 + $0x2b4] sm:$0xf0] }
 0x51f   : > { %v2002_v53 = vpop.f32.mrf.mxu2  ;;  %v2015_v54 = vpop.f32.mrf.mxu3 }
 0x520   : > { %v6004_v39 = vadd.f32 %v2002_v53, %v5938_v44  ;;  %v6007_v40 = vadd.f32 %v2015_v54, %v5941_v46  ;;  %v1978_v29 = vpop.f32.mrf.mxu0  ;;  %v1991_v41 = vpop.f32.mrf.mxu1  ;;  %v2201_v46 = vld [vmem:[#allocation1] sm:$0xff]  ;;  %v4444_v53 = vor.u32 %v4967_v48, %v4443_v63  ;;  %v4965_v54 = vld [vmem:[%s5374_s17 + $0x26c] sm:$0xf]  ;;  %v4485_v63 = vor.u32 %v4972_v0, %v4482_v5 }
 0x521   : > { %2374 = vst [vmem:[#allocation1] ss:$9 sm:$0xff] %v4453_v42  ;;  %v4445_v29 = vld [vmem:[%s5374_s17 + $0x278] sm:$0xf0]  ;;  %v4419_v42 = vld [vmem:[%s5374_s17 + $0x240] sm:$0xf] }
 0x522   : > { %v4448_v41 = vor.u32 %v4965_v54, %v4445_v29  ;;  %v4464_v29 = vld [vmem:[%s5374_s17 + $0x280] sm:$0xf] }
 0x523   : > { %v6240_v5 = vld [vmem:[%s5194_s29 + $0x80] sm:$0xff] }
 0x527   : > { %v2004_v44 = vpop.f32.mrf.mxu2  ;;  %v2017_v30 = vpop.f32.mrf.mxu3 }
 0x528   : > { %v2044_v33 = vpop.f32.mrf.mxu0  ;;  %v2057_v43 = vpop.f32.mrf.mxu1  ;;  %v4962_v44 = vld [vmem:[%s5374_s17 + $0x24c] sm:$0xf0]  ;;  %v4960_v30 = vld [vmem:[%s5374_s17 + $0x244] sm:$0xf] }
 0x529   : > { %v2045_v7 = vadd.f32 %v5885_v60, %v2044_v33  ;;  %v4421_v33 = vld [vmem:[%s5374_s17 + $0x250] sm:$0xf0] }
 0x52b   : > { %v2058_v20 = vadd.f32 %v2057_v43, %v2045_v7  ;;  %v4427_v43 = vld [vmem:[%s5374_s17 + $0x248] sm:$0xf]  ;;  %v4961_v7 = vld [vmem:[%s5374_s17 + $0x24c] sm:$0xf] }
 0x52f   : > { %v2070_v26 = vpop.f32.mrf.mxu2  ;;  %v2083_v34 = vpop.f32.mrf.mxu3 }
 0x530   : > { %v2071_v21 = vadd.f32 %v2070_v26, %v2058_v20  ;;  %v2046_v35 = vpop.f32.mrf.mxu0  ;;  %v2059_v36 = vpop.f32.mrf.mxu1  ;;  %v4429_v20 = vld [vmem:[%s5374_s17 + $0x258] sm:$0xf0] }
 0x531   : > { %v4432_v26 = vor.u32 %v4961_v7, %v4429_v20  ;;  %v6049_v35 = vld [vmem:[%s5194_s29 + $0xb8] sm:$0xff]  ;;  %v6131_v20 = vld [vmem:[%s5194_s29 + $0xb0] sm:$0xff] }
 0x532   : > { %v2084_v2 = vadd.f32 %v2083_v34, %v2071_v21  ;;  %v6041_v34 = vld [vmem:[%s5194_s29 + $0x38] sm:$0xff] }
 0x533   : > { %v6045_v21 = vld [vmem:[%s5194_s29 + $0x78] sm:$0xff] }
 0x534   : > { %v2087_v32 = vmax.f32 %v2084_v2, 0.0  ;;  %v6053_v36 = vld [vmem:[%s5194_s29 + $0xf8] sm:$0xff]  ;;  %v6057_v2 = vld [vmem:[%s5194_s29 + $0x30] sm:$0xff] }
 0x536   : > { %v2088_v58 = vpack.c.bf16 %v2087_v32, %v2087_v32  ;;  %v6061_v32 = vld [vmem:[%s5194_s29 + $0x70] sm:$0xff] }
 0x537   : > { %v2072_v45 = vpop.f32.mrf.mxu2  ;;  %v2085_v14 = vpop.f32.mrf.mxu3 }
 0x538   : > { %4404 = vmatmul.msk.bf16.vlgmr.msrb.gmra.mxu0 %vm828_vm0, %v2088_v58  ;;  %4405 = vmatmul.msk.bf16.vlgmr.msrb.gmra.mxu1 %vm828_vm0, %v2088_v58  ;;  %v4974_v14 = vld [vmem:[%s5374_s17 + $0x2ac] sm:$0xf0] }
 0x539   : > { %4406 = vmatmul.msk.bf16.vlgmr.msrb.gmra.mxu2 %vm828_vm0, %v2088_v58  ;;  %4407 = vmatmul.msk.bf16.vlgmr.msrb.gmra.mxu3 %vm828_vm0, %v2088_v58 }
 0x53a   : > { %2321 = vmatpush.bf16.msrb.mxu0 %v4436_v61  ;;  %2334 = vmatpush.bf16.msrb.mxu1 %v4440_v50  ;;  %v4488_v61 = vld [vmem:[%s5374_s17 + $0x2a8] sm:$0xf]  ;;  %v4973_v50 = vld [vmem:[%s5374_s17 + $0x2ac] sm:$0xf] }
 0x53b   : > { %2347 = vmatpush.bf16.msrb.mxu2 %v4444_v53  ;;  %2360 = vmatpush.bf16.msrb.mxu3 %v4448_v41  ;;  %v4489_v48 = vor.u32 %v4975_v62, %v4488_v61  ;;  %v4490_v53 = vld [vmem:[%s5374_s17 + $0x2b8] sm:$0xf0]  ;;  %v4970_v41 = vld [vmem:[%s5374_s17 + $0x28c] sm:$0xf0] }
 0x53c   : > { %v4493_v54 = vor.u32 %v4973_v50, %v4490_v53 }
 0x53f   : > { %2361 = vmatpush.bf16.msrb.mxu3 %v4432_v26  ;;  %v6135_v26 = vld [vmem:[%s5194_s29 + $0xf0] sm:$0xff] }
 0x548   : > { %2217 = vmatmul.bf16.vlgmr.msra.gmra.mxu0 %v2201_v46  ;;  %2230 = vmatmul.bf16.vlgmr.msra.gmra.mxu1 %v2202_v38  ;;  %v4420_v46 = vor.u32 %v4962_v44, %v4419_v42  ;;  %v4963_v38 = vld [vmem:[%s5374_s17 + $0x254] sm:$0xf0]  ;;  %v4968_v42 = vld [vmem:[%s5374_s17 + $0x284] sm:$0xf]  ;;  %v4465_v44 = vor.u32 %v4970_v41, %v4464_v29 }
 0x549   : > { %2243 = vmatmul.bf16.vlgmr.msra.gmra.mxu2 %v2203_v17  ;;  %2256 = vmatmul.bf16.vlgmr.msra.gmra.mxu3 %v2204_v18  ;;  %v4424_v17 = vor.u32 %v4960_v30, %v4421_v33  ;;  %v4428_v18 = vor.u32 %v4963_v38, %v4427_v43  ;;  %v4466_v30 = vld [vmem:[%s5374_s17 + $0x290] sm:$0xf0]  ;;  %v4971_v33 = vld [vmem:[%s5374_s17 + $0x294] sm:$0xf0] }
 0x54a   : > { %2322 = vmatpush.bf16.msrb.mxu0 %v4420_v46  ;;  %2422 = vmatpush.bf16.msra.mxu3 %v6053_v36  ;;  %v4472_v46 = vld [vmem:[%s5374_s17 + $0x288] sm:$0xf]  ;;  %v4469_v43 = vor.u32 %v4968_v42, %v4466_v30 }
 0x54b   : > { %2335 = vmatpush.bf16.msrb.mxu1 %v4424_v17  ;;  %2348 = vmatpush.bf16.msrb.mxu2 %v4428_v18  ;;  %v4473_v38 = vor.u32 %v4971_v33, %v4472_v46  ;;  %v4969_v17 = vld [vmem:[%s5374_s17 + $0x28c] sm:$0xf]  ;;  %v4474_v18 = vld [vmem:[%s5374_s17 + $0x298] sm:$0xf0] }
 0x54c   : > { %v4477_v7 = vor.u32 %v4969_v17, %v4474_v18 }
 0x54e   : > { %2383 = vmatpush.bf16.msra.mxu0 %v6041_v34  ;;  %2423 = vmatpush.bf16.msra.mxu3 %v5706_v55 }
 0x54f   : > { %2396 = vmatpush.bf16.msra.mxu1 %v6045_v21  ;;  %2409 = vmatpush.bf16.msra.mxu2 %v6049_v35 }
 0x552   : > { %2384 = vmatpush.bf16.msra.mxu0 %v6057_v2  ;;  %2424 = vmatpush.bf16.msra.mxu3 %v5722_v10 }
 0x553   : > { %2397 = vmatpush.bf16.msra.mxu1 %v6061_v32  ;;  %2410 = vmatpush.bf16.msra.mxu2 %v5702_v47 }
 0x556   : > { %2385 = vmatpush.bf16.msra.mxu0 %v5710_v56  ;;  %2425 = vmatpush.bf16.msra.mxu3 %v5738_v19 }
 0x557   : > { %2398 = vmatpush.bf16.msra.mxu1 %v5714_v8  ;;  %2411 = vmatpush.bf16.msra.mxu2 %v5718_v9 }
 0x55a   : > { %2386 = vmatpush.bf16.msra.mxu0 %v5726_v13  ;;  %2426 = vmatpush.bf16.msra.mxu3 %v5760_v25 }
 0x55b   : > { %2399 = vmatpush.bf16.msra.mxu1 %v5730_v15  ;;  %2412 = vmatpush.bf16.msra.mxu2 %v5734_v16  ;;  %v4498_v16 = vld [vmem:[%s5244_s10 + $0x2c] sm:$0xf] }
 0x55e   : > { %2387 = vmatpush.bf16.msra.mxu0 %v5748_v22  ;;  %2427 = vmatpush.bf16.msra.mxu3 %v5782_v3 }
 0x55f   : > { %2400 = vmatpush.bf16.msra.mxu1 %v5752_v23  ;;  %2413 = vmatpush.bf16.msra.mxu2 %v5756_v24  ;;  %v2375_v23 = vld [vmem:[#allocation1] sm:$0xff] }
 0x562   : > { %2388 = vmatpush.bf16.msra.mxu0 %v5764_v6  ;;  %2428 = vmatpush.bf16.msra.mxu3 %v5798_v12  ;;  %v2376_v6 = vld [vmem:[#allocation1 + $0x9] sm:$0xff] }
 0x563   : > { %2401 = vmatpush.bf16.msra.mxu1 %v5768_v27  ;;  %2414 = vmatpush.bf16.msra.mxu2 %v5772_v28  ;;  %v2377_v27 = vld [vmem:[#allocation1 + $0x12] sm:$0xff]  ;;  %v2378_v28 = vld [vmem:[#allocation1 + $0x1b] sm:$0xff] }
 0x564   : > { %2548 = vst [vmem:[#allocation1] ss:$9 sm:$0xff] %v4498_v16  ;;  %v6163_v16 = vld [vmem:[%s5194_s29 + $0xa0] sm:$0xff] }
 0x566   : > { %2389 = vmatpush.bf16.msra.mxu0 %v5786_v31  ;;  %2429 = vmatpush.bf16.msra.mxu3 %v5815_v1 }
 0x567   : > { %2402 = vmatpush.bf16.msra.mxu1 %v5790_v37  ;;  %2415 = vmatpush.bf16.msra.mxu2 %v5794_v11 }
 0x56a   : > { %2390 = vmatpush.bf16.msra.mxu0 %v5803_v57 }
 0x56b   : > { %2403 = vmatpush.bf16.msra.mxu1 %v5807_v49  ;;  %2416 = vmatpush.bf16.msra.mxu2 %v5811_v59  ;;  %v2549_v61 = vld [vmem:[#allocation1] sm:$0xff]  ;;  %v2550_v50 = vld [vmem:[#allocation1 + $0x9] sm:$0xff]  ;;  %v2551_v53 = vld [vmem:[#allocation1 + $0x12] sm:$0xff] }
 0x5b5   : > { %v2150_v58 = vpop.f32.mrf.mxu0  ;;  %v2163_v45 = vpop.f32.mrf.mxu1 }
 0x5b6   : > { %v6075_v47 = vadd.f32 %v2150_v58, %v5991_v51  ;;  %v6078_v55 = vadd.f32 %v2163_v45, %v5994_v52  ;;  %v6139_v58 = vld [vmem:[%s5194_s29 + $0x28] sm:$0xff] }
 0x5b7   : > { %v6143_v45 = vld [vmem:[%s5194_s29 + $0x68] sm:$0xff] }
 0x5bc   : > { %v2176_v56 = vpop.f32.mrf.mxu2  ;;  %v2189_v8 = vpop.f32.mrf.mxu3 }
 0x5bd   : > { %v6088_v9 = vadd.f32 %v2176_v56, %v6004_v39  ;;  %v6091_v10 = vadd.f32 %v2189_v8, %v6007_v40  ;;  %v2152_v13 = vpop.f32.mrf.mxu0  ;;  %v2165_v15 = vpop.f32.mrf.mxu1  ;;  %v4480_v40 = vld [vmem:[%s5374_s17 + $0x2a0] sm:$0xf]  ;;  %v6147_v56 = vld [vmem:[%s5194_s29 + $0xa8] sm:$0xff] }
 0x5be   : > { %v4481_v4 = vor.u32 %v4974_v14, %v4480_v40  ;;  %v6151_v8 = vld [vmem:[%s5194_s29 + $0xe8] sm:$0xff]  ;;  %v6155_v13 = vld [vmem:[%s5194_s29 + $0x20] sm:$0xff] }
 0x5bf   : > { %v6159_v15 = vld [vmem:[%s5194_s29 + $0x60] sm:$0xff] }
 0x5c0   : > { %v6232_v40 = vld [vmem:[%s5194_s29] sm:$0xff] }
 0x5c4   : > { %v2178_v19 = vpop.f32.mrf.mxu2  ;;  %v2191_v22 = vpop.f32.mrf.mxu3 }
 0x5c5   : > { %v2218_v24 = vpop.f32.mrf.mxu0  ;;  %v2231_v25 = vpop.f32.mrf.mxu1 }
 0x5c6   : > { %v2219_v3 = vadd.f32 %v5885_v60, %v2218_v24 }
 0x5c8   : > { %v2232_v31 = vadd.f32 %v2231_v25, %v2219_v3  ;;  %v6189_v3 = vld [vmem:[%s5194_s29 + $0xd8] sm:$0xff] }
 0x5cc   : > { %v2244_v37 = vpop.f32.mrf.mxu2  ;;  %v2257_v11 = vpop.f32.mrf.mxu3 }
 0x5cd   : > { %v2245_v12 = vadd.f32 %v2244_v37, %v2232_v31  ;;  %v2220_v57 = vpop.f32.mrf.mxu0  ;;  %v2233_v49 = vpop.f32.mrf.mxu1  ;;  %v6197_v37 = vld [vmem:[%s5194_s29 + $0x50] sm:$0xff] }
 0x5cf   : > { %v2258_v59 = vadd.f32 %v2257_v11, %v2245_v12  ;;  %v6201_v11 = vld [vmem:[%s5194_s29 + $0x90] sm:$0xff] }
 0x5d1   : > { %v2261_v51 = vmax.f32 %v2258_v59, 0.0 }
 0x5d3   : > { %v2262_v52 = vpack.c.bf16 %v2261_v51, %v2261_v51  ;;  %v6211_v51 = vld [vmem:[%s5194_s29 + $0xd0] sm:$0xff] }
 0x5d4   : > { %v2246_v1 = vpop.f32.mrf.mxu2  ;;  %v2259_v39 = vpop.f32.mrf.mxu3 }
 0x5d5   : > { %4449 = vmatmul.msk.bf16.vlgmr.msrb.gmra.mxu0 %vm828_vm0, %v2262_v52  ;;  %4450 = vmatmul.msk.bf16.vlgmr.msrb.gmra.mxu1 %vm828_vm0, %v2262_v52  ;;  %v6219_v1 = vld [vmem:[%s5194_s29 + $0x48] sm:$0xff]  ;;  %v4543_v39 = vld [vmem:[%s5244_s10 + $0x30] sm:$0xf] }
 0x5d6   : > { %4451 = vmatmul.msk.bf16.vlgmr.msrb.gmra.mxu2 %vm828_vm0, %v2262_v52  ;;  %4452 = vmatmul.msk.bf16.vlgmr.msrb.gmra.mxu3 %vm828_vm0, %v2262_v52  ;;  %v6215_v52 = vld [vmem:[%s5194_s29 + $0x8] sm:$0xff] }
 0x5d7   : > { %2495 = vmatpush.bf16.msrb.mxu0 %v4481_v4  ;;  %2508 = vmatpush.bf16.msrb.mxu1 %v4485_v63  ;;  %v6236_v4 = vld [vmem:[%s5194_s29 + $0x40] sm:$0xff] }
 0x5d8   : > { %2521 = vmatpush.bf16.msrb.mxu2 %v4489_v48  ;;  %2534 = vmatpush.bf16.msrb.mxu3 %v4493_v54  ;;  %v6244_v48 = vld [vmem:[%s5194_s29 + $0xc0] sm:$0xff] }
 0x5d9   : > { %v2552_v54 = vld [vmem:[#allocation1 + $0x1b] sm:$0xff] }
 0x5da   : > { %2722 = vst [vmem:[#allocation1] ss:$9 sm:$0xff] %v4543_v39 }
 0x5db   : > { %2496 = vmatpush.bf16.msrb.mxu0 %v4465_v44  ;;  %2509 = vmatpush.bf16.msrb.mxu1 %v4469_v43 }
 0x5dc   : > { %2522 = vmatpush.bf16.msrb.mxu2 %v4473_v38  ;;  %2535 = vmatpush.bf16.msrb.mxu3 %v4477_v7 }
 0x5e5   : > { %2391 = vmatmul.bf16.vlgmr.msra.gmra.mxu0 %v2375_v23  ;;  %2404 = vmatmul.bf16.vlgmr.msra.gmra.mxu1 %v2376_v6  ;;  %v6167_v23 = vld [vmem:[%s5194_s29 + $0xe0] sm:$0xff]  ;;  %v6177_v6 = vld [vmem:[%s5194_s29 + $0x18] sm:$0xff] }
 0x5e6   : > { %2417 = vmatmul.bf16.vlgmr.msra.gmra.mxu2 %v2377_v27  ;;  %2430 = vmatmul.bf16.vlgmr.msra.gmra.mxu3 %v2378_v28  ;;  %v6181_v27 = vld [vmem:[%s5194_s29 + $0x58] sm:$0xff] }
 0x5e7   : > { %2557 = vmatpush.bf16.msra.mxu0 %v6041_v34  ;;  %2570 = vmatpush.bf16.msra.mxu1 %v6045_v21  ;;  %v6185_v28 = vld [vmem:[%s5194_s29 + $0x98] sm:$0xff] }
 0x5e8   : > { %2583 = vmatpush.bf16.msra.mxu2 %v6049_v35  ;;  %2596 = vmatpush.bf16.msra.mxu3 %v6053_v36 }
 0x5eb   : > { %2558 = vmatpush.bf16.msra.mxu0 %v6057_v2  ;;  %2571 = vmatpush.bf16.msra.mxu1 %v6061_v32 }
 0x5ec   : > { %2584 = vmatpush.bf16.msra.mxu2 %v6131_v20  ;;  %2597 = vmatpush.bf16.msra.mxu3 %v6135_v26 }
 0x5ef   : > { %2559 = vmatpush.bf16.msra.mxu0 %v6139_v58  ;;  %2572 = vmatpush.bf16.msra.mxu1 %v6143_v45 }
 0x5f0   : > { %2585 = vmatpush.bf16.msra.mxu2 %v6147_v56  ;;  %2598 = vmatpush.bf16.msra.mxu3 %v6151_v8 }
 0x5f3   : > { %2560 = vmatpush.bf16.msra.mxu0 %v6155_v13  ;;  %2573 = vmatpush.bf16.msra.mxu1 %v6159_v15 }
 0x5f4   : > { %2586 = vmatpush.bf16.msra.mxu2 %v6163_v16  ;;  %2599 = vmatpush.bf16.msra.mxu3 %v6167_v23 }
 0x5f7   : > { %2561 = vmatpush.bf16.msra.mxu0 %v6177_v6  ;;  %2574 = vmatpush.bf16.msra.mxu1 %v6181_v27 }
 0x5f8   : > { %2587 = vmatpush.bf16.msra.mxu2 %v6185_v28  ;;  %2600 = vmatpush.bf16.msra.mxu3 %v6189_v3 }
 0x5fb   : > { %2575 = vmatpush.bf16.msra.mxu1 %v6197_v37 }
 0x5fc   : > { %2588 = vmatpush.bf16.msra.mxu2 %v6201_v11  ;;  %2601 = vmatpush.bf16.msra.mxu3 %v6211_v51 }
 0x5ff   : > { %2576 = vmatpush.bf16.msra.mxu1 %v6219_v1 }
 0x603   : > { %2577 = vmatpush.bf16.msra.mxu1 %v6236_v4 }
 0x652   : > { %v2324_v19 = vpop.f32.mrf.mxu0  ;;  %v2337_v22 = vpop.f32.mrf.mxu1 }
 0x653   : > { %v6171_v24 = vadd.f32 %v2324_v19, %v6075_v47  ;;  %v6174_v25 = vadd.f32 %v2337_v22, %v6078_v55  ;;  %v6193_v47 = vld [vmem:[%s5194_s29 + $0x10] sm:$0xff]  ;;  %v4980_v22 = vld [vmem:[%s5374_s17 + $0x2e4] sm:$0xf] }
 0x654   : > { %2562 = vmatpush.bf16.msra.mxu0 %v6193_v47  ;;  %v4982_v19 = vld [vmem:[%s5374_s17 + $0x2ec] sm:$0xf0] }
 0x658   : > { %2563 = vmatpush.bf16.msra.mxu0 %v6215_v52 }
 0x659   : > { %v2350_v55 = vpop.f32.mrf.mxu2  ;;  %v2363_v31 = vpop.f32.mrf.mxu3 }
 0x65a   : > { %v6205_v12 = vadd.f32 %v2350_v55, %v6088_v9  ;;  %v6208_v57 = vadd.f32 %v2363_v31, %v6091_v10  ;;  %v2326_v49 = vpop.f32.mrf.mxu0  ;;  %v2339_v59 = vpop.f32.mrf.mxu1  ;;  %v6223_v9 = vld [vmem:[%s5194_s29 + $0x88] sm:$0xff]  ;;  %v4527_v31 = vld [vmem:[%s5374_s17 + $0x2f0] sm:$0xf0] }
 0x65b   : > { %2589 = vmatpush.bf16.msra.mxu2 %v6223_v9  ;;  %v6227_v10 = vld [vmem:[%s5194_s29 + $0xc8] sm:$0xff]  ;;  %v4983_v59 = vld [vmem:[%s5374_s17 + $0x2f4] sm:$0xf0]  ;;  %v4530_v39 = vor.u32 %v4980_v22, %v4527_v31  ;;  %v4588_v31 = vld [vmem:[%s5244_s10 + $0x34] sm:$0xf] }
 0x65c   : > { %2602 = vmatpush.bf16.msra.mxu3 %v6227_v10  ;;  %2564 = vmatpush.bf16.msra.mxu0 %v6232_v40  ;;  %v4533_v49 = vld [vmem:[%s5374_s17 + $0x2e8] sm:$0xf] }
 0x65f   : > { %2590 = vmatpush.bf16.msra.mxu2 %v6240_v5 }
 0x660   : > { %2603 = vmatpush.bf16.msra.mxu3 %v6244_v48 }
 0x661   : > { %v2352_v14 = vpop.f32.mrf.mxu2  ;;  %v2365_v0 = vpop.f32.mrf.mxu3 }
 0x662   : > { %v2392_v62 = vpop.f32.mrf.mxu0  ;;  %v2405_v63 = vpop.f32.mrf.mxu1  ;;  %v4534_v14 = vor.u32 %v4983_v59, %v4533_v49  ;;  %v4981_v0 = vld [vmem:[%s5374_s17 + $0x2ec] sm:$0xf] }
 0x663   : > { %v2393_v29 = vadd.f32 %v5885_v60, %v2392_v62  ;;  %v4525_v60 = vld [vmem:[%s5374_s17 + $0x2e0] sm:$0xf] }
 0x664   : > { %v4526_v55 = vor.u32 %v4982_v19, %v4525_v60 }
 0x665   : > { %v2406_v41 = vadd.f32 %v2405_v63, %v2393_v29  ;;  %v4509_v63 = vld [vmem:[%s5374_s17 + $0x2c0] sm:$0xf]  ;;  %v4511_v29 = vld [vmem:[%s5374_s17 + $0x2d0] sm:$0xf0] }
 0x669   : > { %v2418_v42 = vpop.f32.mrf.mxu2  ;;  %v2431_v44 = vpop.f32.mrf.mxu3 }
 0x66a   : > { %v2419_v30 = vadd.f32 %v2418_v42, %v2406_v41  ;;  %v2394_v46 = vpop.f32.mrf.mxu0  ;;  %v2407_v33 = vpop.f32.mrf.mxu1  ;;  %v4517_v41 = vld [vmem:[%s5374_s17 + $0x2c8] sm:$0xf]  ;;  %v4979_v42 = vld [vmem:[%s5374_s17 + $0x2d4] sm:$0xf0] }
 0x66b   : > { %v4977_v46 = vld [vmem:[%s5374_s17 + $0x2cc] sm:$0xf]  ;;  %v4519_v33 = vld [vmem:[%s5374_s17 + $0x2d8] sm:$0xf0] }
 0x66c   : > { %v2432_v43 = vadd.f32 %v2431_v44, %v2419_v30  ;;  %v4518_v30 = vor.u32 %v4979_v42, %v4517_v41 }
 0x66e   : > { %v2435_v38 = vmax.f32 %v2432_v43, 0.0  ;;  %v4522_v43 = vor.u32 %v4977_v46, %v4519_v33 }
 0x670   : > { %v2436_v17 = vpack.c.bf16 %v2435_v38, %v2435_v38 }
 0x671   : > { %v2420_v18 = vpop.f32.mrf.mxu2  ;;  %v2433_v7 = vpop.f32.mrf.mxu3 }
 0x672   : > { %4494 = vmatmul.msk.bf16.vlgmr.msrb.gmra.mxu0 %vm828_vm0, %v2436_v17  ;;  %4495 = vmatmul.msk.bf16.vlgmr.msrb.gmra.mxu1 %vm828_vm0, %v2436_v17 }
 0x673   : > { %4496 = vmatmul.msk.bf16.vlgmr.msrb.gmra.mxu2 %vm828_vm0, %v2436_v17  ;;  %4497 = vmatmul.msk.bf16.vlgmr.msrb.gmra.mxu3 %vm828_vm0, %v2436_v17 }
 0x674   : > { %2669 = vmatpush.bf16.msrb.mxu0 %v4526_v55  ;;  %2682 = vmatpush.bf16.msrb.mxu1 %v4530_v39 }
 0x675   : > { %2695 = vmatpush.bf16.msrb.mxu2 %v4534_v14  ;;  %v2724_v14 = vld [vmem:[#allocation1 + $0x9] sm:$0xff] }
 0x679   : > { %2696 = vmatpush.bf16.msrb.mxu2 %v4518_v30 }
 0x682   : > { %2565 = vmatmul.bf16.vlgmr.msra.gmra.mxu0 %v2549_v61  ;;  %2578 = vmatmul.bf16.vlgmr.msra.gmra.mxu1 %v2550_v50  ;;  %v4535_v61 = vld [vmem:[%s5374_s17 + $0x2f8] sm:$0xf0]  ;;  %v4978_v50 = vld [vmem:[%s5374_s17 + $0x2cc] sm:$0xf0] }
 0x683   : > { %2591 = vmatmul.bf16.vlgmr.msra.gmra.mxu2 %v2551_v53  ;;  %2604 = vmatmul.bf16.vlgmr.msra.gmra.mxu3 %v2552_v54  ;;  %v4538_v62 = vor.u32 %v4981_v0, %v4535_v61  ;;  %v4976_v53 = vld [vmem:[%s5374_s17 + $0x2c4] sm:$0xf]  ;;  %v4510_v54 = vor.u32 %v4978_v50, %v4509_v63  ;;  %v2725_v0 = vld [vmem:[#allocation1 + $0x12] sm:$0xff]  ;;  %v2726_v61 = vld [vmem:[#allocation1 + $0x1b] sm:$0xff] }
 0x684   : > { %v4514_v44 = vor.u32 %v4976_v53, %v4511_v29  ;;  %2757 = vmatpush.bf16.msra.mxu2 %v6049_v35 }
 0x685   : > { %2708 = vmatpush.bf16.msrb.mxu3 %v4538_v62  ;;  %2670 = vmatpush.bf16.msrb.mxu0 %v4510_v54  ;;  %v6314_v62 = vld [vmem:[%s5267_s13] ss:$0 sm:$0xff] }
 0x686   : > { %2683 = vmatpush.bf16.msrb.mxu1 %v4514_v44 }
 0x688   : > { %2758 = vmatpush.bf16.msra.mxu2 %v6131_v20 }
 0x689   : > { %2709 = vmatpush.bf16.msrb.mxu3 %v4522_v43  ;;  %2731 = vmatpush.bf16.msra.mxu0 %v6041_v34 }
 0x68a   : > { %2744 = vmatpush.bf16.msra.mxu1 %v6045_v21 }
 0x68c   : > { %2759 = vmatpush.bf16.msra.mxu2 %v6147_v56 }
 0x68d   : > { %2770 = vmatpush.bf16.msra.mxu3 %v6053_v36  ;;  %2732 = vmatpush.bf16.msra.mxu0 %v6057_v2 }
 0x68e   : > { %2745 = vmatpush.bf16.msra.mxu1 %v6061_v32 }
 0x690   : > { %2760 = vmatpush.bf16.msra.mxu2 %v6163_v16 }
 0x691   : > { %2771 = vmatpush.bf16.msra.mxu3 %v6135_v26  ;;  %2733 = vmatpush.bf16.msra.mxu0 %v6139_v58 }
 0x692   : > { %2746 = vmatpush.bf16.msra.mxu1 %v6143_v45 }
 0x694   : > { %2761 = vmatpush.bf16.msra.mxu2 %v6185_v28 }
 0x695   : > { %2772 = vmatpush.bf16.msra.mxu3 %v6151_v8  ;;  %2734 = vmatpush.bf16.msra.mxu0 %v6155_v13 }
 0x696   : > { %2747 = vmatpush.bf16.msra.mxu1 %v6159_v15 }
 0x698   : > { %2762 = vmatpush.bf16.msra.mxu2 %v6201_v11 }
 0x699   : > { %2773 = vmatpush.bf16.msra.mxu3 %v6167_v23  ;;  %2735 = vmatpush.bf16.msra.mxu0 %v6177_v6 }
 0x69a   : > { %2748 = vmatpush.bf16.msra.mxu1 %v6181_v27 }
 0x69c   : > { %2763 = vmatpush.bf16.msra.mxu2 %v6223_v9 }
 0x69d   : > { %2774 = vmatpush.bf16.msra.mxu3 %v6189_v3  ;;  %2736 = vmatpush.bf16.msra.mxu0 %v6193_v47 }
 0x69e   : > { %2749 = vmatpush.bf16.msra.mxu1 %v6197_v37 }
 0x6a0   : > { %2764 = vmatpush.bf16.msra.mxu2 %v6240_v5 }
 0x6a1   : > { %2775 = vmatpush.bf16.msra.mxu3 %v6211_v51  ;;  %2737 = vmatpush.bf16.msra.mxu0 %v6215_v52 }
 0x6a2   : > { %2750 = vmatpush.bf16.msra.mxu1 %v6219_v1 }
 0x6a5   : > { %2776 = vmatpush.bf16.msra.mxu3 %v6227_v10  ;;  %2738 = vmatpush.bf16.msra.mxu0 %v6232_v40 }
 0x6a6   : > { %2751 = vmatpush.bf16.msra.mxu1 %v6236_v4 }
 0x6a9   : > { %2777 = vmatpush.bf16.msra.mxu3 %v6244_v48 }
 0x6ef   : > { %v2498_v38 = vpop.f32.mrf.mxu0  ;;  %v2511_v17 = vpop.f32.mrf.mxu1 }
 0x6f0   : > { %v6285_v18 = vadd.f32 %v2498_v38, %v6171_v24  ;;  %v6288_v7 = vadd.f32 %v2511_v17, %v6174_v25  ;;  %v4570_v38 = vld [vmem:[%s5374_s17 + $0x320] sm:$0xf]  ;;  %v4990_v17 = vld [vmem:[%s5374_s17 + $0x32c] sm:$0xf0] }
 0x6f6   : > { %v2524_v60 = vpop.f32.mrf.mxu2  ;;  %v2537_v19 = vpop.f32.mrf.mxu3 }
 0x6f7   : > { %v6298_v24 = vadd.f32 %v2524_v60, %v6205_v12  ;;  %v6301_v25 = vadd.f32 %v2537_v19, %v6208_v57  ;;  %v2500_v22 = vpop.f32.mrf.mxu0  ;;  %v2513_v55 = vpop.f32.mrf.mxu1  ;;  %v2723_v57 = vld [vmem:[#allocation1] sm:$0xff]  ;;  %v4571_v19 = vor.u32 %v4990_v17, %v4570_v38 }
 0x6f8   : > { %2896 = vst [vmem:[#allocation1] ss:$9 sm:$0xff] %v4588_v31  ;;  %v4988_v60 = vld [vmem:[%s5374_s17 + $0x324] sm:$0xf]  ;;  %v4572_v22 = vld [vmem:[%s5374_s17 + $0x330] sm:$0xf0] }
 0x6f9   : > { %v4578_v55 = vld [vmem:[%s5374_s17 + $0x328] sm:$0xf]  ;;  %v4991_v31 = vld [vmem:[%s5374_s17 + $0x334] sm:$0xf0] }
 0x6fe   : > { %v2526_v12 = vpop.f32.mrf.mxu2  ;;  %v2539_v49 = vpop.f32.mrf.mxu3 }
 0x6ff   : > { %v2566_v59 = vpop.f32.mrf.mxu0  ;;  %v2579_v39 = vpop.f32.mrf.mxu1  ;;  %v4575_v12 = vor.u32 %v4988_v60, %v4572_v22  ;;  %v4579_v49 = vor.u32 %v4991_v31, %v4578_v55  ;;  %v4633_v55 = vld [vmem:[%s5244_s10 + $0x38] sm:$0xf] }
 0x700   : > { %v2567_v63 = vadd.f32 %v6314_v62, %v2566_v59  ;;  %v4989_v59 = vld [vmem:[%s5374_s17 + $0x32c] sm:$0xf] }
 0x702   : > { %v2580_v50 = vadd.f32 %v2579_v39, %v2567_v63 }
 0x706   : > { %v2592_v53 = vpop.f32.mrf.mxu2  ;;  %v2605_v54 = vpop.f32.mrf.mxu3 }
 0x707   : > { %v2593_v29 = vadd.f32 %v2592_v53, %v2580_v50  ;;  %v2568_v41 = vpop.f32.mrf.mxu0  ;;  %v2581_v42 = vpop.f32.mrf.mxu1  ;;  %v4556_v50 = vld [vmem:[%s5374_s17 + $0x310] sm:$0xf0]  ;;  %v4562_v53 = vld [vmem:[%s5374_s17 + $0x308] sm:$0xf] }
 0x708   : > { %v4985_v42 = vld [vmem:[%s5374_s17 + $0x30c] sm:$0xf] }
 0x709   : > { %v2606_v44 = vadd.f32 %v2605_v54, %v2593_v29  ;;  %v4987_v54 = vld [vmem:[%s5374_s17 + $0x314] sm:$0xf0] }
 0x70a   : > { %v4563_v41 = vor.u32 %v4987_v54, %v4562_v53 }
 0x70b   : > { %v2609_v30 = vmax.f32 %v2606_v44, 0.0  ;;  %v4564_v44 = vld [vmem:[%s5374_s17 + $0x318] sm:$0xf0] }
 0x70d   : > { %v2610_v46 = vpack.c.bf16 %v2609_v30, %v2609_v30  ;;  %v4567_v30 = vor.u32 %v4985_v42, %v4564_v44 }
 0x70e   : > { %v2594_v33 = vpop.f32.mrf.mxu2  ;;  %v2607_v43 = vpop.f32.mrf.mxu3 }
 0x70f   : > { %4539 = vmatmul.msk.bf16.vlgmr.msrb.gmra.mxu0 %vm828_vm0, %v2610_v46  ;;  %4540 = vmatmul.msk.bf16.vlgmr.msrb.gmra.mxu1 %vm828_vm0, %v2610_v46 }
 0x710   : > { %4541 = vmatmul.msk.bf16.vlgmr.msrb.gmra.mxu2 %vm828_vm0, %v2610_v46  ;;  %4542 = vmatmul.msk.bf16.vlgmr.msrb.gmra.mxu3 %vm828_vm0, %v2610_v46 }
 0x711   : > { %2843 = vmatpush.bf16.msrb.mxu0 %v4571_v19  ;;  %2856 = vmatpush.bf16.msrb.mxu1 %v4575_v12 }
 0x712   : > { %2869 = vmatpush.bf16.msrb.mxu2 %v4579_v49 }
 0x716   : > { %2870 = vmatpush.bf16.msrb.mxu2 %v4563_v41 }
 0x71f   : > { %2739 = vmatmul.bf16.vlgmr.msra.gmra.mxu0 %v2723_v57  ;;  %2752 = vmatmul.bf16.vlgmr.msra.gmra.mxu1 %v2724_v14  ;;  %v4580_v57 = vld [vmem:[%s5374_s17 + $0x338] sm:$0xf0]  ;;  %v4554_v14 = vld [vmem:[%s5374_s17 + $0x300] sm:$0xf] }
 0x720   : > { %2765 = vmatmul.bf16.vlgmr.msra.gmra.mxu2 %v2725_v0  ;;  %2778 = vmatmul.bf16.vlgmr.msra.gmra.mxu3 %v2726_v61  ;;  %v4583_v39 = vor.u32 %v4989_v59, %v4580_v57  ;;  %v4986_v0 = vld [vmem:[%s5374_s17 + $0x30c] sm:$0xf0]  ;;  %v4984_v61 = vld [vmem:[%s5374_s17 + $0x304] sm:$0xf] }
 0x721   : > { %v4555_v63 = vor.u32 %v4986_v0, %v4554_v14  ;;  %v4559_v29 = vor.u32 %v4984_v61, %v4556_v50  ;;  %2931 = vmatpush.bf16.msra.mxu2 %v6049_v35  ;;  %v2898_v59 = vld [vmem:[#allocation1 + $0x9] sm:$0xff]  ;;  %v2899_v57 = vld [vmem:[#allocation1 + $0x12] sm:$0xff] }
 0x722   : > { %2882 = vmatpush.bf16.msrb.mxu3 %v4583_v39  ;;  %v2900_v39 = vld [vmem:[#allocation1 + $0x1b] sm:$0xff] }
 0x723   : > { %2844 = vmatpush.bf16.msrb.mxu0 %v4555_v63  ;;  %2857 = vmatpush.bf16.msrb.mxu1 %v4559_v29 }
 0x725   : > { %2932 = vmatpush.bf16.msra.mxu2 %v6131_v20 }
 0x726   : > { %2883 = vmatpush.bf16.msrb.mxu3 %v4567_v30 }
 0x727   : > { %2905 = vmatpush.bf16.msra.mxu0 %v6041_v34  ;;  %2918 = vmatpush.bf16.msra.mxu1 %v6045_v21 }
 0x729   : > { %2933 = vmatpush.bf16.msra.mxu2 %v6147_v56 }
 0x72a   : > { %2944 = vmatpush.bf16.msra.mxu3 %v6053_v36 }
 0x72b   : > { %2906 = vmatpush.bf16.msra.mxu0 %v6057_v2  ;;  %2919 = vmatpush.bf16.msra.mxu1 %v6061_v32 }
 0x72d   : > { %2934 = vmatpush.bf16.msra.mxu2 %v6163_v16 }
 0x72e   : > { %2945 = vmatpush.bf16.msra.mxu3 %v6135_v26 }
 0x72f   : > { %2907 = vmatpush.bf16.msra.mxu0 %v6139_v58  ;;  %2920 = vmatpush.bf16.msra.mxu1 %v6143_v45 }
 0x731   : > { %2935 = vmatpush.bf16.msra.mxu2 %v6185_v28 }
 0x732   : > { %2946 = vmatpush.bf16.msra.mxu3 %v6151_v8 }
 0x733   : > { %2908 = vmatpush.bf16.msra.mxu0 %v6155_v13  ;;  %2921 = vmatpush.bf16.msra.mxu1 %v6159_v15 }
 0x735   : > { %2936 = vmatpush.bf16.msra.mxu2 %v6201_v11 }
 0x736   : > { %2947 = vmatpush.bf16.msra.mxu3 %v6167_v23 }
 0x737   : > { %2909 = vmatpush.bf16.msra.mxu0 %v6177_v6  ;;  %2922 = vmatpush.bf16.msra.mxu1 %v6181_v27 }
 0x739   : > { %2937 = vmatpush.bf16.msra.mxu2 %v6223_v9 }
 0x73a   : > { %2948 = vmatpush.bf16.msra.mxu3 %v6189_v3 }
 0x73b   : > { %2910 = vmatpush.bf16.msra.mxu0 %v6193_v47  ;;  %2923 = vmatpush.bf16.msra.mxu1 %v6197_v37 }
 0x73d   : > { %2938 = vmatpush.bf16.msra.mxu2 %v6240_v5 }
 0x73e   : > { %2949 = vmatpush.bf16.msra.mxu3 %v6211_v51 }
 0x73f   : > { %2911 = vmatpush.bf16.msra.mxu0 %v6215_v52  ;;  %2924 = vmatpush.bf16.msra.mxu1 %v6219_v1 }
 0x742   : > { %2950 = vmatpush.bf16.msra.mxu3 %v6227_v10 }
 0x743   : > { %2912 = vmatpush.bf16.msra.mxu0 %v6232_v40  ;;  %2925 = vmatpush.bf16.msra.mxu1 %v6236_v4 }
 0x746   : > { %2951 = vmatpush.bf16.msra.mxu3 %v6244_v48 }
 0x78c   : > { %v2672_v46 = vpop.f32.mrf.mxu0  ;;  %v2685_v33 = vpop.f32.mrf.mxu1 }
 0x78d   : > { %v6354_v43 = vadd.f32 %v2672_v46, %v6285_v18  ;;  %v6357_v38 = vadd.f32 %v2685_v33, %v6288_v7  ;;  %v4615_v46 = vld [vmem:[%s5374_s17 + $0x360] sm:$0xf]  ;;  %v4998_v33 = vld [vmem:[%s5374_s17 + $0x36c] sm:$0xf0] }
 0x793   : > { %v2698_v17 = vpop.f32.mrf.mxu2  ;;  %v2711_v60 = vpop.f32.mrf.mxu3 }
 0x794   : > { %v6367_v18 = vadd.f32 %v2698_v17, %v6298_v24  ;;  %v6370_v7 = vadd.f32 %v2711_v60, %v6301_v25  ;;  %v2674_v19 = vpop.f32.mrf.mxu0  ;;  %v2687_v22 = vpop.f32.mrf.mxu1  ;;  %v2897_v25 = vld [vmem:[#allocation1] sm:$0xff]  ;;  %v4616_v60 = vor.u32 %v4998_v33, %v4615_v46 }
 0x795   : > { %3070 = vst [vmem:[#allocation1] ss:$9 sm:$0xff] %v4633_v55  ;;  %v4996_v17 = vld [vmem:[%s5374_s17 + $0x364] sm:$0xf]  ;;  %v4617_v19 = vld [vmem:[%s5374_s17 + $0x370] sm:$0xf0] }
 0x796   : > { %v4623_v22 = vld [vmem:[%s5374_s17 + $0x368] sm:$0xf]  ;;  %v4999_v55 = vld [vmem:[%s5374_s17 + $0x374] sm:$0xf0] }
 0x79b   : > { %v2700_v24 = vpop.f32.mrf.mxu2  ;;  %v2713_v31 = vpop.f32.mrf.mxu3 }
 0x79c   : > { %v2740_v12 = vpop.f32.mrf.mxu0  ;;  %v2753_v49 = vpop.f32.mrf.mxu1  ;;  %v4620_v24 = vor.u32 %v4996_v17, %v4617_v19  ;;  %v4624_v31 = vor.u32 %v4999_v55, %v4623_v22  ;;  %v3073_v19 = vld [vmem:[#allocation1 + $0x12] sm:$0xff]  ;;  %v3074_v22 = vld [vmem:[#allocation1 + $0x1b] sm:$0xff] }
 0x79d   : > { %v2741_v14 = vadd.f32 %v6314_v62, %v2740_v12  ;;  %v4997_v12 = vld [vmem:[%s5374_s17 + $0x36c] sm:$0xf] }
 0x79f   : > { %v2754_v0 = vadd.f32 %v2753_v49, %v2741_v14 }
 0x7a3   : > { %v2766_v61 = vpop.f32.mrf.mxu2  ;;  %v2779_v63 = vpop.f32.mrf.mxu3 }
 0x7a4   : > { %v2767_v50 = vadd.f32 %v2766_v61, %v2754_v0  ;;  %v2742_v53 = vpop.f32.mrf.mxu0  ;;  %v2755_v54 = vpop.f32.mrf.mxu1  ;;  %v4601_v0 = vld [vmem:[%s5374_s17 + $0x350] sm:$0xf0]  ;;  %v4607_v61 = vld [vmem:[%s5374_s17 + $0x348] sm:$0xf] }
 0x7a5   : > { %v4993_v54 = vld [vmem:[%s5374_s17 + $0x34c] sm:$0xf] }
 0x7a6   : > { %v2780_v29 = vadd.f32 %v2779_v63, %v2767_v50  ;;  %v4995_v63 = vld [vmem:[%s5374_s17 + $0x354] sm:$0xf0] }
 0x7a7   : > { %v4608_v53 = vor.u32 %v4995_v63, %v4607_v61  ;;  %v4660_v63 = vld [vmem:[%s5374_s17 + $0x3a0] sm:$0xf] }
 0x7a8   : > { %v2783_v41 = vmax.f32 %v2780_v29, 0.0  ;;  %v4609_v29 = vld [vmem:[%s5374_s17 + $0x358] sm:$0xf0] }
 0x7aa   : > { %v2784_v42 = vpack.c.bf16 %v2783_v41, %v2783_v41  ;;  %v4612_v41 = vor.u32 %v4993_v54, %v4609_v29  ;;  %v4662_v29 = vld [vmem:[%s5374_s17 + $0x3b0] sm:$0xf0] }
 0x7ab   : > { %v2768_v44 = vpop.f32.mrf.mxu2  ;;  %v2781_v30 = vpop.f32.mrf.mxu3 }
 0x7ac   : > { %4584 = vmatmul.msk.bf16.vlgmr.msrb.gmra.mxu0 %vm828_vm0, %v2784_v42  ;;  %4585 = vmatmul.msk.bf16.vlgmr.msrb.gmra.mxu1 %vm828_vm0, %v2784_v42  ;;  %v4678_v30 = vld [vmem:[%s5244_s10 + $0x3c] sm:$0xf] }
 0x7ad   : > { %4586 = vmatmul.msk.bf16.vlgmr.msrb.gmra.mxu2 %vm828_vm0, %v2784_v42  ;;  %4587 = vmatmul.msk.bf16.vlgmr.msrb.gmra.mxu3 %vm828_vm0, %v2784_v42 }
 0x7ae   : > { %3017 = vmatpush.bf16.msrb.mxu0 %v4616_v60  ;;  %3030 = vmatpush.bf16.msrb.mxu1 %v4620_v24  ;;  %v3072_v60 = vld [vmem:[#allocation1 + $0x9] sm:$0xff] }
 0x7af   : > { %3043 = vmatpush.bf16.msrb.mxu2 %v4624_v31 }
 0x7b3   : > { %3044 = vmatpush.bf16.msrb.mxu2 %v4608_v53  ;;  %v5004_v53 = vld [vmem:[%s5374_s17 + $0x3a4] sm:$0xf] }
 0x7bc   : > { %2913 = vmatmul.bf16.vlgmr.msra.gmra.mxu0 %v2897_v25  ;;  %2926 = vmatmul.bf16.vlgmr.msra.gmra.mxu1 %v2898_v59  ;;  %v4625_v25 = vld [vmem:[%s5374_s17 + $0x378] sm:$0xf0]  ;;  %v4599_v59 = vld [vmem:[%s5374_s17 + $0x340] sm:$0xf] }
 0x7bd   : > { %2939 = vmatmul.bf16.vlgmr.msra.gmra.mxu2 %v2899_v57  ;;  %2952 = vmatmul.bf16.vlgmr.msra.gmra.mxu3 %v2900_v39  ;;  %v4628_v49 = vor.u32 %v4997_v12, %v4625_v25  ;;  %v4994_v57 = vld [vmem:[%s5374_s17 + $0x34c] sm:$0xf0]  ;;  %v4992_v39 = vld [vmem:[%s5374_s17 + $0x344] sm:$0xf] }
 0x7be   : > { %v4600_v14 = vor.u32 %v4994_v57, %v4599_v59  ;;  %v4604_v50 = vor.u32 %v4992_v39, %v4601_v0  ;;  %3105 = vmatpush.bf16.msra.mxu2 %v6049_v35 }
 0x7bf   : > { %3056 = vmatpush.bf16.msrb.mxu3 %v4628_v49 }
 0x7c0   : > { %3018 = vmatpush.bf16.msrb.mxu0 %v4600_v14  ;;  %3031 = vmatpush.bf16.msrb.mxu1 %v4604_v50  ;;  %v5006_v50 = vld [vmem:[%s5374_s17 + $0x3ac] sm:$0xf0] }
 0x7c1   : > { %v4661_v54 = vor.u32 %v5006_v50, %v4660_v63  ;;  %v4715_v50 = vld [vmem:[%s5374_s17 + $0x3f8] sm:$0xf0] }
 0x7c2   : > { %3106 = vmatpush.bf16.msra.mxu2 %v6131_v20 }
 0x7c3   : > { %3057 = vmatpush.bf16.msrb.mxu3 %v4612_v41  ;;  %v4668_v41 = vld [vmem:[%s5374_s17 + $0x3a8] sm:$0xf] }
 0x7c4   : > { %3079 = vmatpush.bf16.msra.mxu0 %v6041_v34  ;;  %3092 = vmatpush.bf16.msra.mxu1 %v6045_v21 }
 0x7c6   : > { %3107 = vmatpush.bf16.msra.mxu2 %v6147_v56 }
 0x7c7   : > { %3118 = vmatpush.bf16.msra.mxu3 %v6053_v36 }
 0x7c8   : > { %3080 = vmatpush.bf16.msra.mxu0 %v6057_v2  ;;  %3093 = vmatpush.bf16.msra.mxu1 %v6061_v32 }
 0x7ca   : > { %3108 = vmatpush.bf16.msra.mxu2 %v6163_v16 }
 0x7cb   : > { %3119 = vmatpush.bf16.msra.mxu3 %v6135_v26 }
 0x7cc   : > { %3081 = vmatpush.bf16.msra.mxu0 %v6139_v58  ;;  %3094 = vmatpush.bf16.msra.mxu1 %v6143_v45 }
 0x7ce   : > { %3109 = vmatpush.bf16.msra.mxu2 %v6185_v28 }
 0x7cf   : > { %3120 = vmatpush.bf16.msra.mxu3 %v6151_v8 }
 0x7d0   : > { %3082 = vmatpush.bf16.msra.mxu0 %v6155_v13  ;;  %3095 = vmatpush.bf16.msra.mxu1 %v6159_v15 }
 0x7d2   : > { %3110 = vmatpush.bf16.msra.mxu2 %v6201_v11 }
 0x7d3   : > { %3121 = vmatpush.bf16.msra.mxu3 %v6167_v23 }
 0x7d4   : > { %3083 = vmatpush.bf16.msra.mxu0 %v6177_v6  ;;  %3096 = vmatpush.bf16.msra.mxu1 %v6181_v27 }
 0x7d6   : > { %3111 = vmatpush.bf16.msra.mxu2 %v6223_v9 }
 0x7d7   : > { %3122 = vmatpush.bf16.msra.mxu3 %v6189_v3 }
 0x7d8   : > { %3084 = vmatpush.bf16.msra.mxu0 %v6193_v47  ;;  %3097 = vmatpush.bf16.msra.mxu1 %v6197_v37 }
 0x7da   : > { %3112 = vmatpush.bf16.msra.mxu2 %v6240_v5 }
 0x7db   : > { %3123 = vmatpush.bf16.msra.mxu3 %v6211_v51 }
 0x7dc   : > { %3085 = vmatpush.bf16.msra.mxu0 %v6215_v52  ;;  %3098 = vmatpush.bf16.msra.mxu1 %v6219_v1 }
 0x7df   : > { %3124 = vmatpush.bf16.msra.mxu3 %v6227_v10 }
 0x7e0   : > { %3086 = vmatpush.bf16.msra.mxu0 %v6232_v40  ;;  %3099 = vmatpush.bf16.msra.mxu1 %v6236_v4 }
 0x7e3   : > { %3125 = vmatpush.bf16.msra.mxu3 %v6244_v48 }
 0x829   : > { %v2846_v34 = vpop.f32.mrf.mxu0  ;;  %v2859_v21 = vpop.f32.mrf.mxu1 }
 0x82a   : > { %v6420_v35 = vadd.f32 %v2846_v34, %v6354_v43  ;;  %v6423_v36 = vadd.f32 %v2859_v21, %v6357_v38  ;;  %v5007_v34 = vld [vmem:[%s5374_s17 + $0x3b4] sm:$0xf0]  ;;  %v4665_v21 = vor.u32 %v5004_v53, %v4662_v29  ;;  %v5014_v29 = vld [vmem:[%s5374_s17 + $0x3ec] sm:$0xf0] }
 0x830   : > { %v2872_v2 = vpop.f32.mrf.mxu2  ;;  %v2885_v32 = vpop.f32.mrf.mxu3 }
 0x831   : > { %v6433_v43 = vadd.f32 %v2872_v2, %v6367_v18  ;;  %v6436_v38 = vadd.f32 %v2885_v32, %v6370_v7  ;;  %v2848_v42 = vpop.f32.mrf.mxu0  ;;  %v2861_v44 = vpop.f32.mrf.mxu1  ;;  %v3071_v7 = vld [vmem:[#allocation1] sm:$0xff]  ;;  %v4669_v2 = vor.u32 %v5007_v34, %v4668_v41  ;;  %v5005_v32 = vld [vmem:[%s5374_s17 + $0x3ac] sm:$0xf] }
 0x832   : > { %3244 = vst [vmem:[#allocation1] ss:$9 sm:$0xff] %v4678_v30  ;;  %v4670_v42 = vld [vmem:[%s5374_s17 + $0x3b8] sm:$0xf0]  ;;  %v4644_v30 = vld [vmem:[%s5374_s17 + $0x380] sm:$0xf] }
 0x833   : > { %v4673_v44 = vor.u32 %v5005_v32, %v4670_v42  ;;  %v5012_v41 = vld [vmem:[%s5374_s17 + $0x3e4] sm:$0xf]  ;;  %v4697_v32 = vld [vmem:[%s5374_s17 + $0x3c8] sm:$0xf]  ;;  %v5011_v42 = vld [vmem:[%s5374_s17 + $0x3d4] sm:$0xf0] }
 0x838   : > { %v2874_v18 = vpop.f32.mrf.mxu2  ;;  %v2887_v46 = vpop.f32.mrf.mxu3 }
 0x839   : > { %v2914_v33 = vpop.f32.mrf.mxu0  ;;  %v2927_v17 = vpop.f32.mrf.mxu1  ;;  %v5002_v18 = vld [vmem:[%s5374_s17 + $0x38c] sm:$0xf0]  ;;  %v5000_v46 = vld [vmem:[%s5374_s17 + $0x384] sm:$0xf] }
 0x83a   : > { %v2915_v55 = vadd.f32 %v6314_v62, %v2914_v33  ;;  %v4646_v33 = vld [vmem:[%s5374_s17 + $0x390] sm:$0xf0] }
 0x83c   : > { %v2928_v24 = vadd.f32 %v2927_v17, %v2915_v55  ;;  %v4652_v17 = vld [vmem:[%s5374_s17 + $0x388] sm:$0xf]  ;;  %v5001_v55 = vld [vmem:[%s5374_s17 + $0x38c] sm:$0xf] }
 0x840   : > { %v2940_v31 = vpop.f32.mrf.mxu2  ;;  %v2953_v12 = vpop.f32.mrf.mxu3 }
 0x841   : > { %v2941_v25 = vadd.f32 %v2940_v31, %v2928_v24  ;;  %v2916_v49 = vpop.f32.mrf.mxu0  ;;  %v2929_v59 = vpop.f32.mrf.mxu1  ;;  %v4654_v24 = vld [vmem:[%s5374_s17 + $0x398] sm:$0xf0] }
 0x842   : > { %v4657_v31 = vor.u32 %v5001_v55, %v4654_v24  ;;  %v5126_v49 = vld [vmem:[%s5194_s29 + $0xb8] sm:$0xff] }
 0x843   : > { %v2954_v57 = vadd.f32 %v2953_v12, %v2941_v25  ;;  %v5124_v12 = vld [vmem:[%s5194_s29 + $0x38] sm:$0xff] }
 0x844   : > { %v5125_v25 = vld [vmem:[%s5194_s29 + $0x78] sm:$0xff] }
 0x845   : > { %v2957_v39 = vmax.f32 %v2954_v57, 0.0  ;;  %v5127_v59 = vld [vmem:[%s5194_s29 + $0xf8] sm:$0xff]  ;;  %v5128_v57 = vld [vmem:[%s5194_s29 + $0x30] sm:$0xff] }
 0x847   : > { %v2958_v14 = vpack.c.bf16 %v2957_v39, %v2957_v39  ;;  %v5129_v39 = vld [vmem:[%s5194_s29 + $0x70] sm:$0xff]  ;;  %s366_s29 = scalar_lea.vmem %s6618_s4, %s3880_s26 }
 0x848   : > { %v2942_v0 = vpop.f32.mrf.mxu2  ;;  %v2955_v61 = vpop.f32.mrf.mxu3 }
 0x849   : > { %4629 = vmatmul.msk.bf16.vlgmr.msrb.gmra.mxu0 %vm828_vm0, %v2958_v14  ;;  %4630 = vmatmul.msk.bf16.vlgmr.msrb.gmra.mxu1 %vm828_vm0, %v2958_v14  ;;  %v5013_v61 = vld [vmem:[%s5374_s17 + $0x3ec] sm:$0xf] }
 0x84a   : > { %4631 = vmatmul.msk.bf16.vlgmr.msrb.gmra.mxu2 %vm828_vm0, %v2958_v14  ;;  %4632 = vmatmul.msk.bf16.vlgmr.msrb.gmra.mxu3 %vm828_vm0, %v2958_v14  ;;  %v4718_v53 = vor.u32 %v5013_v61, %v4715_v50 }
 0x84b   : > { %3191 = vmatpush.bf16.msrb.mxu0 %v4661_v54  ;;  %3204 = vmatpush.bf16.msrb.mxu1 %v4665_v21  ;;  %v4705_v54 = vld [vmem:[%s5374_s17 + $0x3e0] sm:$0xf]  ;;  %v4707_v21 = vld [vmem:[%s5374_s17 + $0x3f0] sm:$0xf0] }
 0x84c   : > { %3217 = vmatpush.bf16.msrb.mxu2 %v4669_v2  ;;  %3230 = vmatpush.bf16.msrb.mxu3 %v4673_v44  ;;  %v4706_v34 = vor.u32 %v5014_v29, %v4705_v54  ;;  %v4710_v2 = vor.u32 %v5012_v41, %v4707_v21  ;;  %v5009_v44 = vld [vmem:[%s5374_s17 + $0x3cc] sm:$0xf]  ;;  %v5035_v54 = vld [vmem:[%s6539_s20 + $0x98] sm:$0xff]  ;;  %v5034_v21 = vld [vmem:[%s6539_s20 + $0x90] sm:$0xff] }
 0x84d   : > { %v5043_v29 = vld [vmem:[%s6539_s20 + $0xd8] sm:$0xff]  ;;  %v5017_v41 = vld [vmem:[%s6539_s20 + $0x8] sm:$0xff] }
 0x850   : > { %3231 = vmatpush.bf16.msrb.mxu3 %v4657_v31 }
 0x859   : > { %3087 = vmatmul.bf16.vlgmr.msra.gmra.mxu0 %v3071_v7  ;;  %3100 = vmatmul.bf16.vlgmr.msra.gmra.mxu1 %v3072_v60  ;;  %v4645_v7 = vor.u32 %v5002_v18, %v4644_v30  ;;  %v5003_v60 = vld [vmem:[%s5374_s17 + $0x394] sm:$0xf0]  ;;  %v4698_v30 = vor.u32 %v5011_v42, %v4697_v32  ;;  %v4699_v18 = vld [vmem:[%s5374_s17 + $0x3d8] sm:$0xf0]  ;;  %v5016_v32 = vld [vmem:[%s6539_s20] sm:$0xff] }
 0x85a   : > { %3113 = vmatmul.bf16.vlgmr.msra.gmra.mxu2 %v3073_v19  ;;  %3126 = vmatmul.bf16.vlgmr.msra.gmra.mxu3 %v3074_v22  ;;  %v4649_v19 = vor.u32 %v5000_v46, %v4646_v33  ;;  %v4653_v22 = vor.u32 %v5003_v60, %v4652_v17  ;;  %v4689_v46 = vld [vmem:[%s5374_s17 + $0x3c0] sm:$0xf]  ;;  %v4702_v33 = vor.u32 %v5009_v44, %v4699_v18  ;;  %v5008_v60 = vld [vmem:[%s5374_s17 + $0x3c4] sm:$0xf]  ;;  %v5033_v44 = vld [vmem:[%s6539_s20 + $0x88] sm:$0xff] }
 0x85b   : > { %3192 = vmatpush.bf16.msrb.mxu0 %v4645_v7  ;;  %3292 = vmatpush.bf16.msra.mxu3 %v5127_v59  ;;  %v5010_v7 = vld [vmem:[%s5374_s17 + $0x3cc] sm:$0xf0]  ;;  %v5039_v59 = vld [vmem:[%s6539_s20 + $0xb8] sm:$0xff]  ;;  %v5024_v42 = vld [vmem:[%s6539_s20 + $0x40] sm:$0xff] }
 0x85c   : > { %3205 = vmatpush.bf16.msrb.mxu1 %v4649_v19  ;;  %3218 = vmatpush.bf16.msrb.mxu2 %v4653_v22  ;;  %v4690_v17 = vor.u32 %v5010_v7, %v4689_v46  ;;  %v4691_v19 = vld [vmem:[%s5374_s17 + $0x3d0] sm:$0xf0]  ;;  %v5032_v18 = vld [vmem:[%s6539_s20 + $0x80] sm:$0xff] }
 0x85d   : > { %v4694_v22 = vor.u32 %v5008_v60, %v4691_v19  ;;  %v5040_v46 = vld [vmem:[%s6539_s20 + $0xc0] sm:$0xff] }
 0x85e   : > { %v3415_v7 = vld [vmem:[%s366_s29] sm:$0xf] }
 0x85f   : > { %3253 = vmatpush.bf16.msra.mxu0 %v5124_v12  ;;  %3293 = vmatpush.bf16.msra.mxu3 %v6135_v26 }
 0x860   : > { %3266 = vmatpush.bf16.msra.mxu1 %v5125_v25  ;;  %3279 = vmatpush.bf16.msra.mxu2 %v5126_v49  ;;  %v5023_v25 = vld [vmem:[%s6539_s20 + $0x38] sm:$0xff] }
 0x861   : > { %v5031_v49 = vld [vmem:[%s6539_s20 + $0x78] sm:$0xff] }
 0x863   : > { %3254 = vmatpush.bf16.msra.mxu0 %v5128_v57  ;;  %3294 = vmatpush.bf16.msra.mxu3 %v6151_v8  ;;  %v5047_v57 = vld [vmem:[%s6539_s20 + $0xf8] sm:$0xff] }
 0x864   : > { %3267 = vmatpush.bf16.msra.mxu1 %v5129_v39  ;;  %3280 = vmatpush.bf16.msra.mxu2 %v6131_v20  ;;  %v5022_v39 = vld [vmem:[%s6539_s20 + $0x30] sm:$0xff] }
 0x867   : > { %3255 = vmatpush.bf16.msra.mxu0 %v6139_v58  ;;  %3295 = vmatpush.bf16.msra.mxu3 %v6167_v23 }
 0x868   : > { %3268 = vmatpush.bf16.msra.mxu1 %v6143_v45  ;;  %3281 = vmatpush.bf16.msra.mxu2 %v6147_v56 }
 0x86b   : > { %3256 = vmatpush.bf16.msra.mxu0 %v6155_v13  ;;  %3296 = vmatpush.bf16.msra.mxu3 %v6189_v3 }
 0x86c   : > { %3269 = vmatpush.bf16.msra.mxu1 %v6159_v15  ;;  %3282 = vmatpush.bf16.msra.mxu2 %v6163_v16 }
 0x86f   : > { %3257 = vmatpush.bf16.msra.mxu0 %v6177_v6  ;;  %3297 = vmatpush.bf16.msra.mxu3 %v6211_v51 }
 0x870   : > { %3270 = vmatpush.bf16.msra.mxu1 %v6181_v27  ;;  %3283 = vmatpush.bf16.msra.mxu2 %v6185_v28 }
 0x873   : > { %3258 = vmatpush.bf16.msra.mxu0 %v6193_v47  ;;  %3298 = vmatpush.bf16.msra.mxu3 %v6227_v10 }
 0x874   : > { %3271 = vmatpush.bf16.msra.mxu1 %v6197_v37  ;;  %3284 = vmatpush.bf16.msra.mxu2 %v6201_v11 }
 0x877   : > { %3259 = vmatpush.bf16.msra.mxu0 %v6215_v52  ;;  %3299 = vmatpush.bf16.msra.mxu3 %v6244_v48  ;;  %v3246_v48 = vld [vmem:[#allocation1 + $0x9] sm:$0xff] }
 0x878   : > { %3272 = vmatpush.bf16.msra.mxu1 %v6219_v1  ;;  %3285 = vmatpush.bf16.msra.mxu2 %v6223_v9 }
 0x87b   : > { %3260 = vmatpush.bf16.msra.mxu0 %v6232_v40 }
 0x87c   : > { %3273 = vmatpush.bf16.msra.mxu1 %v6236_v4  ;;  %3286 = vmatpush.bf16.msra.mxu2 %v6240_v5  ;;  %v3245_v5 = vld [vmem:[#allocation1] sm:$0xff] }
 0x8c6   : > { %v3020_v14 = vpop.f32.mrf.mxu0  ;;  %v3033_v0 = vpop.f32.mrf.mxu1 }
 0x8c7   : > { %v6486_v20 = vadd.f32 %v3020_v14, %v6420_v35  ;;  %v6489_v26 = vadd.f32 %v3033_v0, %v6423_v36  ;;  %v3247_v35 = vld [vmem:[#allocation1 + $0x12] sm:$0xff]  ;;  %v3248_v36 = vld [vmem:[#allocation1 + $0x1b] sm:$0xff] }
 0x8c8   : > { %v5030_v14 = vld [vmem:[%s6539_s20 + $0x70] sm:$0xff] }
 0x8c9   : > { %v5038_v0 = vld [vmem:[%s6539_s20 + $0xb0] sm:$0xff] }
 0x8cd   : > { %v3046_v58 = vpop.f32.mrf.mxu2  ;;  %v3059_v45 = vpop.f32.mrf.mxu3 }
 0x8ce   : > { %v6499_v56 = vadd.f32 %v3046_v58, %v6433_v43  ;;  %v6502_v8 = vadd.f32 %v3059_v45, %v6436_v38  ;;  %v3022_v13 = vpop.f32.mrf.mxu0  ;;  %v3035_v15 = vpop.f32.mrf.mxu1  ;;  %v4713_v43 = vld [vmem:[%s5374_s17 + $0x3e8] sm:$0xf]  ;;  %v5015_v38 = vld [vmem:[%s5374_s17 + $0x3f4] sm:$0xf0] }
 0x8cf   : > { %v4714_v63 = vor.u32 %v5015_v38, %v4713_v43  ;;  %v5021_v45 = vld [vmem:[%s6539_s20 + $0x28] sm:$0xff] }
 0x8d0   : > { %v5029_v13 = vld [vmem:[%s6539_s20 + $0x68] sm:$0xff] }
 0x8d5   : > { %v3048_v16 = vpop.f32.mrf.mxu2  ;;  %v3061_v23 = vpop.f32.mrf.mxu3 }
 0x8d6   : > { %v3088_v6 = vpop.f32.mrf.mxu0  ;;  %v3101_v27 = vpop.f32.mrf.mxu1 }
 0x8d7   : > { %v3089_v28 = vadd.f32 %v6314_v62, %v3088_v6 }
 0x8d9   : > { %v3102_v3 = vadd.f32 %v3101_v27, %v3089_v28  ;;  %v5037_v27 = vld [vmem:[%s6539_s20 + $0xa8] sm:$0xff] }
 0x8da   : > { %v5045_v28 = vld [vmem:[%s6539_s20 + $0xe8] sm:$0xff] }
 0x8dd   : > { %v3114_v47 = vpop.f32.mrf.mxu2  ;;  %v3127_v37 = vpop.f32.mrf.mxu3 }
 0x8de   : > { %v3115_v11 = vadd.f32 %v3114_v47, %v3102_v3  ;;  %v3090_v51 = vpop.f32.mrf.mxu0  ;;  %v3103_v52 = vpop.f32.mrf.mxu1  ;;  %v5020_v3 = vld [vmem:[%s6539_s20 + $0x20] sm:$0xff] }
 0x8df   : > { %v5028_v47 = vld [vmem:[%s6539_s20 + $0x60] sm:$0xff]  ;;  %v5019_v51 = vld [vmem:[%s6539_s20 + $0x18] sm:$0xff] }
 0x8e0   : > { %v3128_v1 = vadd.f32 %v3127_v37, %v3115_v11  ;;  %v5044_v37 = vld [vmem:[%s6539_s20 + $0xe0] sm:$0xff]  ;;  %v5027_v52 = vld [vmem:[%s6539_s20 + $0x58] sm:$0xff] }
 0x8e2   : > { %v3131_v9 = vmax.f32 %v3128_v1, 0.0 }
 0x8e4   : > { %v3132_v10 = vpack.c.bf16 %v3131_v9, %v3131_v9 }
 0x8e5   : > { %v3116_v40 = vpop.f32.mrf.mxu2  ;;  %v3129_v4 = vpop.f32.mrf.mxu3 }
 0x8e6   : > { %4674 = vmatmul.msk.bf16.vlgmr.msrb.gmra.mxu0 %vm828_vm0, %v3132_v10  ;;  %4675 = vmatmul.msk.bf16.vlgmr.msrb.gmra.mxu1 %vm828_vm0, %v3132_v10  ;;  %v5018_v40 = vld [vmem:[%s6539_s20 + $0x10] sm:$0xff] }
 0x8e7   : > { %4676 = vmatmul.msk.bf16.vlgmr.msrb.gmra.mxu2 %vm828_vm0, %v3132_v10  ;;  %4677 = vmatmul.msk.bf16.vlgmr.msrb.gmra.mxu3 %vm828_vm0, %v3132_v10  ;;  %v5026_v4 = vld [vmem:[%s6539_s20 + $0x50] sm:$0xff] }
 0x8e8   : > { %3391 = vmatpush.bf16.msrb.mxu2 %v4714_v63  ;;  %3404 = vmatpush.bf16.msrb.mxu3 %v4718_v53 }
 0x8e9   : > { %3365 = vmatpush.bf16.msrb.mxu0 %v4706_v34  ;;  %3378 = vmatpush.bf16.msrb.mxu1 %v4710_v2  ;;  %v5025_v34 = vld [vmem:[%s6539_s20 + $0x48] sm:$0xff]  ;;  %v5042_v2 = vld [vmem:[%s6539_s20 + $0xd0] sm:$0xff] }
 0x8ec   : > { %3392 = vmatpush.bf16.msrb.mxu2 %v4698_v30  ;;  %3405 = vmatpush.bf16.msrb.mxu3 %v4702_v33  ;;  %v5041_v30 = vld [vmem:[%s6539_s20 + $0xc8] sm:$0xff]  ;;  %v3417_v33 = vperm.slane %v3415_v7, 0 }
 0x8ed   : > { %3366 = vmatpush.bf16.msrb.mxu0 %v4690_v17  ;;  %3379 = vmatpush.bf16.msrb.mxu1 %v4694_v22  ;;  %v3418_v17 = vperm.slane %v3415_v7, 1 }
 0x8f6   : > { %3261 = vmatmul.bf16.vlgmr.msra.gmra.mxu0 %v3245_v5  ;;  %3274 = vmatmul.bf16.vlgmr.msra.gmra.mxu1 %v3246_v48 }
 0x8f7   : > { %3287 = vmatmul.bf16.vlgmr.msra.gmra.mxu2 %v3247_v35  ;;  %3300 = vmatmul.bf16.vlgmr.msra.gmra.mxu3 %v3248_v36 }
 0x8f8   : > { %3697 = vmatpush.bf16.msra.mxu0 %v5023_v25  ;;  %3710 = vmatpush.bf16.msra.mxu1 %v5031_v49 }
 0x8f9   : > { %3723 = vmatpush.bf16.msra.mxu2 %v5039_v59  ;;  %3736 = vmatpush.bf16.msra.mxu3 %v5047_v57  ;;  %v3419_v57 = vperm.slane %v3415_v7, 2 }
 0x8fc   : > { %3698 = vmatpush.bf16.msra.mxu0 %v5022_v39  ;;  %3711 = vmatpush.bf16.msra.mxu1 %v5030_v14  ;;  %v3420_v39 = vperm.slane %v3415_v7, 3 }
 0x8fd   : > { %3724 = vmatpush.bf16.msra.mxu2 %v5038_v0 }
 0x900   : > { %3699 = vmatpush.bf16.msra.mxu0 %v5021_v45  ;;  %3712 = vmatpush.bf16.msra.mxu1 %v5029_v13 }
 0x901   : > { %3725 = vmatpush.bf16.msra.mxu2 %v5037_v27 }
 0x904   : > { %3700 = vmatpush.bf16.msra.mxu0 %v5020_v3  ;;  %3713 = vmatpush.bf16.msra.mxu1 %v5028_v47 }
 0x908   : > { %3701 = vmatpush.bf16.msra.mxu0 %v5019_v51  ;;  %3714 = vmatpush.bf16.msra.mxu1 %v5027_v52 }
 0x90c   : > { %3702 = vmatpush.bf16.msra.mxu0 %v5018_v40  ;;  %3715 = vmatpush.bf16.msra.mxu1 %v5026_v4 }
 0x910   : > { %3703 = vmatpush.bf16.msra.mxu0 %v5017_v41  ;;  %3716 = vmatpush.bf16.msra.mxu1 %v5025_v34 }
 0x914   : > { %3704 = vmatpush.bf16.msra.mxu0 %v5016_v32  ;;  %3717 = vmatpush.bf16.msra.mxu1 %v5024_v42 }
 0x963   : > { %v3194_v55 = vpop.f32.mrf.mxu0  ;;  %v3207_v24 = vpop.f32.mrf.mxu1 }
 0x964   : > { %v6542_v31 = vadd.f32 %v3194_v55, %v6486_v20  ;;  %v6545_v12 = vadd.f32 %v3207_v24, %v6489_v26  ;;  %v5046_v20 = vld [vmem:[%s6539_s20 + $0xf0] sm:$0xff] }
 0x965   : > { %3737 = vmatpush.bf16.msra.mxu3 %v5046_v20 }
 0x969   : > { %3738 = vmatpush.bf16.msra.mxu3 %v5045_v28 }
 0x96a   : > { %v3220_v58 = vpop.f32.mrf.mxu2  ;;  %v3233_v26 = vpop.f32.mrf.mxu3 }
 0x96b   : > { %v6558_v15 = vadd.f32 %v3220_v58, %v6499_v56  ;;  %v6561_v16 = vadd.f32 %v3233_v26, %v6502_v8  ;;  %v3196_v23 = vpop.f32.mrf.mxu0  ;;  %v3209_v6 = vpop.f32.mrf.mxu1  ;;  %v5036_v56 = vld [vmem:[%s6539_s20 + $0xa0] sm:$0xff] }
 0x96c   : > { %3726 = vmatpush.bf16.msra.mxu2 %v5036_v56 }
 0x96d   : > { %3739 = vmatpush.bf16.msra.mxu3 %v5044_v37 }
 0x970   : > { %3727 = vmatpush.bf16.msra.mxu2 %v5035_v54 }
 0x971   : > { %3740 = vmatpush.bf16.msra.mxu3 %v5043_v29 }
 0x972   : > { %v3222_v8 = vpop.f32.mrf.mxu2  ;;  %v3235_v11 = vpop.f32.mrf.mxu3 }
 0x973   : > { %v3262_v1 = vpop.f32.mrf.mxu0  ;;  %v3275_v9 = vpop.f32.mrf.mxu1 }
 0x974   : > { %v3263_v10 = vadd.f32 %v6314_v62, %v3262_v1  ;;  %3728 = vmatpush.bf16.msra.mxu2 %v5034_v21 }
 0x975   : > { %3741 = vmatpush.bf16.msra.mxu3 %v5042_v2 }
 0x976   : > { %v3276_v5 = vadd.f32 %v3275_v9, %v3263_v10 }
 0x978   : > { %3729 = vmatpush.bf16.msra.mxu2 %v5033_v44 }
 0x979   : > { %3742 = vmatpush.bf16.msra.mxu3 %v5041_v30 }
 0x97a   : > { %v3288_v48 = vpop.f32.mrf.mxu2  ;;  %v3301_v35 = vpop.f32.mrf.mxu3 }
 0x97b   : > { %v3289_v36 = vadd.f32 %v3288_v48, %v3276_v5  ;;  %v3264_v43 = vpop.f32.mrf.mxu0  ;;  %v3277_v38 = vpop.f32.mrf.mxu1 }
 0x97c   : > { %3730 = vmatpush.bf16.msra.mxu2 %v5032_v18 }
 0x97d   : > { %v3302_v61 = vadd.f32 %v3301_v35, %v3289_v36  ;;  %3743 = vmatpush.bf16.msra.mxu3 %v5040_v46 }
 0x97f   : > { %v3305_v63 = vmax.f32 %v3302_v61, 0.0 }
 0x981   : > { %v3306_v62 = vpack.c.bf16 %v3305_v63, %v3305_v63 }
 0x982   : > { %v3290_v50 = vpop.f32.mrf.mxu2  ;;  %v3303_v53 = vpop.f32.mrf.mxu3 }
 0x983   : > { %4719 = vmatmul.msk.bf16.vlgmr.msrb.gmra.mxu0 %vm828_vm0, %v3306_v62  ;;  %4720 = vmatmul.msk.bf16.vlgmr.msrb.gmra.mxu1 %vm828_vm0, %v3306_v62 }
 0x984   : > { %4721 = vmatmul.msk.bf16.vlgmr.msrb.gmra.mxu2 %vm828_vm0, %v3306_v62  ;;  %4722 = vmatmul.msk.bf16.vlgmr.msrb.gmra.mxu3 %vm828_vm0, %v3306_v62 }
 0xa00   : > { %v3368_v60 = vpop.f32.mrf.mxu0  ;;  %v3381_v19 = vpop.f32.mrf.mxu1 }
 0xa01   : > { %v3411_v22 = vadd.f32 %v3368_v60, %v6542_v31  ;;  %v3412_v55 = vadd.f32 %v3381_v19, %v6545_v12 }
 0xa03   : > { %v3425_v24 = vadd.f32 %v3417_v33, %v3411_v22  ;;  %v3426_v25 = vadd.f32 %v3418_v17, %v3412_v55 }
 0xa05   : > { %v3429_v49 = vmax.f32 %v3425_v24, 0.0  ;;  %v3430_v59 = vmax.f32 %v3426_v25, 0.0 }
 0xa07   : > { %v3433_v14 = vpack.c.bf16 %v3429_v49, %v3429_v49  ;;  %v3434_v0 = vpack.c.bf16 %v3430_v59, %v3430_v59  ;;  %v3394_v20 = vpop.f32.mrf.mxu2  ;;  %v3407_v58 = vpop.f32.mrf.mxu3 }
 0xa08   : > { %v3413_v26 = vadd.f32 %v3394_v20, %v6558_v15  ;;  %v3414_v45 = vadd.f32 %v3407_v58, %v6561_v16  ;;  %v3370_v13 = vpop.f32.mrf.mxu0  ;;  %v3383_v23 = vpop.f32.mrf.mxu1  ;;  %v5057_v16 = vld [vmem:[%s374_s23] ss:$0 sm:$0xff] }
 0xa09   : > { %3705 = vmatmul.bf16.vlgmr.msra.gmra.mxu0 %v3433_v14  ;;  %3718 = vmatmul.bf16.vlgmr.msra.gmra.mxu1 %v3434_v0 }
 0xa0a   : > { %v3427_v31 = vadd.f32 %v3419_v57, %v3413_v26  ;;  %v3428_v12 = vadd.f32 %v3420_v39, %v3414_v45 }
 0xa0c   : > { %v3431_v6 = vmax.f32 %v3427_v31, 0.0  ;;  %v3432_v27 = vmax.f32 %v3428_v12, 0.0 }
 0xa0e   : > { %v3435_v28 = vpack.c.bf16 %v3431_v6, %v3431_v6  ;;  %v3436_v3 = vpack.c.bf16 %v3432_v27, %v3432_v27 }
 0xa0f   : > { %v3396_v47 = vpop.f32.mrf.mxu2  ;;  %v3409_v56 = vpop.f32.mrf.mxu3 }
 0xa10   : > { %3731 = vmatmul.bf16.vlgmr.msra.gmra.mxu2 %v3435_v28  ;;  %3744 = vmatmul.bf16.vlgmr.msra.gmra.mxu3 %v3436_v3 }
 0xa86   : > { %v3706_v37 = vpop.f32.mrf.mxu0  ;;  %v3719_v15 = vpop.f32.mrf.mxu1 }
 0xa87   : > { %v3707_v8 = vadd.f32 %v5057_v16, %v3706_v37 }
 0xa89   : > { %v3720_v52 = vadd.f32 %v3719_v15, %v3707_v8 }
 0xa8e   : > { %v3708_v11 = vpop.f32.mrf.mxu0  ;;  %v3721_v51 = vpop.f32.mrf.mxu1 }
 0xa93   : > { %v3732_v1 = vpop.f32.mrf.mxu2  ;;  %v3745_v9 = vpop.f32.mrf.mxu3 }
 0xa94   : > { %v3733_v10 = vadd.f32 %v3732_v1, %v3720_v52 }
 0xa96   : > { %v3746_v40 = vadd.f32 %v3745_v9, %v3733_v10 }
 0xa98   : > { %3750 = vst.msk [vmem:[%s378_s12] sm:$0x3] %vm3749_vm1, %v3746_v40 }
 0xa9b   : > { %v3734_v4 = vpop.f32.mrf.mxu2  ;;  %v3747_v5 = vpop.f32.mrf.mxu3 }
 0xa9c PF: > { %s17_s24 = sadd.s32 1, %s5136_s24  }
 0xa9d   : > { %p14_p4 = scmp.ge.s32.totalorder %s17_s24, 4  }
 0xa9f   :  { %16 = sbr.rel (!%p14_p4) target bundleno = 1 (0x1), region = 126 }

</bundles_post_ra>
